<compile_context>
chip_gen: v6e
topology: v6e:2x2x1
jax: 0.10.0
libtpu: 0.0.40
codegen_flags: <defaults>
</compile_context>

<pallas_src>
import functools

import jax
import jax.numpy as jnp
from jax import lax
from jax.experimental import pallas as pl
from jax.experimental.pallas import tpu as pltpu

EMB_DIM = 768          # fixed by the module's .view(1, -1, 768)
_EPS_SQ = 1e-24        # (torch.nn.functional.normalize eps=1e-12)**2
_NEG = -1e30           # additive mask for padded key columns


def _mnrl2_kernel(a_ref, kt_ref, bias_ref, loss_ref, *,
                  scale: float, n_valid: int, tile_m: int,
                  add_col_bias: bool, compute_dtype):
    """One query-row tile per grid step (no cross-step state -> 'parallel' grid).

    a_ref    : (TM, D)  raw query tile (input dtype)
    kt_ref   : (D, Bp)  pre-normalized, pre-transposed keys (resident across grid)
    bias_ref : (1, Bp)  additive column mask (0 valid / -1e30 padded key columns)
    loss_ref : (TM, 1)  per-row CE losses for this tile (padded rows -> 0)
    """
    i = pl.program_id(0)

    # Query inverse-norms in f32 with the CE scale folded in, applied to the
    # (TM, D) operand BEFORE the matmul (TM*D VPU work instead of TM*Bp).
    a32 = a_ref[...].astype(jnp.float32)
    inv_a = scale * lax.rsqrt(jnp.maximum(
        jnp.sum(a32 * a32, axis=-1, keepdims=True), _EPS_SQ))          # (TM, 1)
    a_op = (a32 * inv_a).astype(compute_dtype)                         # (TM, D)

    # (TM, D) @ (D, Bp): canonical MXU contraction, f32 accumulation.
    scores = lax.dot_general(a_op, kt_ref[...],
                             dimension_numbers=(((1,), (0,)), ((), ())),
                             preferred_element_type=jnp.float32)       # (TM, Bp)
    if add_col_bias:            # static: only emitted when the key axis is padded
        scores = scores + bias_ref[...]

    # ---- cross entropy with labels [1, 0, 0, ..., 0] -----------------------
    m = jnp.max(scores, axis=-1, keepdims=True)                        # (TM, 1)
    # TODO(synk): on v6e/v7x, computing exp in bf16 (f32 row-sum) would double
    # EUP throughput if a bundle dump shows the EUP slot saturating.
    lse = m + jnp.log(jnp.sum(jnp.exp(scores - m), axis=-1, keepdims=True))

    col0 = scores[:, 0:1]                                              # class 0
    col1 = scores[:, 1:2]                                              # class 1
    grow = i * tile_m + lax.broadcasted_iota(jnp.int32, (tile_m, 1), 0)
    target = jnp.where(grow == 0, col1, col0)                          # O(TM) work
    loss_ref[...] = jnp.where(grow < n_valid, lse - target, 0.0)       # padded rows -> 0


def _round_up(x, m):
    return ((x + m - 1) // m) * m


def _vmem_capacity_bytes():
    try:
        return int(pltpu.get_tpu_info().vmem_capacity_bytes)
    except Exception:
        return 128 << 20       # v5e / v6e default


def _vmem_need(bp, d, tm, isz_a, isz_c):
    return (2 * tm * d * isz_a      # query tile (double-buffered, input dtype)
            + 2 * bp * d * isz_c    # resident keys (conservative: 2 buffers)
            + 6 * tm * bp * 4       # (TM, Bp) f32 score / softmax temporaries
            + 2 * tm * d * 4        # f32 query-tile temporaries
            + (2 << 20))            # headroom


def _pick_tile_m(bp, d, isz_a, isz_c, vmem_cap):
    # v5e/v6e (128 MiB VMEM): TM=512 amortizes per-step overhead when it fits;
    # v7x (64 MiB): keep TM=256 so keys + f32 score temporaries still fit.
    for tm in (512, 256):
        if bp % tm != 0:
            continue
        if tm > 256 and vmem_cap < (100 << 20):
            continue
        if _vmem_need(bp, d, tm, isz_a, isz_c) <= vmem_cap - (12 << 20):
            return tm
    return 256


def _resident_spec(shape, single_buffer):
    """BlockSpec for a grid-invariant operand; single-buffer it when worthwhile."""
    idx = lambda i: (0, 0)
    if single_buffer:
        try:
            return pl.BlockSpec(shape, idx, pipeline_mode=pl.Buffered(1))
        except Exception:      # older jax without pipeline_mode support
            pass
    return pl.BlockSpec(shape, idx)


def code_mnrl2_loss(emb_a: jax.Array, emb_b: jax.Array, scale: float = 20.0,
                    use_bf16_matmul: bool = False) -> jax.Array:
    """emb_a, emb_b: (B, 768) sentence embeddings (f32 or bf16). Returns scalar f32 loss.

    use_bf16_matmul: cast the normalized/scaled operands to bf16 for the MXU
    (native MXU path on v5e/v6e/v7x) while norms / softmax / CE stay in f32.
    Default False preserves the f32 reference semantics.
    """
    assert emb_a.shape == emb_b.shape and emb_a.ndim == 2 and emb_a.shape[1] == EMB_DIM
    assert emb_a.dtype == emb_b.dtype
    B, D = emb_a.shape
    assert B >= 2, "labels = [1, 0, ...] are ill-defined for B < 2"

    compute_dtype = (jnp.bfloat16
                     if (use_bf16_matmul or emb_a.dtype == jnp.bfloat16)
                     else jnp.float32)
    isz_a = jnp.dtype(emb_a.dtype).itemsize
    isz_c = jnp.dtype(compute_dtype).itemsize

    # 256-aligned key axis (v6e/v7x MXU is 2x256x256; K=768=3*256 is ideal).
    bp = _round_up(B, 256)
    vmem_cap = _vmem_capacity_bytes()
    tile_m = _pick_tile_m(bp, D, isz_a, isz_c, vmem_cap)
    n_tiles = bp // tile_m

    # ---- wrapper-side key prep (one O(B*768) XLA op): normalize in f32,
    # ---- transpose to (D, Bp) so the kernel contraction is (TM,D)@(D,Bp).
    b32 = emb_b.astype(jnp.float32)
    inv_b = lax.rsqrt(jnp.maximum(jnp.sum(b32 * b32, axis=-1, keepdims=True), _EPS_SQ))
    kt = (b32 * inv_b).T.astype(compute_dtype)                       # (D, B)
    if bp != B:
        kt = jnp.pad(kt, ((0, 0), (0, bp - B)))
        a_p = jnp.pad(emb_a, ((0, bp - B), (0, 0)))
    else:
        a_p = emb_a

    # Additive column mask for padded key columns (only added when bp != B).
    col_bias = jnp.where(jnp.arange(bp) < B, 0.0, _NEG).astype(jnp.float32).reshape(1, bp)

    vmem_need = _vmem_need(bp, D, tile_m, isz_a, isz_c)
    vmem_limit = int(min(max(vmem_need, 16 << 20), vmem_cap - (8 << 20)))

    single_buffer_keys = (bp * D * isz_c) > (8 << 20)

    per_row = pl.pallas_call(
        functools.partial(_mnrl2_kernel, scale=float(scale), n_valid=B,
                          tile_m=tile_m, add_col_bias=(bp != B),
                          compute_dtype=compute_dtype),
        out_shape=jax.ShapeDtypeStruct((bp, 1), jnp.float32),
        grid=(n_tiles,),
        in_specs=[
            pl.BlockSpec((tile_m, D), lambda i: (i, 0)),          # query-row tiles
            _resident_spec((D, bp), single_buffer_keys),          # resident keys
            _resident_spec((1, bp), False),                       # column-mask bias
        ],
        out_specs=pl.BlockSpec((tile_m, 1), lambda i: (i, 0)),    # per-row losses
        compiler_params=pltpu.CompilerParams(
            # no cross-step state -> safe to shard the row axis across TCs (v7x)
            dimension_semantics=("parallel",),
            vmem_limit_bytes=vmem_limit,
        ),
    )(a_p, kt, col_bias)

    # CrossEntropyLoss "mean" reduction over the B valid rows (padded rows are 0).
    return jnp.sum(per_row) * (1.0 / B)


def _reference_loss(emb_a, emb_b, scale=20.0):
    """Pure-JAX reference mirroring the PyTorch module."""
    a = emb_a.astype(jnp.float32)
    b = emb_b.astype(jnp.float32)
    a_n = a / jnp.maximum(jnp.linalg.norm(a, axis=-1, keepdims=True), 1e-12)
    b_n = b / jnp.maximum(jnp.linalg.norm(b, axis=-1, keepdims=True), 1e-12)
    scores = scale * (a_n @ b_n.T)
    B = scores.shape[0]
    labels = jnp.where(jnp.arange(B) == 0, 1, 0)
    logp = jax.nn.log_softmax(scores, axis=-1)
    return -jnp.mean(logp[jnp.arange(B), labels])


if __name__ == "__main__":
    keys = jax.random.split(jax.random.PRNGKey(0), 4)
    fwd = jax.jit(code_mnrl2_loss, static_argnames=("scale", "use_bf16_matmul"))

    # Small batch (pads to a single 256-aligned tile).
    B = 8
    emb_a = jax.random.normal(keys[0], (B, EMB_DIM), dtype=jnp.float32)
    emb_b = jax.random.normal(keys[1], (B, EMB_DIM), dtype=jnp.float32)
    loss = jax.block_until_ready(fwd(emb_a, emb_b))
    ref = _reference_loss(emb_a, emb_b)
    assert jnp.allclose(loss, ref, atol=1e-3, rtol=1e-3), (loss, ref)

    # bf16 MXU path for f32 inputs (flag), looser tolerance.
    loss_fast = jax.block_until_ready(fwd(emb_a, emb_b, use_bf16_matmul=True))
    assert abs(float(loss_fast) - float(ref)) < 5e-2, (loss_fast, ref)

    # Native bf16 input path.
    loss_bf16 = jax.block_until_ready(
        fwd(emb_a.astype(jnp.bfloat16), emb_b.astype(jnp.bfloat16)))
    assert abs(float(loss_bf16) - float(ref)) < 5e-2, (loss_bf16, ref)

    # Multi-tile grid path (B=600 -> padded to 768 -> TM=256, 3 row tiles).
    B2 = 600
    emb_a2 = jax.random.normal(keys[2], (B2, EMB_DIM), dtype=jnp.float32)
    emb_b2 = jax.random.normal(keys[3], (B2, EMB_DIM), dtype=jnp.float32)
    loss2 = jax.block_until_ready(fwd(emb_a2, emb_b2))
    ref2 = _reference_loss(emb_a2, emb_b2)
    assert jnp.allclose(loss2, ref2, atol=1e-3, rtol=1e-3), (loss2, ref2)

    print("KERNEL_OK")
</pallas_src>

<mosaic_0001>
module attributes {stable_mosaic.version = 11 : i64} {
  func.func @_mnrl2_kernel(%arg0: i32, %arg1: memref<256x768xf32, #tpu.memory_space<vmem>>, %arg2: memref<768x256xf32, #tpu.memory_space<vmem>>, %arg3: memref<1x256xf32, #tpu.memory_space<vmem>>, %arg4: memref<256x1xf32, #tpu.memory_space<vmem>>) attributes {dimension_semantics = [#tpu.dimension_semantics<parallel>], iteration_bounds = array<i64: 1>, scalar_prefetch = 0 : i64, scratch_operands = 0 : i64, tpu.core_type = #tpu.core_type<tc>, window_params = [{transform_indices = @transform_0, window_bounds = array<i64: 256, 768>}, {pipeline_mode = #tpu.pipeline_mode<synchronous>, transform_indices = @transform_1, window_bounds = array<i64: 768, 256>}, {pipeline_mode = #tpu.pipeline_mode<synchronous>, transform_indices = @transform_2, window_bounds = array<i64: 1, 256>}, {transform_indices = @transform_3, window_bounds = array<i64: 256, 1>}]} {
    %c0 = arith.constant 0 : index
    %c0_0 = arith.constant 0 : index
    %0 = vector.load %arg1[%c0, %c0_0] : memref<256x768xf32, #tpu.memory_space<vmem>>, vector<256x768xf32>
    %1 = arith.mulf %0, %0 : vector<256x768xf32>
    %cst = arith.constant dense<0.000000e+00> : vector<256xf32>
    %2 = vector.multi_reduction <add>, %1, %cst [1] : vector<256x768xf32> to vector<256xf32>
    %3 = vector.shape_cast %2 : vector<256xf32> to vector<256x1xf32>
    %cst_1 = arith.constant 1.000000e-24 : f32
    %4 = vector.broadcast %cst_1 : f32 to vector<256x1xf32>
    %5 = arith.maximumf %3, %4 : vector<256x1xf32>
    %6 = math.rsqrt %5 : vector<256x1xf32>
    %cst_2 = arith.constant 2.000000e+01 : f32
    %7 = vector.broadcast %cst_2 : f32 to vector<256x1xf32>
    %8 = arith.mulf %7, %6 : vector<256x1xf32>
    %9 = vector.broadcast %8 : vector<256x1xf32> to vector<256x768xf32>
    %10 = arith.mulf %0, %9 : vector<256x768xf32>
    %c0_3 = arith.constant 0 : index
    %c0_4 = arith.constant 0 : index
    %11 = vector.load %arg2[%c0_3, %c0_4] : memref<768x256xf32, #tpu.memory_space<vmem>>, vector<768x256xf32>
    %cst_5 = arith.constant dense<0.000000e+00> : vector<256x256xf32>
    %12 = tpu.matmul %10, %11, %cst_5 {dimension_numbers = #tpu.dot_dimension_numbers<[1], [0], [0], [1], [0, 0, 1, 1], [], []>} : vector<256x768xf32>, vector<768x256xf32>, vector<256x256xf32> -> vector<256x256xf32>
    %c0_6 = arith.constant 0 : index
    %c0_7 = arith.constant 0 : index
    %13 = vector.load %arg3[%c0_6, %c0_7] : memref<1x256xf32, #tpu.memory_space<vmem>>, vector<1x256xf32>
    %14 = vector.broadcast %13 : vector<1x256xf32> to vector<256x256xf32>
    %15 = arith.addf %12, %14 : vector<256x256xf32>
    %cst_8 = arith.constant dense<0xFF800000> : vector<256xf32>
    %16 = vector.multi_reduction <maximumf>, %15, %cst_8 [1] : vector<256x256xf32> to vector<256xf32>
    %17 = vector.shape_cast %16 : vector<256xf32> to vector<256x1xf32>
    %18 = vector.broadcast %17 : vector<256x1xf32> to vector<256x256xf32>
    %19 = arith.subf %15, %18 : vector<256x256xf32>
    %20 = math.exp %19 : vector<256x256xf32>
    %cst_9 = arith.constant dense<0.000000e+00> : vector<256xf32>
    %21 = vector.multi_reduction <add>, %20, %cst_9 [1] : vector<256x256xf32> to vector<256xf32>
    %22 = vector.shape_cast %21 : vector<256xf32> to vector<256x1xf32>
    %23 = math.log %22 : vector<256x1xf32>
    %24 = arith.addf %17, %23 : vector<256x1xf32>
    %25 = vector.extract_strided_slice %15 {offsets = [0, 0], sizes = [256, 1], strides = [1, 1]} : vector<256x256xf32> to vector<256x1xf32>
    %26 = vector.extract_strided_slice %15 {offsets = [0, 1], sizes = [256, 1], strides = [1, 1]} : vector<256x256xf32> to vector<256x1xf32>
    %c256_i32 = arith.constant 256 : i32
    %27 = arith.muli %arg0, %c256_i32 : i32
    %28 = tpu.iota {dimensions = array<i32: 0>} : vector<256x1xi32>
    %29 = vector.broadcast %27 : i32 to vector<256x1xi32>
    %30 = arith.addi %29, %28 : vector<256x1xi32>
    %c0_i32 = arith.constant 0 : i32
    %31 = vector.broadcast %c0_i32 : i32 to vector<256x1xi32>
    %32 = arith.cmpi eq, %30, %31 : vector<256x1xi32>
    %33 = arith.select %32, %26, %25 : vector<256x1xi1>, vector<256x1xf32>
    %c8_i32 = arith.constant 8 : i32
    %34 = vector.broadcast %c8_i32 : i32 to vector<256x1xi32>
    %35 = arith.cmpi slt, %30, %34 : vector<256x1xi32>
    %36 = arith.subf %24, %33 : vector<256x1xf32>
    %cst_10 = arith.constant 0.000000e+00 : f32
    %37 = vector.broadcast %cst_10 : f32 to vector<256x1xf32>
    %38 = arith.select %35, %36, %37 : vector<256x1xi1>, vector<256x1xf32>
    %c0_11 = arith.constant 0 : index
    %c0_12 = arith.constant 0 : index
    %39 = vector.load %arg4[%c0_11, %c0_12] : memref<256x1xf32, #tpu.memory_space<vmem>>, vector<256x1xf32>
    tpu.vector_store %arg4[%c0_11, %c0_12], %38 {strides = array<i32>} : memref<256x1xf32, #tpu.memory_space<vmem>>, vector<256x1xf32>,
    return
  }
  func.func @transform_0(%arg0: i32) -> (i32, i32) {
    %c0_i32 = arith.constant 0 : i32
    %c0_i32_0 = arith.constant 0 : i32
    return %arg0, %c0_i32 : i32, i32
  }
  func.func @transform_1(%arg0: i32) -> (i32, i32) {
    %c0_i32 = arith.constant 0 : i32
    %c0_i32_0 = arith.constant 0 : i32
    %c0_i32_1 = arith.constant 0 : i32
    return %c0_i32, %c0_i32_0 : i32, i32
  }
  func.func @transform_2(%arg0: i32) -> (i32, i32) {
    %c0_i32 = arith.constant 0 : i32
    %c0_i32_0 = arith.constant 0 : i32
    %c0_i32_1 = arith.constant 0 : i32
    return %c0_i32, %c0_i32_0 : i32, i32
  }
  func.func @transform_3(%arg0: i32) -> (i32, i32) {
    %c0_i32 = arith.constant 0 : i32
    %c0_i32_0 = arith.constant 0 : i32
    return %arg0, %c0_i32 : i32, i32
  }
}

</mosaic_0001>

<bundles_post_ra>
// kernel: code_mnrl2_loss.1
= control target key start
LH: loop header
LB: loop body
LE: loop exit
PB: predicated region body
PF: predicated region fallthrough
CT: control target
= control target key end

     0   :  { %s3291_s22 = smov 127   ;;  %vm2848_vm0 = vcmask 7168   ;;  %s5509_s0 = inlined_call_operand.vmem [shape: f32[256,768], index: 0, kind: input, shape index: {}]   ;;  %s5510_s1 = inlined_call_operand.vmem [shape: f32[768,256], index: 1, kind: input, shape index: {}]   ;;  %s5511_s2 = inlined_call_operand.vmem [shape: f32[1,256], index: 2, kind: input, shape index: {}]   ;;  %s5512_s3 = inlined_call_operand.vmem [shape: f32[256,1], index: 3, kind: output, shape index: {}]  }
   0x1   :  { %v110_v0 = vld [vmem:[%s5509_s0 + $0x300] sm:$0xff]  ;;  %v111_v1 = vld [vmem:[%s5509_s0 + $0x308] sm:$0xff]  ;;  %v112_v2 = vld [vmem:[%s5509_s0 + $0x310] sm:$0xff] }
   0x2   :  { %v113_v3 = vld [vmem:[%s5509_s0 + $0x318] sm:$0xff]  ;;  %v114_v4 = vld [vmem:[%s5509_s0 + $0x320] sm:$0xff]  ;;  %v115_v5 = vld [vmem:[%s5509_s0 + $0x328] sm:$0xff]  ;;  %v302_v6 = vmul.f32 %v110_v0, %v110_v0  ;;  %v303_v7 = vmul.f32 %v111_v1, %v111_v1  ;;  %v304_v8 = vmul.f32 %v112_v2, %v112_v2 }
   0x3   :  { %v305_v9 = vmul.f32 %v113_v3, %v113_v3  ;;  %v116_v10 = vld [vmem:[%s5509_s0 + $0x330] sm:$0xff]  ;;  %v117_v11 = vld [vmem:[%s5509_s0 + $0x338] sm:$0xff]  ;;  %v118_v12 = vld [vmem:[%s5509_s0 + $0x340] sm:$0xff]  ;;  %v306_v20 = vmul.f32 %v114_v4, %v114_v4  ;;  %v307_v21 = vmul.f32 %v115_v5, %v115_v5 }
   0x4   :  { %v510_v13 = vadd.f32 %v303_v7, %v302_v6  ;;  %v119_v14 = vld [vmem:[%s5509_s0 + $0x348] sm:$0xff]  ;;  %v120_v15 = vld [vmem:[%s5509_s0 + $0x350] sm:$0xff]  ;;  %v121_v16 = vld [vmem:[%s5509_s0 + $0x358] sm:$0xff]  ;;  %v308_v17 = vmul.f32 %v116_v10, %v116_v10  ;;  %v309_v18 = vmul.f32 %v117_v11, %v117_v11  ;;  %v310_v19 = vmul.f32 %v118_v12, %v118_v12 }
   0x5   :  { %v311_v22 = vmul.f32 %v119_v14, %v119_v14  ;;  %v14_v23 = vld [vmem:[%s5509_s0] sm:$0xff]  ;;  %v15_v24 = vld [vmem:[%s5509_s0 + $0x8] sm:$0xff]  ;;  %v16_v25 = vld [vmem:[%s5509_s0 + $0x10] sm:$0xff]  ;;  %v312_v33 = vmul.f32 %v120_v15, %v120_v15  ;;  %v313_v34 = vmul.f32 %v121_v16, %v121_v16 }
   0x6   :  { %v511_v26 = vadd.f32 %v510_v13, %v304_v8  ;;  %v517_v27 = vadd.f32 %v309_v18, %v308_v17  ;;  %v17_v28 = vld [vmem:[%s5509_s0 + $0x18] sm:$0xff]  ;;  %v18_v29 = vld [vmem:[%s5509_s0 + $0x20] sm:$0xff]  ;;  %v19_v30 = vld [vmem:[%s5509_s0 + $0x28] sm:$0xff]  ;;  %v206_v31 = vmul.f32 %v14_v23, %v14_v23  ;;  %v207_v32 = vmul.f32 %v15_v24, %v15_v24 }
   0x7   :  { %v208_v35 = vmul.f32 %v16_v25, %v16_v25  ;;  %v209_v36 = vmul.f32 %v17_v28, %v17_v28  ;;  %v20_v37 = vld [vmem:[%s5509_s0 + $0x30] sm:$0xff]  ;;  %v21_v38 = vld [vmem:[%s5509_s0 + $0x38] sm:$0xff]  ;;  %v22_v39 = vld [vmem:[%s5509_s0 + $0x40] sm:$0xff]  ;;  %v210_v46 = vmul.f32 %v18_v29, %v18_v29  ;;  %v211_v47 = vmul.f32 %v19_v30, %v19_v30 }
   0x8   :  { %v512_v40 = vadd.f32 %v511_v26, %v305_v9  ;;  %v518_v41 = vadd.f32 %v517_v27, %v310_v19  ;;  %v398_v42 = vadd.f32 %v207_v32, %v206_v31  ;;  %v23_v43 = vld [vmem:[%s5509_s0 + $0x48] sm:$0xff]  ;;  %v24_v44 = vld [vmem:[%s5509_s0 + $0x50] sm:$0xff]  ;;  %v212_v45 = vmul.f32 %v20_v37, %v20_v37  ;;  %v122_v50 = vld [vmem:[%s5509_s0 + $0x360] sm:$0xff] }
   0x9   :  { %v213_v48 = vmul.f32 %v21_v38, %v21_v38  ;;  %v214_v49 = vmul.f32 %v22_v39, %v22_v39  ;;  %v123_v51 = vld [vmem:[%s5509_s0 + $0x368] sm:$0xff]  ;;  %v124_v52 = vld [vmem:[%s5509_s0 + $0x370] sm:$0xff]  ;;  %v25_v56 = vld [vmem:[%s5509_s0 + $0x58] sm:$0xff]  ;;  %v215_v57 = vmul.f32 %v23_v43, %v23_v43  ;;  %v314_v60 = vmul.f32 %v122_v50, %v122_v50 }
   0xa   :  { %v513_v53 = vadd.f32 %v512_v40, %v306_v20  ;;  %v519_v54 = vadd.f32 %v518_v41, %v311_v22  ;;  %v399_v55 = vadd.f32 %v398_v42, %v208_v35  ;;  %v125_v58 = vld [vmem:[%s5509_s0 + $0x378] sm:$0xff]  ;;  %v315_v61 = vmul.f32 %v123_v51, %v123_v51  ;;  %v26_v63 = vld [vmem:[%s5509_s0 + $0x60] sm:$0xff]  ;;  %v27_v0 = vld [vmem:[%s5509_s0 + $0x68] sm:$0xff] }
   0xb   :  { %v405_v59 = vadd.f32 %v213_v48, %v212_v45  ;;  %v316_v62 = vmul.f32 %v124_v52, %v124_v52  ;;  %v216_v4 = vmul.f32 %v24_v44, %v24_v44  ;;  %v126_v5 = vld [vmem:[%s5509_s0 + $0x380] sm:$0xff]  ;;  %v28_v6 = vld [vmem:[%s5509_s0 + $0x70] sm:$0xff]  ;;  %v217_v7 = vmul.f32 %v25_v56, %v25_v56  ;;  %v127_v9 = vld [vmem:[%s5509_s0 + $0x388] sm:$0xff] }
   0xc   :  { %v514_v1 = vadd.f32 %v513_v53, %v307_v21  ;;  %v520_v2 = vadd.f32 %v519_v54, %v312_v33  ;;  %v400_v3 = vadd.f32 %v399_v55, %v209_v36  ;;  %v317_v10 = vmul.f32 %v125_v58, %v125_v58  ;;  %v29_v12 = vld [vmem:[%s5509_s0 + $0x78] sm:$0xff]  ;;  %v128_v17 = vld [vmem:[%s5509_s0 + $0x390] sm:$0xff]  ;;  %v30_v22 = vld [vmem:[%s5509_s0 + $0x80] sm:$0xff] }
   0xd   :  { %v406_v8 = vadd.f32 %v405_v59, %v214_v49  ;;  %v524_v11 = vadd.f32 %v315_v61, %v314_v60  ;;  %v218_v15 = vmul.f32 %v26_v63, %v26_v63  ;;  %v219_v16 = vmul.f32 %v27_v0, %v27_v0  ;;  %v129_v18 = vld [vmem:[%s5509_s0 + $0x398] sm:$0xff]  ;;  %v31_v23 = vld [vmem:[%s5509_s0 + $0x88] sm:$0xff]  ;;  %v130_v25 = vld [vmem:[%s5509_s0 + $0x3a0] sm:$0xff] }
   0xe   :  { %515 = vadd.xlane.f32.xlu0 %v514_v1  ;;  %v521_v13 = vadd.f32 %v520_v2, %v313_v34  ;;  %v401_v14 = vadd.f32 %v400_v3, %v210_v46  ;;  %v318_v20 = vmul.f32 %v126_v5, %v126_v5  ;;  %v220_v24 = vmul.f32 %v28_v6, %v28_v6  ;;  %v131_v30 = vld [vmem:[%s5509_s0 + $0x3a8] sm:$0xff]  ;;  %v32_v35 = vld [vmem:[%s5509_s0 + $0x90] sm:$0xff]  ;;  %v33_v36 = vld [vmem:[%s5509_s0 + $0x98] sm:$0xff] }
   0xf   :  { %v407_v19 = vadd.f32 %v406_v8, %v215_v57  ;;  %v525_v21 = vadd.f32 %v524_v11, %v316_v62  ;;  %v319_v27 = vmul.f32 %v127_v9, %v127_v9  ;;  %v221_v28 = vmul.f32 %v29_v12, %v29_v12  ;;  %v34_v37 = vld [vmem:[%s5509_s0 + $0xa0] sm:$0xff]  ;;  %v132_v41 = vld [vmem:[%s5509_s0 + $0x3b0] sm:$0xff]  ;;  %v133_v42 = vld [vmem:[%s5509_s0 + $0x3b8] sm:$0xff] }
  0x10   :  { %522 = vadd.xlane.f32.xlu1 %v521_v13  ;;  %v402_v26 = vadd.f32 %v401_v14, %v211_v47  ;;  %v412_v29 = vadd.f32 %v219_v16, %v218_v15  ;;  %v320_v33 = vmul.f32 %v128_v17, %v128_v17  ;;  %v321_v34 = vmul.f32 %v129_v18, %v129_v18  ;;  %v35_v48 = vld [vmem:[%s5509_s0 + $0xa8] sm:$0xff]  ;;  %v134_v49 = vld [vmem:[%s5509_s0 + $0x3c0] sm:$0xff]  ;;  %v36_v51 = vld [vmem:[%s5509_s0 + $0xb0] sm:$0xff] }
  0x11   :  { %v408_v31 = vadd.f32 %v407_v19, %v216_v4  ;;  %v526_v32 = vadd.f32 %v525_v21, %v317_v10  ;;  %v222_v38 = vmul.f32 %v30_v22, %v30_v22  ;;  %v223_v39 = vmul.f32 %v31_v23, %v31_v23  ;;  %v135_v55 = vld [vmem:[%s5509_s0 + $0x3c8] sm:$0xff]  ;;  %v136_v56 = vld [vmem:[%s5509_s0 + $0x3d0] sm:$0xff]  ;;  %v37_v61 = vld [vmem:[%s5509_s0 + $0xb8] sm:$0xff] }
  0x12   :  { %403 = vadd.xlane.f32.xlu0 %v402_v26  ;;  %v413_v40 = vadd.f32 %v412_v29, %v220_v24  ;;  %v322_v43 = vmul.f32 %v130_v25, %v130_v25  ;;  %v323_v46 = vmul.f32 %v131_v30, %v131_v30  ;;  %v531_v47 = vadd.f32 %v321_v34, %v320_v33  ;;  %v137_v62 = vld [vmem:[%s5509_s0 + $0x3d8] sm:$0xff]  ;;  %v38_v3 = vld [vmem:[%s5509_s0 + $0xc0] sm:$0xff]  ;;  %v39_v4 = vld [vmem:[%s5509_s0 + $0xc8] sm:$0xff] }
  0x13   :  { %v409_v44 = vadd.f32 %v408_v31, %v217_v7  ;;  %v527_v45 = vadd.f32 %v526_v32, %v318_v20  ;;  %v224_v52 = vmul.f32 %v32_v35, %v32_v35  ;;  %v225_v53 = vmul.f32 %v33_v36, %v33_v36  ;;  %v138_v7 = vld [vmem:[%s5509_s0 + $0x3e0] sm:$0xff]  ;;  %v139_v8 = vld [vmem:[%s5509_s0 + $0x3e8] sm:$0xff]  ;;  %v40_v11 = vld [vmem:[%s5509_s0 + $0xd0] sm:$0xff] }
  0x14   :  { %v414_v50 = vadd.f32 %v413_v40, %v221_v28  ;;  %v226_v54 = vmul.f32 %v34_v37, %v34_v37  ;;  %v324_v58 = vmul.f32 %v132_v41, %v132_v41  ;;  %v325_v59 = vmul.f32 %v133_v42, %v133_v42  ;;  %v41_v16 = vld [vmem:[%s5509_s0 + $0xd8] sm:$0xff]  ;;  %v140_v21 = vld [vmem:[%s5509_s0 + $0x3f0] sm:$0xff]  ;;  %v142_v23 = vld [vmem:[%s5509_s0 + $0x400] sm:$0xff] }
  0x15   :  { %410 = vadd.xlane.f32.xlu1 %v409_v44  ;;  %v528_v57 = vadd.f32 %v527_v45, %v319_v27  ;;  %v532_v60 = vadd.f32 %v531_v47, %v322_v43  ;;  %v227_v0 = vmul.f32 %v35_v48, %v35_v48  ;;  %v419_v1 = vadd.f32 %v225_v53, %v224_v52  ;;  %v141_v22 = vld [vmem:[%s5509_s0 + $0x3f8] sm:$0xff]  ;;  %v42_v27 = vld [vmem:[%s5509_s0 + $0xe0] sm:$0xff]  ;;  %v43_v28 = vld [vmem:[%s5509_s0 + $0xe8] sm:$0xff] }
  0x16   :  { %v415_v63 = vadd.f32 %v414_v50, %v222_v38  ;;  %v326_v2 = vmul.f32 %v134_v49, %v134_v49  ;;  %v228_v6 = vmul.f32 %v36_v51, %v36_v51  ;;  %v327_v9 = vmul.f32 %v135_v55, %v135_v55  ;;  %v143_v34 = vld [vmem:[%s5509_s0 + $0x408] sm:$0xff]  ;;  %v44_v35 = vld [vmem:[%s5509_s0 + $0xf0] sm:$0xff]  ;;  %v45_v40 = vld [vmem:[%s5509_s0 + $0xf8] sm:$0xff] }
  0x17   :  { %529 = vadd.xlane.f32.xlu0 %v528_v57  ;;  %v533_v5 = vadd.f32 %v532_v60, %v323_v46  ;;  %v328_v10 = vmul.f32 %v136_v56, %v136_v56  ;;  %v229_v13 = vmul.f32 %v37_v61, %v37_v61  ;;  %v420_v14 = vadd.f32 %v419_v1, %v226_v54  ;;  %v46_v41 = vld [vmem:[%s5509_s0 + $0x100] sm:$0xff]  ;;  %v144_v46 = vld [vmem:[%s5509_s0 + $0x410] sm:$0xff]  ;;  %v145_v47 = vld [vmem:[%s5509_s0 + $0x418] sm:$0xff] }
  0x18   :  { %v416_v12 = vadd.f32 %v415_v63, %v223_v39  ;;  %v329_v15 = vmul.f32 %v137_v62, %v137_v62  ;;  %v538_v18 = vadd.f32 %v327_v9, %v326_v2  ;;  %v230_v19 = vmul.f32 %v38_v3, %v38_v3  ;;  %v47_v48 = vld [vmem:[%s5509_s0 + $0x108] sm:$0xff]  ;;  %v146_v53 = vld [vmem:[%s5509_s0 + $0x420] sm:$0xff]  ;;  %v48_v56 = vld [vmem:[%s5509_s0 + $0x110] sm:$0xff] }
  0x19   :  { %v534_v17 = vadd.f32 %v533_v5, %v324_v58  ;;  %v231_v20 = vmul.f32 %v39_v4, %v39_v4  ;;  %v421_v24 = vadd.f32 %v420_v14, %v227_v0  ;;  %v330_v25 = vmul.f32 %v138_v7, %v138_v7  ;;  %v148_v60 = vld [vmem:[%s5509_s0 + $0x430] sm:$0xff]  ;;  %v49_v0 = vld [vmem:[%s5509_s0 + $0x118] sm:$0xff]  ;;  %v50_v7 = vld [vmem:[%s5509_s0 + $0x120] sm:$0xff] }
  0x1a   :  { %417 = vadd.xlane.f32.xlu1 %v416_v12  ;;  %v331_v26 = vmul.f32 %v139_v8, %v139_v8  ;;  %v232_v29 = vmul.f32 %v40_v11, %v40_v11  ;;  %v539_v31 = vadd.f32 %v538_v18, %v328_v10  ;;  %v233_v32 = vmul.f32 %v41_v16, %v41_v16  ;;  %v149_v2 = vld [vmem:[%s5509_s0 + $0x438] sm:$0xff]  ;;  %v51_v8 = vld [vmem:[%s5509_s0 + $0x128] sm:$0xff]  ;;  %v150_v11 = vld [vmem:[%s5509_s0 + $0x440] sm:$0xff] }
  0x1b   :  { %v535_v30 = vadd.f32 %v534_v17, %v325_v59  ;;  %v426_v33 = vadd.f32 %v231_v20, %v230_v19  ;;  %v422_v36 = vadd.f32 %v421_v24, %v228_v6  ;;  %v332_v37 = vmul.f32 %v140_v21, %v140_v21  ;;  %v147_v59 = vld [vmem:[%s5509_s0 + $0x428] sm:$0xff]  ;;  %v53_v20 = vld [vmem:[%s5509_s0 + $0x138] sm:$0xff] }
  0x1c   :  { %v333_v38 = vmul.f32 %v141_v22, %v141_v22  ;;  %v334_v39 = vmul.f32 %v142_v23, %v142_v23  ;;  %v540_v42 = vadd.f32 %v539_v31, %v329_v15  ;;  %v234_v43 = vmul.f32 %v42_v27, %v42_v27  ;;  %v151_v12 = vld [vmem:[%s5509_s0 + $0x448] sm:$0xff]  ;;  %v52_v15 = vld [vmem:[%s5509_s0 + $0x130] sm:$0xff]  ;;  %v154_v27 = vld [vmem:[%s5509_s0 + $0x460] sm:$0xff] }
  0x1d   :  { %536 = vadd.xlane.f32.xlu0 %v535_v30  ;;  %v235_v44 = vmul.f32 %v43_v28, %v43_v28  ;;  %v427_v45 = vadd.f32 %v426_v33, %v232_v29  ;;  %v423_v49 = vadd.f32 %v422_v36, %v229_v13  ;;  %v335_v50 = vmul.f32 %v143_v34, %v143_v34  ;;  %v54_v31 = vld [vmem:[%s5509_s0 + $0x140] sm:$0xff] }
  0x1e   :  { %v545_v51 = vadd.f32 %v333_v38, %v332_v37  ;;  %v236_v52 = vmul.f32 %v44_v35, %v44_v35  ;;  %v541_v54 = vadd.f32 %v540_v42, %v330_v25  ;;  %v237_v57 = vmul.f32 %v45_v40, %v45_v40  ;;  %v152_v25 = vld [vmem:[%s5509_s0 + $0x450] sm:$0xff]  ;;  %v155_v38 = vld [vmem:[%s5509_s0 + $0x468] sm:$0xff] }
  0x1f   :  { %v428_v55 = vadd.f32 %v427_v45, %v233_v32  ;;  %v238_v58 = vmul.f32 %v46_v41, %v46_v41  ;;  %424 = vadd.xlane.f32.xlu1 %v423_v49  ;;  %v336_v61 = vmul.f32 %v144_v46, %v144_v46  ;;  %v337_v62 = vmul.f32 %v145_v47, %v145_v47  ;;  %v55_v32 = vld [vmem:[%s5509_s0 + $0x148] sm:$0xff]  ;;  %v58_v45 = vld [vmem:[%s5509_s0 + $0x160] sm:$0xff] }
  0x20   :  { %v546_v63 = vadd.f32 %v545_v51, %v334_v39  ;;  %v239_v1 = vmul.f32 %v47_v48, %v47_v48  ;;  %v542_v3 = vadd.f32 %v541_v54, %v331_v26  ;;  %v433_v5 = vadd.f32 %v237_v57, %v236_v52  ;;  %v153_v26 = vld [vmem:[%s5509_s0 + $0x458] sm:$0xff]  ;;  %v56_v39 = vld [vmem:[%s5509_s0 + $0x150] sm:$0xff]  ;;  %v59_v52 = vld [vmem:[%s5509_s0 + $0x168] sm:$0xff] }
  0x21   :  { %v429_v4 = vadd.f32 %v428_v55, %v234_v43  ;;  %v338_v6 = vmul.f32 %v146_v53, %v146_v53  ;;  %v240_v10 = vmul.f32 %v48_v56, %v48_v56  ;;  %v339_v13 = vmul.f32 %v147_v59, %v147_v59  ;;  %v157_v51 = vld [vmem:[%s5509_s0 + $0x478] sm:$0xff]  ;;  %v158_v57 = vld [vmem:[%s5509_s0 + $0x480] sm:$0xff] }
  0x22   :  { %v547_v9 = vadd.f32 %v546_v63, %v335_v50  ;;  %v340_v14 = vmul.f32 %v148_v60, %v148_v60  ;;  %543 = vadd.xlane.f32.xlu0 %v542_v3  ;;  %v241_v17 = vmul.f32 %v49_v0, %v49_v0  ;;  %v434_v18 = vadd.f32 %v433_v5, %v238_v58  ;;  %v156_v50 = vld [vmem:[%s5509_s0 + $0x470] sm:$0xff]  ;;  %v159_v63 = vld [vmem:[%s5509_s0 + $0x488] sm:$0xff] }
  0x23   :  { %v430_v16 = vadd.f32 %v429_v4, %v235_v44  ;;  %v341_v19 = vmul.f32 %v149_v2, %v149_v2  ;;  %v552_v22 = vadd.f32 %v339_v13, %v338_v6  ;;  %v242_v23 = vmul.f32 %v50_v7, %v50_v7  ;;  %v57_v44 = vld [vmem:[%s5509_s0 + $0x158] sm:$0xff]  ;;  %v60_v60 = vld [vmem:[%s5509_s0 + $0x170] sm:$0xff] }
  0x24   :  { %v548_v21 = vadd.f32 %v547_v9, %v336_v61  ;;  %v243_v24 = vmul.f32 %v51_v8, %v51_v8  ;;  %v435_v28 = vadd.f32 %v434_v18, %v239_v1  ;;  %v342_v29 = vmul.f32 %v150_v11, %v150_v11  ;;  %v160_v0 = vld [vmem:[%s5509_s0 + $0x490] sm:$0xff]  ;;  %v61_v4 = vld [vmem:[%s5509_s0 + $0x178] sm:$0xff]  ;;  %v62_v11 = vld [vmem:[%s5509_s0 + $0x180] sm:$0xff] }
  0x25   :  { %431 = vadd.xlane.f32.xlu1 %v430_v16  ;;  %v343_v30 = vmul.f32 %v151_v12, %v151_v12  ;;  %v244_v33 = vmul.f32 %v52_v15, %v52_v15  ;;  %v553_v35 = vadd.f32 %v552_v22, %v340_v14  ;;  %v245_v36 = vmul.f32 %v53_v20, %v53_v20  ;;  %v161_v6 = vld [vmem:[%s5509_s0 + $0x498] sm:$0xff]  ;;  %v63_v12 = vld [vmem:[%s5509_s0 + $0x188] sm:$0xff]  ;;  %v162_v15 = vld [vmem:[%s5509_s0 + $0x4a0] sm:$0xff] }
  0x26   :  { %v549_v34 = vadd.f32 %v548_v21, %v337_v62  ;;  %v440_v37 = vadd.f32 %v243_v24, %v242_v23  ;;  %v436_v40 = vadd.f32 %v435_v28, %v240_v10  ;;  %v344_v41 = vmul.f32 %v152_v25, %v152_v25  ;;  %v163_v16 = vld [vmem:[%s5509_s0 + $0x4a8] sm:$0xff]  ;;  %v65_v24 = vld [vmem:[%s5509_s0 + $0x198] sm:$0xff] }
  0x27   :  { %v345_v42 = vmul.f32 %v153_v26, %v153_v26  ;;  %v346_v43 = vmul.f32 %v154_v27, %v154_v27  ;;  %v554_v46 = vadd.f32 %v553_v35, %v341_v19  ;;  %v246_v47 = vmul.f32 %v54_v31, %v54_v31  ;;  %v64_v19 = vld [vmem:[%s5509_s0 + $0x190] sm:$0xff]  ;;  %v166_v31 = vld [vmem:[%s5509_s0 + $0x4c0] sm:$0xff] }
  0x28   :  { %550 = vadd.xlane.f32.xlu0 %v549_v34  ;;  %v247_v48 = vmul.f32 %v55_v32, %v55_v32  ;;  %v441_v49 = vadd.f32 %v440_v37, %v244_v33  ;;  %v437_v53 = vadd.f32 %v436_v40, %v241_v17  ;;  %v347_v54 = vmul.f32 %v155_v38, %v155_v38  ;;  %v66_v35 = vld [vmem:[%s5509_s0 + $0x1a0] sm:$0xff] }
  0x29   :  { %v559_v55 = vadd.f32 %v345_v42, %v344_v41  ;;  %v248_v56 = vmul.f32 %v56_v39, %v56_v39  ;;  %v555_v58 = vadd.f32 %v554_v46, %v342_v29  ;;  %v249_v61 = vmul.f32 %v57_v44, %v57_v44  ;;  %v164_v29 = vld [vmem:[%s5509_s0 + $0x4b0] sm:$0xff]  ;;  %v167_v42 = vld [vmem:[%s5509_s0 + $0x4c8] sm:$0xff] }
  0x2a   :  { %v442_v59 = vadd.f32 %v441_v49, %v245_v36  ;;  %v250_v62 = vmul.f32 %v58_v45, %v58_v45  ;;  %438 = vadd.xlane.f32.xlu1 %v437_v53  ;;  %v348_v1 = vmul.f32 %v156_v50, %v156_v50  ;;  %v349_v2 = vmul.f32 %v157_v51, %v157_v51  ;;  %v67_v36 = vld [vmem:[%s5509_s0 + $0x1a8] sm:$0xff]  ;;  %v70_v49 = vld [vmem:[%s5509_s0 + $0x1c0] sm:$0xff] }
  0x2b   :  { %v560_v3 = vadd.f32 %v559_v55, %v346_v43  ;;  %v251_v5 = vmul.f32 %v59_v52, %v59_v52  ;;  %v556_v7 = vadd.f32 %v555_v58, %v343_v30  ;;  %v447_v9 = vadd.f32 %v249_v61, %v248_v56  ;;  %v165_v30 = vld [vmem:[%s5509_s0 + $0x4b8] sm:$0xff]  ;;  %v68_v43 = vld [vmem:[%s5509_s0 + $0x1b0] sm:$0xff]  ;;  %v71_v56 = vld [vmem:[%s5509_s0 + $0x1c8] sm:$0xff] }
  0x2c   :  { %v443_v8 = vadd.f32 %v442_v59, %v246_v47  ;;  %v350_v10 = vmul.f32 %v158_v57, %v158_v57  ;;  %v252_v14 = vmul.f32 %v60_v60, %v60_v60  ;;  %v351_v17 = vmul.f32 %v159_v63, %v159_v63  ;;  %v169_v55 = vld [vmem:[%s5509_s0 + $0x4d8] sm:$0xff]  ;;  %v170_v61 = vld [vmem:[%s5509_s0 + $0x4e0] sm:$0xff] }
  0x2d   :  { %v561_v13 = vadd.f32 %v560_v3, %v347_v54  ;;  %v352_v18 = vmul.f32 %v160_v0, %v160_v0  ;;  %557 = vadd.xlane.f32.xlu0 %v556_v7  ;;  %v253_v21 = vmul.f32 %v61_v4, %v61_v4  ;;  %v448_v22 = vadd.f32 %v447_v9, %v250_v62  ;;  %v168_v54 = vld [vmem:[%s5509_s0 + $0x4d0] sm:$0xff]  ;;  %v171_v3 = vld [vmem:[%s5509_s0 + $0x4e8] sm:$0xff] }
  0x2e   :  { %v444_v20 = vadd.f32 %v443_v8, %v247_v48  ;;  %v353_v23 = vmul.f32 %v161_v6, %v161_v6  ;;  %v566_v26 = vadd.f32 %v351_v17, %v350_v10  ;;  %v254_v27 = vmul.f32 %v62_v11, %v62_v11  ;;  %v69_v48 = vld [vmem:[%s5509_s0 + $0x1b8] sm:$0xff]  ;;  %v72_v0 = vld [vmem:[%s5509_s0 + $0x1d0] sm:$0xff] }
  0x2f   :  { %v562_v25 = vadd.f32 %v561_v13, %v348_v1  ;;  %v255_v28 = vmul.f32 %v63_v12, %v63_v12  ;;  %v449_v32 = vadd.f32 %v448_v22, %v251_v5  ;;  %v354_v33 = vmul.f32 %v162_v15, %v162_v15  ;;  %v172_v4 = vld [vmem:[%s5509_s0 + $0x4f0] sm:$0xff]  ;;  %v73_v8 = vld [vmem:[%s5509_s0 + $0x1d8] sm:$0xff]  ;;  %v74_v15 = vld [vmem:[%s5509_s0 + $0x1e0] sm:$0xff] }
  0x30   :  { %445 = vadd.xlane.f32.xlu1 %v444_v20  ;;  %v355_v34 = vmul.f32 %v163_v16, %v163_v16  ;;  %v256_v37 = vmul.f32 %v64_v19, %v64_v19  ;;  %v567_v39 = vadd.f32 %v566_v26, %v352_v18  ;;  %v257_v40 = vmul.f32 %v65_v24, %v65_v24  ;;  %v173_v10 = vld [vmem:[%s5509_s0 + $0x4f8] sm:$0xff]  ;;  %v75_v16 = vld [vmem:[%s5509_s0 + $0x1e8] sm:$0xff]  ;;  %v174_v19 = vld [vmem:[%s5509_s0 + $0x500] sm:$0xff] }
  0x31   :  { %v563_v38 = vadd.f32 %v562_v25, %v349_v2  ;;  %v454_v41 = vadd.f32 %v255_v28, %v254_v27  ;;  %v450_v44 = vadd.f32 %v449_v32, %v252_v14  ;;  %v356_v45 = vmul.f32 %v164_v29, %v164_v29  ;;  %v175_v20 = vld [vmem:[%s5509_s0 + $0x508] sm:$0xff]  ;;  %v77_v28 = vld [vmem:[%s5509_s0 + $0x1f8] sm:$0xff] }
  0x32   :  { %v357_v46 = vmul.f32 %v165_v30, %v165_v30  ;;  %v358_v47 = vmul.f32 %v166_v31, %v166_v31  ;;  %v568_v50 = vadd.f32 %v567_v39, %v353_v23  ;;  %v258_v51 = vmul.f32 %v66_v35, %v66_v35  ;;  %v76_v23 = vld [vmem:[%s5509_s0 + $0x1f0] sm:$0xff]  ;;  %v178_v35 = vld [vmem:[%s5509_s0 + $0x520] sm:$0xff] }
  0x33   :  { %564 = vadd.xlane.f32.xlu0 %v563_v38  ;;  %v259_v52 = vmul.f32 %v67_v36, %v67_v36  ;;  %v455_v53 = vadd.f32 %v454_v41, %v256_v37  ;;  %v451_v57 = vadd.f32 %v450_v44, %v253_v21  ;;  %v359_v58 = vmul.f32 %v167_v42, %v167_v42  ;;  %v78_v39 = vld [vmem:[%s5509_s0 + $0x200] sm:$0xff] }
  0x34   :  { %v573_v59 = vadd.f32 %v357_v46, %v356_v45  ;;  %v260_v60 = vmul.f32 %v68_v43, %v68_v43  ;;  %v569_v62 = vadd.f32 %v568_v50, %v354_v33  ;;  %v261_v1 = vmul.f32 %v69_v48, %v69_v48  ;;  %v176_v33 = vld [vmem:[%s5509_s0 + $0x510] sm:$0xff]  ;;  %v179_v46 = vld [vmem:[%s5509_s0 + $0x528] sm:$0xff] }
  0x35   :  { %v456_v63 = vadd.f32 %v455_v53, %v257_v40  ;;  %v262_v2 = vmul.f32 %v70_v49, %v70_v49  ;;  %452 = vadd.xlane.f32.xlu1 %v451_v57  ;;  %v360_v5 = vmul.f32 %v168_v54, %v168_v54  ;;  %v361_v6 = vmul.f32 %v169_v55, %v169_v55  ;;  %v79_v40 = vld [vmem:[%s5509_s0 + $0x208] sm:$0xff]  ;;  %v82_v53 = vld [vmem:[%s5509_s0 + $0x220] sm:$0xff] }
  0x36   :  { %v574_v7 = vadd.f32 %v573_v59, %v358_v47  ;;  %v263_v9 = vmul.f32 %v71_v56, %v71_v56  ;;  %v570_v11 = vadd.f32 %v569_v62, %v355_v34  ;;  %v461_v13 = vadd.f32 %v261_v1, %v260_v60  ;;  %v177_v34 = vld [vmem:[%s5509_s0 + $0x518] sm:$0xff]  ;;  %v80_v47 = vld [vmem:[%s5509_s0 + $0x210] sm:$0xff]  ;;  %v83_v60 = vld [vmem:[%s5509_s0 + $0x228] sm:$0xff] }
  0x37   :  { %v457_v12 = vadd.f32 %v456_v63, %v258_v51  ;;  %v362_v14 = vmul.f32 %v170_v61, %v170_v61  ;;  %v264_v18 = vmul.f32 %v72_v0, %v72_v0  ;;  %v363_v21 = vmul.f32 %v171_v3, %v171_v3  ;;  %v181_v59 = vld [vmem:[%s5509_s0 + $0x538] sm:$0xff]  ;;  %v84_v0 = vld [vmem:[%s5509_s0 + $0x230] sm:$0xff] }
  0x38   :  { %v575_v17 = vadd.f32 %v574_v7, %v359_v58  ;;  %v364_v22 = vmul.f32 %v172_v4, %v172_v4  ;;  %571 = vadd.xlane.f32.xlu0 %v570_v11  ;;  %v265_v25 = vmul.f32 %v73_v8, %v73_v8  ;;  %v462_v26 = vadd.f32 %v461_v13, %v262_v2  ;;  %v180_v58 = vld [vmem:[%s5509_s0 + $0x530] sm:$0xff]  ;;  %v182_v2 = vld [vmem:[%s5509_s0 + $0x540] sm:$0xff]  ;;  %v183_v8 = vld [vmem:[%s5509_s0 + $0x548] sm:$0xff] }
  0x39   :  { %v458_v24 = vadd.f32 %v457_v12, %v259_v52  ;;  %v365_v27 = vmul.f32 %v173_v10, %v173_v10  ;;  %v580_v30 = vadd.f32 %v363_v21, %v362_v14  ;;  %v266_v31 = vmul.f32 %v74_v15, %v74_v15  ;;  %v81_v52 = vld [vmem:[%s5509_s0 + $0x218] sm:$0xff]  ;;  %v86_v21 = vld [vmem:[%s5509_s0 + $0x240] sm:$0xff] }
  0x3a   :  { %v576_v29 = vadd.f32 %v575_v17, %v360_v5  ;;  %v267_v32 = vmul.f32 %v75_v16, %v75_v16  ;;  %v463_v36 = vadd.f32 %v462_v26, %v263_v9  ;;  %v366_v37 = vmul.f32 %v174_v19, %v174_v19  ;;  %v85_v5 = vld [vmem:[%s5509_s0 + $0x238] sm:$0xff]  ;;  %v184_v9 = vld [vmem:[%s5509_s0 + $0x550] sm:$0xff]  ;;  %v186_v26 = vld [vmem:[%s5509_s0 + $0x560] sm:$0xff] }
  0x3b   :  { %459 = vadd.xlane.f32.xlu1 %v458_v24  ;;  %v367_v38 = vmul.f32 %v175_v20, %v175_v20  ;;  %v268_v41 = vmul.f32 %v76_v23, %v76_v23  ;;  %v581_v43 = vadd.f32 %v580_v30, %v364_v22  ;;  %v269_v44 = vmul.f32 %v77_v28, %v77_v28  ;;  %v185_v14 = vld [vmem:[%s5509_s0 + $0x558] sm:$0xff]  ;;  %v3762_v16 = vld [vmem:[%s5510_s1 + $0xf0] sm:$0xff]  ;;  %v87_v22 = vld [vmem:[%s5509_s0 + $0x248] sm:$0xff] }
  0x3c   :  { %v577_v42 = vadd.f32 %v576_v29, %v361_v6  ;;  %v468_v45 = vadd.f32 %v267_v32, %v266_v31  ;;  %v464_v48 = vadd.f32 %v463_v36, %v264_v18  ;;  %v368_v49 = vmul.f32 %v176_v33, %v176_v33  ;;  %v941_v15 = vld [vmem:[%s5510_s1 + $0xf8] sm:$0xff]  ;;  %v3773_v23 = vld [vmem:[%s5510_s1 + $0xe8] sm:$0xff]  ;;  %v88_v30 = vld [vmem:[%s5509_s0 + $0x250] sm:$0xff] }
  0x3d   :  { %v369_v50 = vmul.f32 %v177_v34, %v177_v34  ;;  %v370_v51 = vmul.f32 %v178_v35, %v178_v35  ;;  %v582_v54 = vadd.f32 %v581_v43, %v365_v27  ;;  %v270_v55 = vmul.f32 %v78_v39, %v78_v39  ;;  %2885 = vmatprep.subr.mxu1 %v941_v15  ;;  %v187_v27 = vld [vmem:[%s5509_s0 + $0x568] sm:$0xff]  ;;  %v89_v35 = vld [vmem:[%s5509_s0 + $0x258] sm:$0xff]  ;;  %v188_v36 = vld [vmem:[%s5509_s0 + $0x570] sm:$0xff] }
  0x3e   :  { %578 = vadd.xlane.f32.xlu0 %v577_v42  ;;  %v271_v56 = vmul.f32 %v79_v40, %v79_v40  ;;  %v469_v57 = vadd.f32 %v468_v45, %v268_v41  ;;  %v465_v61 = vadd.f32 %v464_v48, %v265_v25  ;;  %v371_v62 = vmul.f32 %v179_v46, %v179_v46  ;;  %v189_v41 = vld [vmem:[%s5509_s0 + $0x578] sm:$0xff]  ;;  %v190_v42 = vld [vmem:[%s5509_s0 + $0x580] sm:$0xff]  ;;  %v91_v48 = vld [vmem:[%s5509_s0 + $0x268] sm:$0xff] }
  0x3f   :  { %v587_v63 = vadd.f32 %v369_v50, %v368_v49  ;;  %v272_v1 = vmul.f32 %v80_v47, %v80_v47  ;;  %v583_v3 = vadd.f32 %v582_v54, %v366_v37  ;;  %v273_v6 = vmul.f32 %v81_v52, %v81_v52  ;;  %2917 = vmatpush1.msra.mxu1 %v3762_v16  ;;  %v3801_v43 = vld [vmem:[%s5510_s1 + $0xe0] sm:$0xff]  ;;  %v191_v54 = vld [vmem:[%s5509_s0 + $0x588] sm:$0xff] }
  0x40   :  { %v470_v4 = vadd.f32 %v469_v57, %v269_v44  ;;  %v274_v7 = vmul.f32 %v82_v53, %v82_v53  ;;  %466 = vadd.xlane.f32.xlu1 %v465_v61  ;;  %v372_v10 = vmul.f32 %v180_v58, %v180_v58  ;;  %v373_v11 = vmul.f32 %v181_v59, %v181_v59  ;;  %v90_v47 = vld [vmem:[%s5509_s0 + $0x260] sm:$0xff] }
  0x41   :  { %v588_v12 = vadd.f32 %v587_v63, %v370_v51  ;;  %v275_v13 = vmul.f32 %v83_v60, %v83_v60  ;;  %v584_v17 = vadd.f32 %v583_v3, %v367_v38  ;;  %v475_v19 = vadd.f32 %v273_v6, %v272_v1  ;;  %2886 = vmatprep.subr.mxu1 %v3773_v23  ;;  %v93_v60 = vld [vmem:[%s5509_s0 + $0x278] sm:$0xff]  ;;  %v94_v61 = vld [vmem:[%s5509_s0 + $0x280] sm:$0xff]  ;;  %v192_v3 = vld [vmem:[%s5509_s0 + $0x590] sm:$0xff] }
  0x42   :  { %v471_v18 = vadd.f32 %v470_v4, %v270_v55  ;;  %v374_v20 = vmul.f32 %v182_v2, %v182_v2  ;;  %v276_v25 = vmul.f32 %v84_v0, %v84_v0  ;;  %v375_v28 = vmul.f32 %v183_v8, %v183_v8  ;;  %v92_v55 = vld [vmem:[%s5509_s0 + $0x270] sm:$0xff]  ;;  %1114 = vmatprep.subr.mxu0 %v941_v15  ;;  %v193_v4 = vld [vmem:[%s5509_s0 + $0x598] sm:$0xff] }
  0x43   :  { %v589_v24 = vadd.f32 %v588_v12, %v371_v62  ;;  %v376_v29 = vmul.f32 %v184_v9, %v184_v9  ;;  %585 = vadd.xlane.f32.xlu0 %v584_v17  ;;  %v277_v32 = vmul.f32 %v85_v5, %v85_v5  ;;  %v476_v33 = vadd.f32 %v475_v19, %v274_v7  ;;  %v3825_v62 = vld [vmem:[%s5510_s1 + $0xd8] sm:$0xff]  ;;  %v95_v5 = vld [vmem:[%s5509_s0 + $0x288] sm:$0xff]  ;;  %v96_v9 = vld [vmem:[%s5509_s0 + $0x290] sm:$0xff] }
  0x44   :  { %v472_v31 = vadd.f32 %v471_v18, %v271_v56  ;;  %v377_v34 = vmul.f32 %v185_v14, %v185_v14  ;;  %v594_v38 = vadd.f32 %v375_v28, %v374_v20  ;;  %v278_v39 = vmul.f32 %v86_v21, %v86_v21  ;;  %2918 = vmatpush1.msra.mxu1 %v3801_v43  ;;  %v195_v17 = vld [vmem:[%s5509_s0 + $0x5a8] sm:$0xff]  ;;  %v196_v18 = vld [vmem:[%s5509_s0 + $0x5b0] sm:$0xff] }
  0x45   :  { %v590_v37 = vadd.f32 %v589_v24, %v372_v10  ;;  %v279_v40 = vmul.f32 %v87_v22, %v87_v22  ;;  %v477_v44 = vadd.f32 %v476_v33, %v275_v13  ;;  %v378_v45 = vmul.f32 %v186_v26, %v186_v26  ;;  %1115 = vmatpush1.msra.mxu0 %v3762_v16  ;;  %v3853_v19 = vld [vmem:[%s5510_s1 + $0xd0] sm:$0xff]  ;;  %v97_v22 = vld [vmem:[%s5509_s0 + $0x298] sm:$0xff] }
  0x46   :  { %473 = vadd.xlane.f32.xlu1 %v472_v31  ;;  %v379_v46 = vmul.f32 %v187_v27, %v187_v27  ;;  %v280_v49 = vmul.f32 %v88_v30, %v88_v30  ;;  %v595_v51 = vadd.f32 %v594_v38, %v376_v29  ;;  %v281_v52 = vmul.f32 %v89_v35, %v89_v35  ;;  %v98_v30 = vld [vmem:[%s5509_s0 + $0x2a0] sm:$0xff]  ;;  %v99_v31 = vld [vmem:[%s5509_s0 + $0x2a8] sm:$0xff]  ;;  %v100_v38 = vld [vmem:[%s5509_s0 + $0x2b0] sm:$0xff] }
  0x47   :  { %v591_v50 = vadd.f32 %v590_v37, %v373_v11  ;;  %v482_v53 = vadd.f32 %v279_v40, %v278_v39  ;;  %v478_v56 = vadd.f32 %v477_v44, %v276_v25  ;;  %v380_v57 = vmul.f32 %v188_v36, %v188_v36  ;;  %v194_v11 = vld [vmem:[%s5509_s0 + $0x5a0] sm:$0xff]  ;;  %2887 = vmatprep.subr.mxu1 %v3825_v62  ;;  %v197_v25 = vld [vmem:[%s5509_s0 + $0x5b8] sm:$0xff]  ;;  %v199_v35 = vld [vmem:[%s5509_s0 + $0x5c8] sm:$0xff] }
  0x48   :  { %v381_v58 = vmul.f32 %v189_v41, %v189_v41  ;;  %v382_v59 = vmul.f32 %v190_v42, %v190_v42  ;;  %v596_v63 = vadd.f32 %v595_v51, %v377_v34  ;;  %v282_v0 = vmul.f32 %v90_v47, %v90_v47  ;;  %1116 = vmatprep.subr.mxu0 %v3773_v23  ;;  %v198_v34 = vld [vmem:[%s5509_s0 + $0x5c0] sm:$0xff]  ;;  %v101_v42 = vld [vmem:[%s5509_s0 + $0x2b8] sm:$0xff]  ;;  %v935_v44 = vld [vmem:[%s5510_s1 + $0xc8] sm:$0xff] }
  0x49   :  { %592 = vadd.xlane.f32.xlu0 %v591_v50  ;;  %v283_v1 = vmul.f32 %v91_v48, %v91_v48  ;;  %v483_v2 = vadd.f32 %v482_v53, %v280_v49  ;;  %v479_v6 = vadd.f32 %v478_v56, %v277_v32  ;;  %v383_v7 = vmul.f32 %v191_v54, %v191_v54  ;;  %v200_v49 = vld [vmem:[%s5509_s0 + $0x5d0] sm:$0xff]  ;;  %v201_v50 = vld [vmem:[%s5509_s0 + $0x5d8] sm:$0xff]  ;;  %v202_v51 = vld [vmem:[%s5509_s0 + $0x5e0] sm:$0xff] }
  0x4a   :  { %v601_v8 = vadd.f32 %v381_v58, %v380_v57  ;;  %v284_v10 = vmul.f32 %v92_v55, %v92_v55  ;;  %v597_v12 = vadd.f32 %v596_v63, %v378_v45  ;;  %v285_v14 = vmul.f32 %v93_v60, %v93_v60  ;;  %2919 = vmatpush1.msra.mxu1 %v3853_v19  ;;  %v102_v55 = vld [vmem:[%s5509_s0 + $0x2c0] sm:$0xff]  ;;  %v103_v56 = vld [vmem:[%s5509_s0 + $0x2c8] sm:$0xff]  ;;  %v104_v63 = vld [vmem:[%s5509_s0 + $0x2d0] sm:$0xff] }
  0x4b   :  { %v484_v13 = vadd.f32 %v483_v2, %v281_v52  ;;  %v286_v15 = vmul.f32 %v94_v61, %v94_v61  ;;  %480 = vadd.xlane.f32.xlu1 %v479_v6  ;;  %v384_v16 = vmul.f32 %v192_v3, %v192_v3  ;;  %v385_v20 = vmul.f32 %v193_v4, %v193_v4  ;;  %v106_v6 = vld [vmem:[%s5509_s0 + $0x2e0] sm:$0xff] }
  0x4c   :  { %v602_v21 = vadd.f32 %v601_v8, %v382_v59  ;;  %v287_v24 = vmul.f32 %v95_v5, %v95_v5  ;;  %v598_v26 = vadd.f32 %v597_v12, %v379_v46  ;;  %v489_v28 = vadd.f32 %v285_v14, %v284_v10  ;;  %1117 = vmatpush1.msra.mxu0 %v3801_v43  ;;  %v203_v43 = vld [vmem:[%s5509_s0 + $0x5e8] sm:$0xff]  ;;  %v105_v5 = vld [vmem:[%s5509_s0 + $0x2d8] sm:$0xff] }
  0x4d   :  { %v485_v27 = vadd.f32 %v484_v13, %v282_v0  ;;  %v386_v29 = vmul.f32 %v194_v11, %v194_v11  ;;  %v288_v33 = vmul.f32 %v96_v9, %v96_v9  ;;  %v387_v36 = vmul.f32 %v195_v17, %v195_v17  ;;  %2888 = vmatprep.subr.mxu1 %v935_v44  ;;  %v934_v0 = vld [vmem:[%s5510_s1 + $0xc0] sm:$0xff]  ;;  %v204_v11 = vld [vmem:[%s5509_s0 + $0x5f0] sm:$0xff]  ;;  %v107_v12 = vld [vmem:[%s5509_s0 + $0x2e8] sm:$0xff] }
  0x4e   :  { %v603_v32 = vadd.f32 %v602_v21, %v383_v7  ;;  %v388_v37 = vmul.f32 %v196_v18, %v196_v18  ;;  %599 = vadd.xlane.f32.xlu0 %v598_v26  ;;  %v289_v39 = vmul.f32 %v97_v22, %v97_v22  ;;  %v490_v40 = vadd.f32 %v489_v28, %v286_v15 }
  0x4f   :  { %v486_v23 = vadd.f32 %v485_v27, %v283_v1  ;;  %v389_v41 = vmul.f32 %v197_v25, %v197_v25  ;;  %v608_v46 = vadd.f32 %v387_v36, %v386_v29  ;;  %v290_v47 = vmul.f32 %v98_v30, %v98_v30  ;;  %1118 = vmatprep.subr.mxu0 %v3825_v62  ;;  %v933_v62 = vld [vmem:[%s5510_s1 + $0xb8] sm:$0xff]  ;;  %v108_v27 = vld [vmem:[%s5509_s0 + $0x2f0] sm:$0xff]  ;;  %v931_v29 = vld [vmem:[%s5510_s1 + $0xa8] sm:$0xff] }
  0x50   :  { %v604_v45 = vadd.f32 %v603_v32, %v384_v16  ;;  %v291_v48 = vmul.f32 %v99_v31, %v99_v31  ;;  %v491_v52 = vadd.f32 %v490_v40, %v287_v24  ;;  %v390_v53 = vmul.f32 %v198_v34, %v198_v34  ;;  %2920 = vmatpush1.msra.mxu1 %v934_v0  ;;  %v932_v24 = vld [vmem:[%s5510_s1 + $0xb0] sm:$0xff] }
  0x51   :  { %487 = vadd.xlane.f32.xlu1 %v486_v23  ;;  %v391_v54 = vmul.f32 %v199_v35, %v199_v35  ;;  %v292_v57 = vmul.f32 %v100_v38, %v100_v38  ;;  %v609_v59 = vadd.f32 %v608_v46, %v388_v37  ;;  %v293_v60 = vmul.f32 %v101_v42, %v101_v42  ;;  %v109_v35 = vld [vmem:[%s5509_s0 + $0x2f8] sm:$0xff]  ;;  %v928_v40 = vld [vmem:[%s5510_s1 + $0x90] sm:$0xff]  ;;  %v926_v46 = vld [vmem:[%s5510_s1 + $0x80] sm:$0xff] }
  0x52   :  { %v605_v58 = vadd.f32 %v604_v45, %v385_v20  ;;  %v496_v61 = vadd.f32 %v291_v48, %v290_v47  ;;  %v492_v1 = vadd.f32 %v491_v52, %v288_v33  ;;  %v392_v2 = vmul.f32 %v200_v49, %v200_v49  ;;  %v205_v20 = vld [vmem:[%s5509_s0 + $0x5f8] sm:$0xff]  ;;  %1119 = vmatpush1.msra.mxu0 %v3853_v19  ;;  %v930_v19 = vld [vmem:[%s5510_s1 + $0xa0] sm:$0xff] }
  0x53   :  { %v393_v3 = vmul.f32 %v201_v50, %v201_v50  ;;  %v394_v4 = vmul.f32 %v202_v51, %v202_v51  ;;  %v610_v7 = vadd.f32 %v609_v59, %v389_v41  ;;  %v294_v8 = vmul.f32 %v102_v55, %v102_v55  ;;  %2889 = vmatprep.subr.mxu1 %v933_v62  ;;  %v929_v23 = vld [vmem:[%s5510_s1 + $0x98] sm:$0xff]  ;;  %v924_v50 = vld [vmem:[%s5510_s1 + $0x70] sm:$0xff]  ;;  %v923_v51 = vld [vmem:[%s5510_s1 + $0x68] sm:$0xff] }
  0x54   :  { %606 = vadd.xlane.f32.xlu0 %v605_v58  ;;  %v295_v9 = vmul.f32 %v103_v56, %v103_v56  ;;  %v497_v10 = vadd.f32 %v496_v61, %v292_v57  ;;  %v493_v13 = vadd.f32 %v492_v1, %v289_v39  ;;  %v395_v14 = vmul.f32 %v203_v43, %v203_v43  ;;  %v925_v48 = vld [vmem:[%s5510_s1 + $0x78] sm:$0xff]  ;;  %v922_v52 = vld [vmem:[%s5510_s1 + $0x60] sm:$0xff]  ;;  %v919_v55 = vld [vmem:[%s5510_s1 + $0x48] sm:$0xff] }
  0x55   :  { %v615_v15 = vadd.f32 %v393_v3, %v392_v2  ;;  %v296_v17 = vmul.f32 %v104_v63, %v104_v63  ;;  %v611_v18 = vadd.f32 %v610_v7, %v390_v53  ;;  %v297_v21 = vmul.f32 %v105_v5, %v105_v5  ;;  %1120 = vmatprep.subr.mxu0 %v935_v44  ;;  %v927_v44 = vld [vmem:[%s5510_s1 + $0x88] sm:$0xff]  ;;  %v921_v53 = vld [vmem:[%s5510_s1 + $0x58] sm:$0xff]  ;;  %v918_v56 = vld [vmem:[%s5510_s1 + $0x40] sm:$0xff] }
  0x56   :  { %v498_v16 = vadd.f32 %v497_v10, %v293_v60  ;;  %v298_v22 = vmul.f32 %v106_v6, %v106_v6  ;;  %494 = vadd.xlane.f32.xlu1 %v493_v13  ;;  %v396_v25 = vmul.f32 %v204_v11, %v204_v11  ;;  %v299_v28 = vmul.f32 %v107_v12, %v107_v12  ;;  %v917_v57 = vld [vmem:[%s5510_s1 + $0x38] sm:$0xff]  ;;  %v916_v58 = vld [vmem:[%s5510_s1 + $0x30] sm:$0xff]  ;;  %v915_v59 = vld [vmem:[%s5510_s1 + $0x28] sm:$0xff] }
  0x57   :  { %v616_v26 = vadd.f32 %v615_v15, %v394_v4  ;;  %v612_v30 = vadd.f32 %v611_v18, %v391_v54  ;;  %v503_v32 = vadd.f32 %v297_v21, %v296_v17  ;;  %v397_v33 = vmul.f32 %v205_v20, %v205_v20  ;;  %2921 = vmatpush1.msra.mxu1 %v932_v24  ;;  %v920_v54 = vld [vmem:[%s5510_s1 + $0x50] sm:$0xff]  ;;  %v914_v60 = vld [vmem:[%s5510_s1 + $0x20] sm:$0xff]  ;;  %v913_v61 = vld [vmem:[%s5510_s1 + $0x18] sm:$0xff] }
  0x58   :  { %v499_v31 = vadd.f32 %v498_v16, %v294_v8  ;;  %1121 = vmatpush1.msra.mxu0 %v934_v0  ;;  %v300_v37 = vmul.f32 %v108_v27, %v108_v27  ;;  %2890 = vmatprep.subr.mxu1 %v931_v29  ;;  %v301_v41 = vmul.f32 %v109_v35, %v109_v35  ;;  %v912_v43 = vld [vmem:[%s5510_s1 + $0x10] sm:$0xff]  ;;  %v911_v63 = vld [vmem:[%s5510_s1 + $0x8] sm:$0xff]  ;;  %v910_v0 = vld [vmem:[%s5510_s1] sm:$0xff] }
  0x59   :  { %v617_v34 = vadd.f32 %v616_v26, %v395_v14  ;;  %613 = vadd.xlane.f32.xlu0 %v612_v30  ;;  %v504_v38 = vadd.f32 %v503_v32, %v298_v22  ;;  %1122 = vmatprep.subr.mxu0 %v933_v62  ;;  %v973_v1 = vld [vmem:[%s5510_s1 + $0x1f8] sm:$0xff]  ;;  %v972_v2 = vld [vmem:[%s5510_s1 + $0x1f0] sm:$0xff]  ;;  %v971_v3 = vld [vmem:[%s5510_s1 + $0x1e8] sm:$0xff] }
  0x5a   :  { %v500_v36 = vadd.f32 %v499_v31, %v295_v9  ;;  %2922 = vmatpush1.msra.mxu1 %v930_v19  ;;  %1123 = vmatpush1.msra.mxu0 %v932_v24  ;;  %v970_v4 = vld [vmem:[%s5510_s1 + $0x1e0] sm:$0xff]  ;;  %v969_v5 = vld [vmem:[%s5510_s1 + $0x1d8] sm:$0xff]  ;;  %v968_v6 = vld [vmem:[%s5510_s1 + $0x1d0] sm:$0xff] }
  0x5b   :  { %v618_v39 = vadd.f32 %v617_v34, %v396_v25  ;;  %v505_v42 = vadd.f32 %v504_v38, %v299_v28  ;;  %2891 = vmatprep.subr.mxu1 %v929_v23  ;;  %1124 = vmatprep.subr.mxu0 %v931_v29  ;;  %v967_v7 = vld [vmem:[%s5510_s1 + $0x1c8] sm:$0xff]  ;;  %v966_v8 = vld [vmem:[%s5510_s1 + $0x1c0] sm:$0xff]  ;;  %v965_v9 = vld [vmem:[%s5510_s1 + $0x1b8] sm:$0xff] }
  0x5c   :  { %501 = vadd.xlane.f32.xlu1 %v500_v36  ;;  %2923 = vmatpush1.msra.mxu1 %v928_v40  ;;  %v964_v10 = vld [vmem:[%s5510_s1 + $0x1b0] sm:$0xff]  ;;  %v963_v11 = vld [vmem:[%s5510_s1 + $0x1a8] sm:$0xff]  ;;  %v962_v12 = vld [vmem:[%s5510_s1 + $0x1a0] sm:$0xff] }
  0x5d   :  { %v619_v45 = vadd.f32 %v618_v39, %v397_v33  ;;  %v506_v47 = vadd.f32 %v505_v42, %v300_v37  ;;  %1125 = vmatpush1.msra.mxu0 %v930_v19  ;;  %2892 = vmatprep.subr.mxu1 %v927_v44  ;;  %v961_v13 = vld [vmem:[%s5510_s1 + $0x198] sm:$0xff]  ;;  %v960_v14 = vld [vmem:[%s5510_s1 + $0x190] sm:$0xff]  ;;  %v959_v15 = vld [vmem:[%s5510_s1 + $0x188] sm:$0xff] }
  0x5e   :  { %1126 = vmatprep.subr.mxu0 %v929_v23  ;;  %2924 = vmatpush1.msra.mxu1 %v926_v46  ;;  %v958_v17 = vld [vmem:[%s5510_s1 + $0x180] sm:$0xff]  ;;  %v957_v62 = vld [vmem:[%s5510_s1 + $0x178] sm:$0xff]  ;;  %v956_v18 = vld [vmem:[%s5510_s1 + $0x170] sm:$0xff] }
  0x5f   :  { %620 = vadd.xlane.f32.xlu0 %v619_v45  ;;  %v507_v49 = vadd.f32 %v506_v47, %v301_v41  ;;  %1127 = vmatpush1.msra.mxu0 %v928_v40  ;;  %v955_v16 = vld [vmem:[%s5510_s1 + $0x168] sm:$0xff]  ;;  %v954_v20 = vld [vmem:[%s5510_s1 + $0x160] sm:$0xff]  ;;  %v953_v21 = vld [vmem:[%s5510_s1 + $0x158] sm:$0xff] }
  0x60   :  { %2893 = vmatprep.subr.mxu1 %v925_v48  ;;  %1128 = vmatprep.subr.mxu0 %v927_v44  ;;  %v952_v22 = vld [vmem:[%s5510_s1 + $0x150] sm:$0xff]  ;;  %v951_v24 = vld [vmem:[%s5510_s1 + $0x148] sm:$0xff]  ;;  %v950_v25 = vld [vmem:[%s5510_s1 + $0x140] sm:$0xff] }
  0x61   :  { %508 = vadd.xlane.f32.xlu1 %v507_v49  ;;  %2925 = vmatpush1.msra.mxu1 %v924_v50  ;;  %v949_v26 = vld [vmem:[%s5510_s1 + $0x138] sm:$0xff]  ;;  %v948_v27 = vld [vmem:[%s5510_s1 + $0x130] sm:$0xff]  ;;  %v947_v28 = vld [vmem:[%s5510_s1 + $0x128] sm:$0xff] }
  0x62   :  { %1129 = vmatpush1.msra.mxu0 %v926_v46  ;;  %2894 = vmatprep.subr.mxu1 %v923_v51  ;;  %v946_v29 = vld [vmem:[%s5510_s1 + $0x120] sm:$0xff]  ;;  %v945_v30 = vld [vmem:[%s5510_s1 + $0x118] sm:$0xff]  ;;  %v944_v31 = vld [vmem:[%s5510_s1 + $0x110] sm:$0xff] }
  0x63   :  { %1130 = vmatprep.subr.mxu0 %v925_v48  ;;  %2926 = vmatpush1.msra.mxu1 %v922_v52  ;;  %v943_v32 = vld [vmem:[%s5510_s1 + $0x108] sm:$0xff]  ;;  %v942_v19 = vld [vmem:[%s5510_s1 + $0x100] sm:$0xff]  ;;  %v1005_v33 = vld [vmem:[%s5510_s1 + $0x2f8] sm:$0xff] }
  0x64   :  { %1131 = vmatpush1.msra.mxu0 %v924_v50  ;;  %2895 = vmatprep.subr.mxu1 %v921_v53  ;;  %v1069_v34 = vld [vmem:[%s5510_s1 + $0x4f8] sm:$0xff] }
  0x65   :  { %1132 = vmatprep.subr.mxu0 %v923_v51  ;;  %2927 = vmatpush1.msra.mxu1 %v920_v54 }
  0x66   :  { %1133 = vmatpush1.msra.mxu0 %v922_v52  ;;  %2896 = vmatprep.subr.mxu1 %v919_v55 }
  0x67   :  { %1134 = vmatprep.subr.mxu0 %v921_v53  ;;  %2928 = vmatpush1.msra.mxu1 %v918_v56 }
  0x68   :  { %1135 = vmatpush1.msra.mxu0 %v920_v54  ;;  %2897 = vmatprep.subr.mxu1 %v917_v57 }
  0x69   :  { %1136 = vmatprep.subr.mxu0 %v919_v55  ;;  %2929 = vmatpush1.msra.mxu1 %v916_v58  ;;  %v3097_v55 = vld [vmem:[%s5509_s0 + $0x308] sm:$0xff] }
  0x6a   :  { %1137 = vmatpush1.msra.mxu0 %v918_v56  ;;  %2898 = vmatprep.subr.mxu1 %v915_v59 }
  0x6b   :  { %1138 = vmatprep.subr.mxu0 %v917_v57  ;;  %2930 = vmatpush1.msra.mxu1 %v914_v60  ;;  %v3098_v57 = vld [vmem:[%s5509_s0 + $0x300] sm:$0xff] }
  0x6c   :  { %1139 = vmatpush1.msra.mxu0 %v916_v58  ;;  %2899 = vmatprep.subr.mxu1 %v913_v61 }
  0x6d   :  { %1140 = vmatprep.subr.mxu0 %v915_v59  ;;  %2931 = vmatpush1.msra.mxu1 %v912_v43 }
  0x6e   :  { %1141 = vmatpush1.msra.mxu0 %v914_v60  ;;  %2900 = vmatprep.subr.mxu1 %v911_v63  ;;  %v1004_v60 = vld [vmem:[%s5510_s1 + $0x2f0] sm:$0xff] }
  0x6f   :  { %1142 = vmatprep.subr.mxu0 %v913_v61  ;;  %2932 = vmatpush1.msra.mxu1 %v910_v0 }
  0x70   :  { %1143 = vmatpush1.msra.mxu0 %v912_v43  ;;  %2901 = vmatprep.subr.mxu1 %v973_v1 }
  0x71   :  { %1144 = vmatprep.subr.mxu0 %v911_v63  ;;  %2933 = vmatpush2.msra.mxu1 %v972_v2  ;;  %v1003_v63 = vld [vmem:[%s5510_s1 + $0x2e8] sm:$0xff] }
  0x72   :  { %1145 = vmatpush1.msra.mxu0 %v910_v0  ;;  %2902 = vmatprep.subr.mxu1 %v971_v3  ;;  %v3099_v0 = vld [vmem:[%s5509_s0 + $0x338] sm:$0xff] }
  0x73   :  { %1146 = vmatprep.subr.mxu0 %v973_v1  ;;  %2934 = vmatpush2.msra.mxu1 %v970_v4 }
  0x74   :  { %1147 = vmatpush2.msra.mxu0 %v972_v2  ;;  %2903 = vmatprep.subr.mxu1 %v969_v5 }
  0x75   :  { %1148 = vmatprep.subr.mxu0 %v971_v3  ;;  %2935 = vmatpush2.msra.mxu1 %v968_v6  ;;  %v1002_v3 = vld [vmem:[%s5510_s1 + $0x2e0] sm:$0xff] }
  0x76   :  { %1149 = vmatpush2.msra.mxu0 %v970_v4  ;;  %2904 = vmatprep.subr.mxu1 %v967_v7  ;;  %v3100_v4 = vld [vmem:[%s5509_s0 + $0x330] sm:$0xff] }
  0x77   :  { %1150 = vmatprep.subr.mxu0 %v969_v5  ;;  %2936 = vmatpush2.msra.mxu1 %v966_v8 }
  0x78   :  { %1151 = vmatpush2.msra.mxu0 %v968_v6  ;;  %2905 = vmatprep.subr.mxu1 %v965_v9 }
  0x79   :  { %1152 = vmatprep.subr.mxu0 %v967_v7  ;;  %2937 = vmatpush2.msra.mxu1 %v964_v10 }
  0x7a   :  { %1153 = vmatpush2.msra.mxu0 %v966_v8  ;;  %2906 = vmatprep.subr.mxu1 %v963_v11  ;;  %v3101_v8 = vld [vmem:[%s5509_s0 + $0x8] sm:$0xff] }
  0x7b   :  { %1154 = vmatprep.subr.mxu0 %v965_v9  ;;  %2938 = vmatpush2.msra.mxu1 %v962_v12 }
  0x7c   :  { %1155 = vmatpush2.msra.mxu0 %v964_v10  ;;  %2907 = vmatprep.subr.mxu1 %v961_v13  ;;  %v3102_v10 = vld [vmem:[%s5509_s0] sm:$0xff] }
  0x7d   :  { %1156 = vmatprep.subr.mxu0 %v963_v11  ;;  %2939 = vmatpush2.msra.mxu1 %v960_v14 }
  0x7e   :  { %1157 = vmatpush2.msra.mxu0 %v962_v12  ;;  %2908 = vmatprep.subr.mxu1 %v959_v15 }
  0x7f   :  { %1158 = vmatprep.subr.mxu0 %v961_v13  ;;  %2940 = vmatpush2.msra.mxu1 %v958_v17 }
  0x80   :  { %1159 = vmatpush2.msra.mxu0 %v960_v14  ;;  %2909 = vmatprep.subr.mxu1 %v957_v62  ;;  %v1001_v14 = vld [vmem:[%s5510_s1 + $0x2d8] sm:$0xff] }
  0x81   :  { %1160 = vmatprep.subr.mxu0 %v959_v15  ;;  %2941 = vmatpush2.msra.mxu1 %v956_v18  ;;  %v1068_v15 = vld [vmem:[%s5510_s1 + $0x4f0] sm:$0xff] }
  0x82   :  { %1161 = vmatpush2.msra.mxu0 %v958_v17  ;;  %2910 = vmatprep.subr.mxu1 %v955_v16 }
  0x83   :  { %1162 = vmatprep.subr.mxu0 %v957_v62  ;;  %2942 = vmatpush2.msra.mxu1 %v954_v20  ;;  %v1000_v62 = vld [vmem:[%s5510_s1 + $0x2d0] sm:$0xff] }
  0x84   :  { %1163 = vmatpush2.msra.mxu0 %v956_v18  ;;  %2911 = vmatprep.subr.mxu1 %v953_v21  ;;  %v1067_v18 = vld [vmem:[%s5510_s1 + $0x4e8] sm:$0xff] }
  0x85   :  { %1164 = vmatprep.subr.mxu0 %v955_v16  ;;  %2943 = vmatpush2.msra.mxu1 %v952_v22 }
  0x86   :  { %1165 = vmatpush2.msra.mxu0 %v954_v20  ;;  %2912 = vmatprep.subr.mxu1 %v951_v24 }
  0x87   :  { %1166 = vmatprep.subr.mxu0 %v953_v21  ;;  %2944 = vmatpush2.msra.mxu1 %v950_v25  ;;  %v999_v21 = vld [vmem:[%s5510_s1 + $0x2c8] sm:$0xff] }
  0x88   :  { %1167 = vmatpush2.msra.mxu0 %v952_v22  ;;  %2913 = vmatprep.subr.mxu1 %v949_v26  ;;  %v1066_v22 = vld [vmem:[%s5510_s1 + $0x4e0] sm:$0xff] }
  0x89   :  { %1168 = vmatprep.subr.mxu0 %v951_v24  ;;  %2945 = vmatpush2.msra.mxu1 %v948_v27  ;;  %v3103_v24 = vld [vmem:[%s5509_s0 + $0x38] sm:$0xff] }
  0x8a   :  { %1169 = vmatpush2.msra.mxu0 %v950_v25  ;;  %2914 = vmatprep.subr.mxu1 %v947_v28 }
  0x8b   :  { %1170 = vmatprep.subr.mxu0 %v949_v26  ;;  %2946 = vmatpush2.msra.mxu1 %v946_v29 }
  0x8c   :  { %1171 = vmatpush2.msra.mxu0 %v948_v27  ;;  %2915 = vmatprep.subr.mxu1 %v945_v30 }
  0x8d   :  { %1172 = vmatprep.subr.mxu0 %v947_v28  ;;  %2947 = vmatpush2.msra.mxu1 %v944_v31  ;;  %v3104_v28 = vld [vmem:[%s5509_s0 + $0x368] sm:$0xff] }
  0x8e   :  { %1173 = vmatpush2.msra.mxu0 %v946_v29  ;;  %2916 = vmatprep.subr.mxu1 %v943_v32 }
  0x8f   :  { %1174 = vmatprep.subr.mxu0 %v945_v30  ;;  %2948 = vmatpush2.msra.mxu1 %v942_v19  ;;  %v998_v30 = vld [vmem:[%s5510_s1 + $0x2c0] sm:$0xff] }
  0x90   :  { %1175 = vmatpush2.msra.mxu0 %v944_v31  ;;  %1371 = vmatprep.subr.mxu1 %v1005_v33  ;;  %v1065_v31 = vld [vmem:[%s5510_s1 + $0x4d8] sm:$0xff]  ;;  %v3106_v33 = vld [vmem:[%s5509_s0 + $0x360] sm:$0xff] }
  0x91   :  { %1176 = vmatprep.subr.mxu0 %v943_v32  ;;  %v3105_v32 = vld [vmem:[%s5509_s0 + $0x30] sm:$0xff] }
  0x92   :  { %1177 = vmatpush2.msra.mxu0 %v942_v19 }
  0x93   :  { %1628 = vmatprep.subr.mxu0 %v1069_v34 }
  0x97   :  { %v516_v35 = vpop.xlane.xlu0 %515 }
  0x98   :  { %v638_v36 = vmax.f32 %v516_v35, 1e-24 }
  0x99   :  { %v523_v37 = vpop.xlane.xlu1 %522 }
  0x9a   :  { %3027 = vrsqrt.f32 %v638_v36  ;;  %v639_v38 = vmax.f32 %v523_v37, 1e-24 }
  0x9b   :  { %v404_v23 = vpop.xlane.xlu0 %403 }
  0x9c   :  { %3029 = vrsqrt.f32 %v639_v38  ;;  %v622_v39 = vmax.f32 %v404_v23, 1e-24  ;;  %v997_v38 = vld [vmem:[%s5510_s1 + $0x2b8] sm:$0xff]  ;;  %v1064_v23 = vld [vmem:[%s5510_s1 + $0x4d0] sm:$0xff] }
  0x9e   :  { %3031 = vrsqrt.f32 %v622_v39  ;;  %v411_v40 = vpop.xlane.xlu1 %410 }
  0x9f   :  { %v623_v41 = vmax.f32 %v411_v40, 1e-24  ;;  %v996_v40 = vld [vmem:[%s5510_s1 + $0x2b0] sm:$0xff] }
  0xa0   :  { %v530_v42 = vpop.xlane.xlu0 %529 }
  0xa1   :  { %3033 = vrsqrt.f32 %v623_v41  ;;  %v640_v44 = vmax.f32 %v530_v42, 1e-24  ;;  %v1063_v41 = vld [vmem:[%s5510_s1 + $0x4c8] sm:$0xff] }
  0xa3   :  { %3035 = vrsqrt.f32 %v640_v44  ;;  %v418_v45 = vpop.xlane.xlu1 %417 }
  0xa4   :  { %v624_v46 = vmax.f32 %v418_v45, 1e-24  ;;  %v995_v45 = vld [vmem:[%s5510_s1 + $0x2a8] sm:$0xff] }
  0xa6   :  { %3037 = vrsqrt.f32 %v624_v46  ;;  %v537_v47 = vpop.xlane.xlu0 %536  ;;  %v1062_v46 = vld [vmem:[%s5510_s1 + $0x4c0] sm:$0xff] }
  0xa7   :  { %v3028_v48 = vpop.eup %3027  ;;  %v641_v49 = vmax.f32 %v537_v47, 1e-24  ;;  %v3107_v47 = vld [vmem:[%s5509_s0 + $0x68] sm:$0xff] }
  0xa8   :  { %v4106_v50 = vmul.f32 20.0, %v3028_v48  ;;  %v425_v52 = vpop.xlane.xlu1 %424 }
  0xa9   :  { %v3030_v51 = vpop.eup %3029  ;;  %3039 = vrsqrt.f32 %v641_v49  ;;  %v625_v54 = vmax.f32 %v425_v52, 1e-24 }
  0xaa   :  { %v4108_v53 = vmul.f32 20.0, %v3030_v51  ;;  %v815_v56 = vmul.f32 %v3097_v55, %v4106_v50  ;;  %v814_v58 = vmul.f32 %v3098_v57, %v4106_v50  ;;  %v1061_v57 = vld [vmem:[%s5510_s1 + $0x4b8] sm:$0xff] }
  0xab   :  { %v3032_v59 = vpop.eup %3031  ;;  %3041 = vrsqrt.f32 %v625_v54  ;;  %v544_v43 = vpop.xlane.xlu0 %543  ;;  %v3108_v54 = vld [vmem:[%s5509_s0 + $0x398] sm:$0xff] }
  0xac   :  { %v4121_v61 = vmul.f32 20.0, %v3032_v59  ;;  %1274 = vmatprep.mubr.f32.mxu1 %v815_v56  ;;  %v821_v1 = vmul.f32 %v3099_v0, %v4108_v53  ;;  %v642_v2 = vmax.f32 %v544_v43, 1e-24  ;;  %v820_v5 = vmul.f32 %v3100_v4, %v4108_v53  ;;  %v994_v56 = vld [vmem:[%s5510_s1 + $0x2a0] sm:$0xff] }
  0xad   :  { %1275 = vmatmul.mubr.f32.vlgmr.msra.gmra.mxu1 %v814_v58  ;;  %v3109_v58 = vld [vmem:[%s5509_s0 + $0x60] sm:$0xff] }
  0xae   :  { %v3034_v6 = vpop.eup %3033  ;;  %v432_v7 = vpop.xlane.xlu1 %431  ;;  %1372 = vmatpush1.msra.mxu1 %v1004_v60  ;;  %v719_v9 = vmul.f32 %v3101_v8, %v4121_v61  ;;  %1280 = vmatprep.mubr.f32.mxu1 %v821_v1  ;;  %v718_v11 = vmul.f32 %v3102_v10, %v4121_v61  ;;  %3043 = vrsqrt.f32 %v642_v2  ;;  %v3110_v60 = vld [vmem:[%s5509_s0 + $0x390] sm:$0xff]  ;;  %v993_v1 = vld [vmem:[%s5510_s1 + $0x298] sm:$0xff]  ;;  %v1058_v10 = vld [vmem:[%s5510_s1 + $0x4a0] sm:$0xff] }
  0xaf   :  { %v4145_v12 = vmul.f32 20.0, %v3034_v6  ;;  %v626_v13 = vmax.f32 %v432_v7, 1e-24  ;;  %1373 = vmatprep.subr.mxu1 %v1003_v63  ;;  %v1060_v2 = vld [vmem:[%s5510_s1 + $0x4b0] sm:$0xff]  ;;  %v1059_v6 = vld [vmem:[%s5510_s1 + $0x4a8] sm:$0xff] }
  0xb0   :  { %v3036_v17 = vpop.eup %3035  ;;  %1178 = vmatprep.mubr.f32.mxu0 %v719_v9  ;;  %1374 = vmatpush1.msra.mxu1 %v1002_v3  ;;  %v991_v9 = vld [vmem:[%s5510_s1 + $0x288] sm:$0xff] }
  0xb1   :  { %v4159_v16 = vmul.f32 20.0, %v3036_v17  ;;  %3045 = vrsqrt.f32 %v626_v13  ;;  %v551_v20 = vpop.xlane.xlu0 %550  ;;  %1179 = vmatmul.mubr.f32.vlgmr.msra.gmra.mxu0 %v718_v11  ;;  %1281 = vmatmul.mubr.f32.gmra.mxu1 %v820_v5  ;;  %v725_v25 = vmul.f32 %v3103_v24, %v4145_v12  ;;  %v724_v19 = vmul.f32 %v3105_v32, %v4145_v12  ;;  %v992_v5 = vld [vmem:[%s5510_s1 + $0x290] sm:$0xff]  ;;  %v3111_v11 = vld [vmem:[%s5509_s0 + $0x98] sm:$0xff] }
  0xb2   :  { %v643_v26 = vmax.f32 %v551_v20, 1e-24  ;;  %1375 = vmatprep.subr.mxu1 %v1001_v14  ;;  %1629 = vmatpush1.msra.mxu0 %v1068_v15  ;;  %v3112_v15 = vld [vmem:[%s5509_s0 + $0x90] sm:$0xff]  ;;  %v3113_v20 = vld [vmem:[%s5509_s0 + $0x3c8] sm:$0xff]  ;;  %v1057_v24 = vld [vmem:[%s5510_s1 + $0x498] sm:$0xff] }
  0xb3   :  { %v3038_v27 = vpop.eup %3037  ;;  %1376 = vmatpush1.msra.mxu1 %v1000_v62  ;;  %1630 = vmatprep.subr.mxu0 %v1067_v18  ;;  %v827_v29 = vmul.f32 %v3104_v28, %v4159_v16  ;;  %v826_v34 = vmul.f32 %v3106_v33, %v4159_v16  ;;  %v439_v36 = vpop.xlane.xlu1 %438  ;;  %v1055_v33 = vld [vmem:[%s5510_s1 + $0x488] sm:$0xff] }
  0xb4   :  { %v4189_v35 = vmul.f32 20.0, %v3038_v27  ;;  %3047 = vrsqrt.f32 %v643_v26  ;;  %1377 = vmatprep.subr.mxu1 %v999_v21  ;;  %1631 = vmatpush1.msra.mxu0 %v1066_v22  ;;  %v627_v37 = vmax.f32 %v439_v36, 1e-24  ;;  %v990_v22 = vld [vmem:[%s5510_s1 + $0x280] sm:$0xff]  ;;  %v987_v36 = vld [vmem:[%s5510_s1 + $0x268] sm:$0xff] }
  0xb5   :  { %1184 = vmatprep.mubr.f32.mxu0 %v725_v25  ;;  %1286 = vmatprep.mubr.f32.mxu1 %v827_v29  ;;  %v3114_v25 = vld [vmem:[%s5509_s0 + $0x3c0] sm:$0xff]  ;;  %v989_v29 = vld [vmem:[%s5510_s1 + $0x278] sm:$0xff] }
  0xb6   :  { %v3040_v39 = vpop.eup %3039  ;;  %1378 = vmatpush1.msra.mxu1 %v998_v30  ;;  %1632 = vmatprep.subr.mxu0 %v1065_v31  ;;  %3049 = vrsqrt.f32 %v627_v37  ;;  %v558_v44 = vpop.xlane.xlu0 %557  ;;  %v731_v48 = vmul.f32 %v3107_v47, %v4189_v35  ;;  %v730_v59 = vmul.f32 %v3109_v58, %v4189_v35  ;;  %v1056_v30 = vld [vmem:[%s5510_s1 + $0x490] sm:$0xff]  ;;  %v1054_v37 = vld [vmem:[%s5510_s1 + $0x480] sm:$0xff] }
  0xb7   :  { %v4203_v42 = vmul.f32 20.0, %v3040_v39  ;;  %1185 = vmatmul.mubr.f32.gmra.mxu0 %v724_v19  ;;  %1287 = vmatmul.mubr.f32.gmra.mxu1 %v826_v34  ;;  %v644_v49 = vmax.f32 %v558_v44, 1e-24  ;;  %v988_v19 = vld [vmem:[%s5510_s1 + $0x270] sm:$0xff] }
  0xb8   :  { %1379 = vmatprep.subr.mxu1 %v997_v38  ;;  %1633 = vmatpush1.msra.mxu0 %v1064_v23  ;;  %v3042_v51 = vpop.eup %3041  ;;  %v3115_v38 = vld [vmem:[%s5509_s0 + $0xc8] sm:$0xff]  ;;  %v1052_v58 = vld [vmem:[%s5510_s1 + $0x470] sm:$0xff] }
  0xb9   :  { %v446_v52 = vpop.xlane.xlu1 %445  ;;  %1380 = vmatpush1.msra.mxu1 %v996_v40  ;;  %1634 = vmatprep.subr.mxu0 %v1063_v41  ;;  %v833_v55 = vmul.f32 %v3108_v54, %v4203_v42  ;;  %v832_v43 = vmul.f32 %v3110_v60, %v4203_v42  ;;  %v4233_v63 = vmul.f32 20.0, %v3042_v51  ;;  %3051 = vrsqrt.f32 %v644_v49  ;;  %v3116_v41 = vld [vmem:[%s5509_s0 + $0x3f8] sm:$0xff]  ;;  %v986_v49 = vld [vmem:[%s5510_s1 + $0x260] sm:$0xff] }
  0xba   :  { %v628_v0 = vmax.f32 %v446_v52, 1e-24  ;;  %1381 = vmatprep.subr.mxu1 %v995_v45  ;;  %1635 = vmatpush1.msra.mxu0 %v1062_v46  ;;  %v3117_v45 = vld [vmem:[%s5509_s0 + $0xc0] sm:$0xff]  ;;  %v1053_v51 = vld [vmem:[%s5510_s1 + $0x478] sm:$0xff]  ;;  %v3118_v52 = vld [vmem:[%s5509_s0 + $0x3f0] sm:$0xff] }
  0xbb   :  { %1190 = vmatprep.mubr.f32.mxu0 %v731_v48  ;;  %1292 = vmatprep.mubr.f32.mxu1 %v833_v55  ;;  %v3044_v3 = vpop.eup %3043  ;;  %v737_v13 = vmul.f32 %v3111_v11, %v4233_v63  ;;  %v736_v17 = vmul.f32 %v3112_v15, %v4233_v63  ;;  %v3121_v15 = vld [vmem:[%s5509_s0 + $0xf0] sm:$0xff] }
  0xbc   :  { %3053 = vrsqrt.f32 %v628_v0  ;;  %v565_v4 = vpop.xlane.xlu0 %564  ;;  %1382 = vmatpush1.msra.mxu1 %v994_v56  ;;  %1636 = vmatprep.subr.mxu0 %v1061_v57  ;;  %v4247_v7 = vmul.f32 20.0, %v3044_v3  ;;  %v985_v57 = vld [vmem:[%s5510_s1 + $0x258] sm:$0xff]  ;;  %v1051_v0 = vld [vmem:[%s5510_s1 + $0x468] sm:$0xff]  ;;  %v1050_v3 = vld [vmem:[%s5510_s1 + $0x460] sm:$0xff] }
  0xbd   :  { %v645_v8 = vmax.f32 %v565_v4, 1e-24  ;;  %1191 = vmatmul.mubr.f32.gmra.mxu0 %v730_v59  ;;  %1293 = vmatmul.mubr.f32.gmra.mxu1 %v832_v43  ;;  %v984_v43 = vld [vmem:[%s5510_s1 + $0x250] sm:$0xff]  ;;  %v3119_v4 = vld [vmem:[%s5509_s0 + $0xf8] sm:$0xff] }
  0xbe   :  { %v3046_v14 = vpop.eup %3045  ;;  %1383 = vmatprep.subr.mxu1 %v993_v1  ;;  %1637 = vmatpush1.msra.mxu0 %v1060_v2  ;;  %v453_v18 = vpop.xlane.xlu1 %452  ;;  %v839_v21 = vmul.f32 %v3113_v20, %v4247_v7  ;;  %v838_v26 = vmul.f32 %v3114_v25, %v4247_v7  ;;  %v983_v2 = vld [vmem:[%s5510_s1 + $0x248] sm:$0xff]  ;;  %v981_v25 = vld [vmem:[%s5510_s1 + $0x238] sm:$0xff] }
  0xbf   :  { %v4263_v62 = vmul.f32 20.0, %v3046_v14  ;;  %3055 = vrsqrt.f32 %v645_v8  ;;  %1384 = vmatpush1.msra.mxu1 %v992_v5  ;;  %1638 = vmatprep.subr.mxu0 %v1059_v6  ;;  %v629_v27 = vmax.f32 %v453_v18, 1e-24  ;;  %v3120_v8 = vld [vmem:[%s5509_s0 + $0x428] sm:$0xff]  ;;  %v1049_v14 = vld [vmem:[%s5510_s1 + $0x458] sm:$0xff]  ;;  %v3122_v18 = vld [vmem:[%s5509_s0 + $0x420] sm:$0xff] }
  0xc0   :  { %1385 = vmatprep.subr.mxu1 %v991_v9  ;;  %1639 = vmatpush1.msra.mxu0 %v1058_v10 }
  0xc1   :  { %v3048_v28 = vpop.eup %3047  ;;  %1196 = vmatprep.mubr.f32.mxu0 %v737_v13  ;;  %1298 = vmatprep.mubr.f32.mxu1 %v839_v21  ;;  %3057 = vrsqrt.f32 %v629_v27  ;;  %v572_v32 = vpop.xlane.xlu0 %571  ;;  %v743_v23 = vmul.f32 %v3115_v38, %v4263_v62  ;;  %v742_v46 = vmul.f32 %v3117_v45, %v4263_v62  ;;  %v982_v13 = vld [vmem:[%s5510_s1 + $0x240] sm:$0xff] }
  0xc2   :  { %v4285_v31 = vmul.f32 20.0, %v3048_v28  ;;  %1386 = vmatpush1.msra.mxu1 %v990_v22  ;;  %1640 = vmatprep.subr.mxu0 %v1057_v24  ;;  %v646_v34 = vmax.f32 %v572_v32, 1e-24  ;;  %v980_v28 = vld [vmem:[%s5510_s1 + $0x230] sm:$0xff] }
  0xc3   :  { %1197 = vmatmul.mubr.f32.gmra.mxu0 %v736_v17  ;;  %1299 = vmatmul.mubr.f32.gmra.mxu1 %v838_v26  ;;  %v3050_v39 = vpop.eup %3049  ;;  %v1048_v26 = vld [vmem:[%s5510_s1 + $0x450] sm:$0xff] }
  0xc4   :  { %v460_v40 = vpop.xlane.xlu1 %459  ;;  %1387 = vmatprep.subr.mxu1 %v989_v29  ;;  %1641 = vmatpush1.msra.mxu0 %v1056_v30  ;;  %v845_v44 = vmul.f32 %v3116_v41, %v4285_v31  ;;  %v4311_v47 = vmul.f32 20.0, %v3050_v39  ;;  %3059 = vrsqrt.f32 %v646_v34  ;;  %v844_v54 = vmul.f32 %v3118_v52, %v4285_v31  ;;  %v1047_v29 = vld [vmem:[%s5510_s1 + $0x448] sm:$0xff]  ;;  %v1045_v41 = vld [vmem:[%s5510_s1 + $0x438] sm:$0xff] }
  0xc5   :  { %v630_v48 = vmax.f32 %v460_v40, 1e-24  ;;  %1388 = vmatpush1.msra.mxu1 %v988_v19  ;;  %1642 = vmatprep.subr.mxu0 %v1055_v33  ;;  %v979_v19 = vld [vmem:[%s5510_s1 + $0x228] sm:$0xff]  ;;  %v1046_v33 = vld [vmem:[%s5510_s1 + $0x440] sm:$0xff] }
  0xc6   :  { %1389 = vmatprep.subr.mxu1 %v987_v36  ;;  %1643 = vmatpush1.msra.mxu0 %v1054_v37  ;;  %v3052_v55 = vpop.eup %3051  ;;  %v749_v5 = vmul.f32 %v3119_v4, %v4311_v47  ;;  %v748_v17 = vmul.f32 %v3121_v15, %v4311_v47  ;;  %v3123_v34 = vld [vmem:[%s5509_s0 + $0x128] sm:$0xff]  ;;  %v3124_v37 = vld [vmem:[%s5509_s0 + $0x458] sm:$0xff]  ;;  %v978_v40 = vld [vmem:[%s5510_s1 + $0x220] sm:$0xff] }
  0xc7   :  { %3061 = vrsqrt.f32 %v630_v48  ;;  %v579_v56 = vpop.xlane.xlu0 %578  ;;  %1202 = vmatprep.mubr.f32.mxu0 %v743_v23  ;;  %1304 = vmatprep.mubr.f32.mxu1 %v845_v44  ;;  %v4329_v59 = vmul.f32 20.0, %v3052_v55  ;;  %v3125_v44 = vld [vmem:[%s5509_s0 + $0x120] sm:$0xff]  ;;  %v977_v55 = vld [vmem:[%s5510_s1 + $0x218] sm:$0xff]  ;;  %v3128_v4 = vld [vmem:[%s5509_s0 + $0x488] sm:$0xff] }
  0xc8   :  { %v647_v60 = vmax.f32 %v579_v56, 1e-24  ;;  %1390 = vmatpush1.msra.mxu1 %v986_v49  ;;  %1644 = vmatprep.subr.mxu0 %v1053_v51  ;;  %v1044_v56 = vld [vmem:[%s5510_s1 + $0x430] sm:$0xff] }
  0xc9   :  { %v3054_v1 = vpop.eup %3053  ;;  %1203 = vmatmul.mubr.f32.gmra.mxu0 %v742_v46  ;;  %1305 = vmatmul.mubr.f32.gmra.mxu1 %v844_v54  ;;  %v467_v6 = vpop.xlane.xlu1 %466  ;;  %v851_v9 = vmul.f32 %v3120_v8, %v4329_v59  ;;  %v850_v20 = vmul.f32 %v3122_v18, %v4329_v59  ;;  %v3126_v46 = vld [vmem:[%s5509_s0 + $0x450] sm:$0xff] }
  0xca   :  { %3063 = vrsqrt.f32 %v647_v60  ;;  %1391 = vmatprep.subr.mxu1 %v985_v57  ;;  %1645 = vmatpush1.msra.mxu0 %v1052_v58  ;;  %v4351_v10 = vmul.f32 20.0, %v3054_v1  ;;  %v631_v11 = vmax.f32 %v467_v6, 1e-24  ;;  %v976_v58 = vld [vmem:[%s5510_s1 + $0x210] sm:$0xff]  ;;  %v1043_v60 = vld [vmem:[%s5510_s1 + $0x428] sm:$0xff]  ;;  %v1042_v1 = vld [vmem:[%s5510_s1 + $0x420] sm:$0xff] }
  0xcb   :  { %1392 = vmatpush1.msra.mxu1 %v984_v43  ;;  %1646 = vmatprep.subr.mxu0 %v1051_v0  ;;  %v975_v0 = vld [vmem:[%s5510_s1 + $0x208] sm:$0xff] }
  0xcc   :  { %v3056_v21 = vpop.eup %3055  ;;  %1393 = vmatprep.subr.mxu1 %v983_v2  ;;  %1647 = vmatpush1.msra.mxu0 %v1050_v3  ;;  %3065 = vrsqrt.f32 %v631_v11  ;;  %v586_v24 = vpop.xlane.xlu0 %585  ;;  %v755_v36 = vmul.f32 %v3123_v34, %v4351_v10  ;;  %v754_v45 = vmul.f32 %v3125_v44, %v4351_v10  ;;  %v3127_v2 = vld [vmem:[%s5509_s0 + $0x158] sm:$0xff]  ;;  %v974_v11 = vld [vmem:[%s5510_s1 + $0x200] sm:$0xff]  ;;  %v3131_v34 = vld [vmem:[%s5509_s0 + $0x188] sm:$0xff] }
  0xcd   :  { %v4367_v22 = vmul.f32 20.0, %v3056_v21  ;;  %1208 = vmatprep.mubr.f32.mxu0 %v749_v5  ;;  %1310 = vmatprep.mubr.f32.mxu1 %v851_v9  ;;  %v648_v27 = vmax.f32 %v586_v24, 1e-24  ;;  %v1034_v44 = vld [vmem:[%s5510_s1 + $0x3e0] sm:$0xff] }
  0xce   :  { %1394 = vmatpush1.msra.mxu1 %v982_v13  ;;  %1648 = vmatprep.subr.mxu0 %v1049_v14  ;;  %v3058_v30 = vpop.eup %3057  ;;  %v1041_v13 = vld [vmem:[%s5510_s1 + $0x418] sm:$0xff]  ;;  %v3129_v14 = vld [vmem:[%s5509_s0 + $0x150] sm:$0xff] }
  0xcf   :  { %v474_v32 = vpop.xlane.xlu1 %473  ;;  %1209 = vmatmul.mubr.f32.gmra.mxu0 %v748_v17  ;;  %1311 = vmatmul.mubr.f32.gmra.mxu1 %v850_v20  ;;  %v857_v38 = vmul.f32 %v3124_v37, %v4367_v22  ;;  %3067 = vrsqrt.f32 %v648_v27  ;;  %v4395_v39 = vmul.f32 20.0, %v3058_v30  ;;  %v856_v48 = vmul.f32 %v3126_v46, %v4367_v22  ;;  %v3130_v17 = vld [vmem:[%s5509_s0 + $0x480] sm:$0xff]  ;;  %v1039_v30 = vld [vmem:[%s5510_s1 + $0x408] sm:$0xff]  ;;  %v3132_v37 = vld [vmem:[%s5509_s0 + $0x4b8] sm:$0xff] }
  0xd0   :  { %v632_v23 = vmax.f32 %v474_v32, 1e-24  ;;  %1395 = vmatprep.subr.mxu1 %v981_v25  ;;  %1649 = vmatpush1.msra.mxu0 %v1048_v26  ;;  %v1037_v25 = vld [vmem:[%s5510_s1 + $0x3f8] sm:$0xff]  ;;  %v1040_v26 = vld [vmem:[%s5510_s1 + $0x410] sm:$0xff]  ;;  %v3133_v46 = vld [vmem:[%s5509_s0 + $0x180] sm:$0xff] }
  0xd1   :  { %1396 = vmatpush1.msra.mxu1 %v980_v28  ;;  %1650 = vmatprep.subr.mxu0 %v1047_v29  ;;  %v3060_v49 = vpop.eup %3059  ;;  %v761_v3 = vmul.f32 %v3127_v2, %v4395_v39  ;;  %v760_v15 = vmul.f32 %v3129_v14, %v4395_v39  ;;  %v1036_v29 = vld [vmem:[%s5510_s1 + $0x3f0] sm:$0xff]  ;;  %v1031_v2 = vld [vmem:[%s5510_s1 + $0x3c8] sm:$0xff] }
  0xd2   :  { %v593_v51 = vpop.xlane.xlu0 %592  ;;  %1397 = vmatprep.subr.mxu1 %v979_v19  ;;  %1651 = vmatpush1.msra.mxu0 %v1046_v33  ;;  %v4411_v52 = vmul.f32 20.0, %v3060_v49  ;;  %3069 = vrsqrt.f32 %v632_v23  ;;  %v1035_v19 = vld [vmem:[%s5510_s1 + $0x3e8] sm:$0xff]  ;;  %v1038_v33 = vld [vmem:[%s5510_s1 + $0x400] sm:$0xff]  ;;  %v3134_v49 = vld [vmem:[%s5509_s0 + $0x4b0] sm:$0xff] }
  0xd3   :  { %v649_v54 = vmax.f32 %v593_v51, 1e-24  ;;  %1214 = vmatprep.mubr.f32.mxu0 %v755_v36  ;;  %1316 = vmatprep.mubr.f32.mxu1 %v857_v38 }
  0xd4   :  { %v3062_v57 = vpop.eup %3061  ;;  %1398 = vmatpush1.msra.mxu1 %v978_v40  ;;  %1652 = vmatprep.subr.mxu0 %v1045_v41  ;;  %v481_v43 = vpop.xlane.xlu1 %480  ;;  %v863_v5 = vmul.f32 %v3128_v4, %v4411_v52  ;;  %v862_v18 = vmul.f32 %v3130_v17, %v4411_v52  ;;  %v3135_v4 = vld [vmem:[%s5509_s0 + $0x1b8] sm:$0xff]  ;;  %v1030_v17 = vld [vmem:[%s5510_s1 + $0x3c0] sm:$0xff] }
  0xd5   :  { %3071 = vrsqrt.f32 %v649_v54  ;;  %1215 = vmatmul.mubr.f32.gmra.mxu0 %v754_v45  ;;  %1317 = vmatmul.mubr.f32.gmra.mxu1 %v856_v48  ;;  %v633_v6 = vmax.f32 %v481_v43, 1e-24  ;;  %v4439_v9 = vmul.f32 20.0, %v3062_v57  ;;  %v1101_v45 = vld [vmem:[%s5510_s1 + $0x5f8] sm:$0xff]  ;;  %v1100_v57 = vld [vmem:[%s5510_s1 + $0x5f0] sm:$0xff] }
  0xd6   :  { %1399 = vmatprep.subr.mxu1 %v977_v55  ;;  %1653 = vmatpush1.msra.mxu0 %v1044_v56  ;;  %v1033_v56 = vld [vmem:[%s5510_s1 + $0x3d8] sm:$0xff]  ;;  %v1032_v43 = vld [vmem:[%s5510_s1 + $0x3d0] sm:$0xff] }
  0xd7   :  { %v3064_v8 = vpop.eup %3063  ;;  %1400 = vmatpush1.msra.mxu1 %v976_v58  ;;  %1654 = vmatprep.subr.mxu0 %v1043_v60  ;;  %v600_v21 = vpop.xlane.xlu0 %599  ;;  %3073 = vrsqrt.f32 %v633_v6  ;;  %v767_v36 = vmul.f32 %v3131_v34, %v4439_v9  ;;  %v766_v48 = vmul.f32 %v3133_v46, %v4439_v9  ;;  %v3136_v6 = vld [vmem:[%s5509_s0 + $0x4e8] sm:$0xff] }
  0xd8   :  { %v4455_v20 = vmul.f32 20.0, %v3064_v8  ;;  %1401 = vmatprep.subr.mxu1 %v975_v0  ;;  %1655 = vmatpush1.msra.mxu0 %v1042_v1  ;;  %v650_v24 = vmax.f32 %v600_v21, 1e-24  ;;  %v1099_v0 = vld [vmem:[%s5510_s1 + $0x5e8] sm:$0xff]  ;;  %v3137_v21 = vld [vmem:[%s5509_s0 + $0x1b0] sm:$0xff] }
  0xd9   :  { %1220 = vmatprep.mubr.f32.mxu0 %v761_v3  ;;  %1322 = vmatprep.mubr.f32.mxu1 %v863_v5  ;;  %v3066_v27 = vpop.eup %3065  ;;  %v1098_v3 = vld [vmem:[%s5510_s1 + $0x5e0] sm:$0xff]  ;;  %v1095_v34 = vld [vmem:[%s5510_s1 + $0x5c8] sm:$0xff] }
  0xda   :  { %v488_v28 = vpop.xlane.xlu1 %487  ;;  %1402 = vmatpush1.msra.mxu1 %v974_v11  ;;  %1656 = vmatprep.subr.mxu0 %v1041_v13  ;;  %3075 = vrsqrt.f32 %v650_v24  ;;  %v869_v38 = vmul.f32 %v3132_v37, %v4455_v20  ;;  %v4483_v40 = vmul.f32 20.0, %v3066_v27  ;;  %v868_v51 = vmul.f32 %v3134_v49, %v4455_v20  ;;  %v1094_v37 = vld [vmem:[%s5510_s1 + $0x5c0] sm:$0xff] }
  0xdb   :  { %v634_v32 = vmax.f32 %v488_v28, 1e-24  ;;  %1221 = vmatmul.mubr.f32.gmra.mxu0 %v760_v15  ;;  %1323 = vmatmul.mubr.f32.gmra.mxu1 %v862_v18  ;;  %v1097_v18 = vld [vmem:[%s5510_s1 + $0x5d8] sm:$0xff] }
  0xdc   :  { %1403 = vmatprep.subr.mxu1 %v1037_v25  ;;  %1657 = vmatpush1.msra.mxu0 %v1040_v26  ;;  %v3068_v23 = vpop.eup %3067  ;;  %v773_v5 = vmul.f32 %v3135_v4, %v4483_v40  ;;  %v772_v24 = vmul.f32 %v3137_v21, %v4483_v40  ;;  %v3138_v25 = vld [vmem:[%s5509_s0 + $0x4e0] sm:$0xff]  ;;  %v1024_v4 = vld [vmem:[%s5510_s1 + $0x390] sm:$0xff]  ;;  %v3144_v21 = vld [vmem:[%s5509_s0 + $0x548] sm:$0xff] }
  0xdd   :  { %v607_v41 = vpop.xlane.xlu0 %606  ;;  %1404 = vmatpush2.msra.mxu1 %v1036_v29  ;;  %1658 = vmatprep.subr.mxu0 %v1039_v30  ;;  %v4499_v54 = vmul.f32 20.0, %v3068_v23  ;;  %3077 = vrsqrt.f32 %v634_v32  ;;  %v1029_v29 = vld [vmem:[%s5510_s1 + $0x3b8] sm:$0xff]  ;;  %v1096_v30 = vld [vmem:[%s5510_s1 + $0x5d0] sm:$0xff] }
  0xde   :  { %v651_v55 = vmax.f32 %v607_v41, 1e-24  ;;  %1405 = vmatprep.subr.mxu1 %v1035_v19  ;;  %1659 = vmatpush1.msra.mxu0 %v1038_v33  ;;  %v1028_v33 = vld [vmem:[%s5510_s1 + $0x3b0] sm:$0xff]  ;;  %v3140_v41 = vld [vmem:[%s5509_s0 + $0x518] sm:$0xff] }
  0xdf   :  { %1226 = vmatprep.mubr.f32.mxu0 %v767_v36  ;;  %1328 = vmatprep.mubr.f32.mxu1 %v869_v38  ;;  %v3070_v58 = vpop.eup %3069  ;;  %v495_v60 = vpop.xlane.xlu1 %494  ;;  %v875_v8 = vmul.f32 %v3136_v6, %v4499_v54  ;;  %v874_v26 = vmul.f32 %v3138_v25, %v4499_v54  ;;  %v1027_v36 = vld [vmem:[%s5510_s1 + $0x3a8] sm:$0xff] }
  0xe0   :  { %3079 = vrsqrt.f32 %v651_v55  ;;  %1406 = vmatpush2.msra.mxu1 %v1034_v44  ;;  %1660 = vmatprep.subr.mxu0 %v1101_v45  ;;  %v635_v1 = vmax.f32 %v495_v60, 1e-24  ;;  %v4527_v13 = vmul.f32 20.0, %v3070_v58  ;;  %v3139_v38 = vld [vmem:[%s5509_s0 + $0x1e8] sm:$0xff]  ;;  %v1093_v58 = vld [vmem:[%s5510_s1 + $0x5b8] sm:$0xff]  ;;  %v3142_v60 = vld [vmem:[%s5509_s0 + $0x510] sm:$0xff] }
  0xe1   :  { %1227 = vmatmul.mubr.f32.gmra.mxu0 %v766_v48  ;;  %1329 = vmatmul.mubr.f32.gmra.mxu1 %v868_v51  ;;  %v3141_v48 = vld [vmem:[%s5509_s0 + $0x1e0] sm:$0xff] }
  0xe2   :  { %v3072_v11 = vpop.eup %3071  ;;  %1407 = vmatprep.subr.mxu1 %v1033_v56  ;;  %1661 = vmatpush2.msra.mxu0 %v1100_v57  ;;  %v614_v15 = vpop.xlane.xlu0 %613  ;;  %3081 = vrsqrt.f32 %v635_v1  ;;  %v779_v23 = vmul.f32 %v3139_v38, %v4527_v13  ;;  %v778_v49 = vmul.f32 %v3141_v48, %v4527_v13  ;;  %v1026_v57 = vld [vmem:[%s5510_s1 + $0x3a0] sm:$0xff]  ;;  %v1025_v1 = vld [vmem:[%s5510_s1 + $0x398] sm:$0xff]  ;;  %v1087_v38 = vld [vmem:[%s5510_s1 + $0x588] sm:$0xff] }
  0xe3   :  { %v4529_v14 = vmul.f32 20.0, %v3072_v11  ;;  %1408 = vmatpush2.msra.mxu1 %v1032_v43  ;;  %1662 = vmatprep.subr.mxu0 %v1099_v0  ;;  %v652_v27 = vmax.f32 %v614_v15, 1e-24  ;;  %v1023_v11 = vld [vmem:[%s5510_s1 + $0x388] sm:$0xff]  ;;  %v1090_v15 = vld [vmem:[%s5510_s1 + $0x5a0] sm:$0xff]  ;;  %v3148_v48 = vld [vmem:[%s5509_s0 + $0x578] sm:$0xff] }
  0xe4   :  { %1409 = vmatprep.subr.mxu1 %v1031_v2  ;;  %1663 = vmatpush2.msra.mxu0 %v1098_v3  ;;  %v3074_v32 = vpop.eup %3073  ;;  %v1092_v2 = vld [vmem:[%s5510_s1 + $0x5b0] sm:$0xff] }
  0xe5   :  { %v502_v28 = vpop.xlane.xlu1 %501  ;;  %1232 = vmatprep.mubr.f32.mxu0 %v773_v5  ;;  %1334 = vmatprep.mubr.f32.mxu1 %v875_v8  ;;  %3083 = vrsqrt.f32 %v652_v27  ;;  %v881_v44 = vmul.f32 %v3140_v41, %v4529_v14  ;;  %v4575_v51 = vmul.f32 20.0, %v3074_v32  ;;  %v880_v43 = vmul.f32 %v3142_v60, %v4529_v14  ;;  %v1091_v5 = vld [vmem:[%s5510_s1 + $0x5a8] sm:$0xff]  ;;  %v1022_v27 = vld [vmem:[%s5510_s1 + $0x380] sm:$0xff]  ;;  %v1085_v60 = vld [vmem:[%s5510_s1 + $0x578] sm:$0xff] }
  0xe6   :  { %v636_v19 = vmax.f32 %v502_v28, 1e-24  ;;  %1410 = vmatpush2.msra.mxu1 %v1030_v17  ;;  %1664 = vmatprep.subr.mxu0 %v1097_v18  ;;  %v3143_v17 = vld [vmem:[%s5509_s0 + $0x218] sm:$0xff]  ;;  %v3146_v32 = vld [vmem:[%s5509_s0 + $0x540] sm:$0xff]  ;;  %v1019_v41 = vld [vmem:[%s5510_s1 + $0x368] sm:$0xff] }
  0xe7   :  { %1233 = vmatmul.mubr.f32.gmra.mxu0 %v772_v24  ;;  %1335 = vmatmul.mubr.f32.gmra.mxu1 %v874_v26  ;;  %v3076_v45 = vpop.eup %3075  ;;  %v785_v18 = vmul.f32 %v3143_v17, %v4575_v51  ;;  %v1089_v28 = vld [vmem:[%s5510_s1 + $0x598] sm:$0xff]  ;;  %v1082_v17 = vld [vmem:[%s5510_s1 + $0x560] sm:$0xff] }
  0xe8   :  { %v621_v46 = vpop.xlane.xlu0 %620  ;;  %1411 = vmatprep.subr.mxu1 %v1029_v29  ;;  %1665 = vmatpush2.msra.mxu0 %v1096_v30  ;;  %v4577_v55 = vmul.f32 20.0, %v3076_v45  ;;  %3085 = vrsqrt.f32 %v636_v19  ;;  %v3145_v29 = vld [vmem:[%s5509_s0 + $0x210] sm:$0xff]  ;;  %v3147_v45 = vld [vmem:[%s5509_s0 + $0x248] sm:$0xff] }
  0xe9   :  { %v653_v56 = vmax.f32 %v621_v46, 1e-24  ;;  %1412 = vmatpush2.msra.mxu1 %v1028_v33  ;;  %1666 = vmatprep.subr.mxu0 %v1095_v34  ;;  %v784_v30 = vmul.f32 %v3145_v29, %v4575_v51  ;;  %v1021_v33 = vld [vmem:[%s5510_s1 + $0x378] sm:$0xff]  ;;  %v1088_v34 = vld [vmem:[%s5510_s1 + $0x590] sm:$0xff] }
  0xea   :  { %1413 = vmatprep.subr.mxu1 %v1027_v36  ;;  %1667 = vmatpush2.msra.mxu0 %v1094_v37  ;;  %v509_v0 = vpop.xlane.xlu1 %508  ;;  %v3078_v3 = vpop.eup %3077  ;;  %v887_v24 = vmul.f32 %v3144_v21, %v4577_v55  ;;  %v886_v19 = vmul.f32 %v3146_v32, %v4577_v55  ;;  %v1020_v37 = vld [vmem:[%s5510_s1 + $0x370] sm:$0xff]  ;;  %v1081_v32 = vld [vmem:[%s5510_s1 + $0x558] sm:$0xff] }
  0xeb   :  { %3087 = vrsqrt.f32 %v653_v56  ;;  %1238 = vmatprep.mubr.f32.mxu0 %v779_v23  ;;  %1340 = vmatprep.mubr.f32.mxu1 %v881_v44  ;;  %v637_v8 = vmax.f32 %v509_v0, 1e-24  ;;  %v4615_v25 = vmul.f32 20.0, %v3078_v3  ;;  %v1086_v44 = vld [vmem:[%s5510_s1 + $0x580] sm:$0xff] }
  0xec   :  { %1414 = vmatpush2.msra.mxu1 %v1026_v57  ;;  %1668 = vmatprep.subr.mxu0 %v1093_v58  ;;  %v1018_v58 = vld [vmem:[%s5510_s1 + $0x360] sm:$0xff] }
  0xed   :  { %v3080_v6 = vpop.eup %3079  ;;  %1239 = vmatmul.mubr.f32.gmra.mxu0 %v778_v49  ;;  %1341 = vmatmul.mubr.f32.gmra.mxu1 %v880_v43  ;;  %3089 = vrsqrt.f32 %v637_v8  ;;  %v791_v46 = vmul.f32 %v3147_v45, %v4615_v25  ;;  %v3149_v43 = vld [vmem:[%s5509_s0 + $0x240] sm:$0xff]  ;;  %v1016_v8 = vld [vmem:[%s5510_s1 + $0x350] sm:$0xff]  ;;  %v1011_v45 = vld [vmem:[%s5510_s1 + $0x328] sm:$0xff] }
  0xee   :  { %1415 = vmatprep.subr.mxu1 %v1025_v1  ;;  %1669 = vmatpush2.msra.mxu0 %v1092_v2  ;;  %v4617_v26 = vmul.f32 20.0, %v3080_v6  ;;  %v790_v0 = vmul.f32 %v3149_v43, %v4615_v25  ;;  %v3150_v1 = vld [vmem:[%s5509_s0 + $0x570] sm:$0xff] }
  0xef   :  { %1416 = vmatpush2.msra.mxu1 %v1024_v4  ;;  %1670 = vmatprep.subr.mxu0 %v1091_v5  ;;  %v3082_v36 = vpop.eup %3081  ;;  %v1017_v4 = vld [vmem:[%s5510_s1 + $0x358] sm:$0xff]  ;;  %v1084_v5 = vld [vmem:[%s5510_s1 + $0x570] sm:$0xff] }
  0xf0   :  { %1417 = vmatprep.subr.mxu1 %v1023_v11  ;;  %1671 = vmatpush2.msra.mxu0 %v1090_v15  ;;  %v893_v49 = vmul.f32 %v3148_v48, %v4617_v26  ;;  %v4659_v56 = vmul.f32 20.0, %v3082_v36  ;;  %v892_v2 = vmul.f32 %v3150_v1, %v4617_v26  ;;  %v1083_v11 = vld [vmem:[%s5510_s1 + $0x568] sm:$0xff]  ;;  %v1077_v1 = vld [vmem:[%s5510_s1 + $0x538] sm:$0xff] }
  0xf1   :  { %1244 = vmatprep.mubr.f32.mxu0 %v785_v18  ;;  %1346 = vmatprep.mubr.f32.mxu1 %v887_v24  ;;  %v1015_v15 = vld [vmem:[%s5510_s1 + $0x348] sm:$0xff]  ;;  %v3151_v18 = vld [vmem:[%s5509_s0 + $0x278] sm:$0xff] }
  0xf2   :  { %1418 = vmatpush2.msra.mxu1 %v1022_v27  ;;  %1672 = vmatprep.subr.mxu0 %v1089_v28  ;;  %v3084_v23 = vpop.eup %3083  ;;  %v797_v21 = vmul.f32 %v3151_v18, %v4659_v56  ;;  %v3152_v24 = vld [vmem:[%s5509_s0 + $0x5a8] sm:$0xff] }
  0xf3   :  { %1245 = vmatmul.mubr.f32.gmra.mxu0 %v784_v30  ;;  %1347 = vmatmul.mubr.f32.gmra.mxu1 %v886_v19  ;;  %v4661_v57 = vmul.f32 20.0, %v3084_v23  ;;  %v1014_v30 = vld [vmem:[%s5510_s1 + $0x340] sm:$0xff]  ;;  %v3153_v19 = vld [vmem:[%s5509_s0 + $0x270] sm:$0xff]  ;;  %v3155_v48 = vld [vmem:[%s5509_s0 + $0x2a8] sm:$0xff] }
  0xf4   :  { %1419 = vmatprep.subr.mxu1 %v1021_v33  ;;  %1673 = vmatpush2.msra.mxu0 %v1088_v34  ;;  %v796_v33 = vmul.f32 %v3153_v19, %v4659_v56  ;;  %v3154_v34 = vld [vmem:[%s5509_s0 + $0x5a0] sm:$0xff]  ;;  %v1075_v18 = vld [vmem:[%s5510_s1 + $0x528] sm:$0xff]  ;;  %v1073_v19 = vld [vmem:[%s5510_s1 + $0x518] sm:$0xff] }
  0xf5   :  { %1420 = vmatpush2.msra.mxu1 %v1020_v37  ;;  %1674 = vmatprep.subr.mxu0 %v1087_v38  ;;  %v3086_v3 = vpop.eup %3085  ;;  %v899_v27 = vmul.f32 %v3152_v24, %v4661_v57  ;;  %v898_v36 = vmul.f32 %v3154_v34, %v4661_v57  ;;  %v1013_v37 = vld [vmem:[%s5510_s1 + $0x338] sm:$0xff]  ;;  %v1080_v38 = vld [vmem:[%s5510_s1 + $0x550] sm:$0xff] }
  0xf6   :  { %1421 = vmatprep.subr.mxu1 %v1019_v41  ;;  %1675 = vmatpush2.msra.mxu0 %v1086_v44  ;;  %v4703_v28 = vmul.f32 20.0, %v3086_v3  ;;  %v1012_v41 = vld [vmem:[%s5510_s1 + $0x330] sm:$0xff]  ;;  %v1079_v44 = vld [vmem:[%s5510_s1 + $0x548] sm:$0xff]  ;;  %v3160_v24 = vld [vmem:[%s5509_s0 + $0x2d8] sm:$0xff] }
  0xf7   :  { %1250 = vmatprep.mubr.f32.mxu0 %v791_v46  ;;  %1352 = vmatprep.mubr.f32.mxu1 %v893_v49  ;;  %v1078_v46 = vld [vmem:[%s5510_s1 + $0x540] sm:$0xff] }
  0xf8   :  { %v3088_v6 = vpop.eup %3087  ;;  %1422 = vmatpush2.msra.mxu1 %v1018_v58  ;;  %1676 = vmatprep.subr.mxu0 %v1085_v60  ;;  %v803_v49 = vmul.f32 %v3155_v48, %v4703_v28  ;;  %v3156_v58 = vld [vmem:[%s5509_s0 + $0x5d8] sm:$0xff]  ;;  %v1070_v48 = vld [vmem:[%s5510_s1 + $0x500] sm:$0xff] }
  0xf9   :  { %1251 = vmatmul.mubr.f32.gmra.mxu0 %v790_v0  ;;  %1353 = vmatmul.mubr.f32.gmra.mxu1 %v892_v2  ;;  %v4705_v29 = vmul.f32 20.0, %v3088_v6  ;;  %v1010_v0 = vld [vmem:[%s5510_s1 + $0x320] sm:$0xff]  ;;  %v1009_v6 = vld [vmem:[%s5510_s1 + $0x318] sm:$0xff] }
  0xfa   :  { %1423 = vmatprep.subr.mxu1 %v1017_v4  ;;  %1677 = vmatpush2.msra.mxu0 %v1084_v5  ;;  %v3090_v23 = vpop.eup %3089  ;;  %v3157_v2 = vld [vmem:[%s5509_s0 + $0x2a0] sm:$0xff]  ;;  %v3158_v4 = vld [vmem:[%s5509_s0 + $0x5d0] sm:$0xff] }
  0xfb   :  { %1424 = vmatpush2.msra.mxu1 %v1016_v8  ;;  %1678 = vmatprep.subr.mxu0 %v1083_v11  ;;  %v905_v60 = vmul.f32 %v3156_v58, %v4705_v29  ;;  %v4747_v43 = vmul.f32 20.0, %v3090_v23  ;;  %v802_v3 = vmul.f32 %v3157_v2, %v4703_v28  ;;  %v904_v5 = vmul.f32 %v3158_v4, %v4705_v29  ;;  %v1076_v8 = vld [vmem:[%s5510_s1 + $0x530] sm:$0xff]  ;;  %v3163_v23 = vld [vmem:[%s5509_s0 + $0x48] sm:$0xff] }
  0xfc   :  { %1425 = vmatprep.subr.mxu1 %v1015_v15  ;;  %1679 = vmatpush2.msra.mxu0 %v1082_v17  ;;  %v1008_v11 = vld [vmem:[%s5510_s1 + $0x310] sm:$0xff]  ;;  %v3159_v15 = vld [vmem:[%s5509_s0 + $0x18] sm:$0xff] }
  0xfd   :  { %1256 = vmatprep.mubr.f32.mxu0 %v797_v21  ;;  %1358 = vmatprep.mubr.f32.mxu1 %v899_v27  ;;  %v721_v17 = vmul.f32 %v3159_v15, %v4121_v61  ;;  %v1007_v21 = vld [vmem:[%s5510_s1 + $0x308] sm:$0xff]  ;;  %v809_v27 = vmul.f32 %v3160_v24, %v4747_v43  ;;  %v3174_v24 = vld [vmem:[%s5509_s0 + $0x80] sm:$0xff] }
  0xfe   :  { %1426 = vmatpush2.msra.mxu1 %v1014_v30  ;;  %1680 = vmatprep.subr.mxu0 %v1081_v32  ;;  %v1074_v30 = vld [vmem:[%s5510_s1 + $0x520] sm:$0xff] }
  0xff   :  { %1257 = vmatmul.mubr.f32.gmra.mxu0 %v796_v33  ;;  %1359 = vmatmul.mubr.f32.gmra.mxu1 %v898_v36  ;;  %v1006_v32 = vld [vmem:[%s5510_s1 + $0x300] sm:$0xff]  ;;  %v3161_v33 = vld [vmem:[%s5509_s0 + $0x2d0] sm:$0xff] }
 0x100   :  { %1427 = vmatprep.subr.mxu1 %v1013_v37  ;;  %1681 = vmatpush2.msra.mxu0 %v1080_v38  ;;  %v808_v34 = vmul.f32 %v3161_v33, %v4747_v43  ;;  %v3162_v36 = vld [vmem:[%s5509_s0 + $0x10] sm:$0xff] }
 0x101   :  { %1428 = vmatpush2.msra.mxu1 %v1012_v41  ;;  %1682 = vmatprep.subr.mxu0 %v1079_v44  ;;  %v720_v37 = vmul.f32 %v3162_v36, %v4121_v61  ;;  %v1072_v38 = vld [vmem:[%s5510_s1 + $0x510] sm:$0xff]  ;;  %v727_v41 = vmul.f32 %v3163_v23, %v4145_v12  ;;  %v1071_v44 = vld [vmem:[%s5510_s1 + $0x508] sm:$0xff] }
 0x102   :  { %1429 = vmatprep.subr.mxu1 %v1011_v45  ;;  %1683 = vmatpush2.msra.mxu0 %v1078_v46  ;;  %v3164_v45 = vld [vmem:[%s5509_s0 + $0x28] sm:$0xff]  ;;  %v3178_v36 = vld [vmem:[%s5509_s0 + $0xb0] sm:$0xff] }
 0x103   :  { %1262 = vmatprep.mubr.f32.mxu0 %v803_v49  ;;  %1364 = vmatprep.mubr.f32.mxu1 %v905_v60  ;;  %v723_v46 = vmul.f32 %v3164_v45, %v4121_v61  ;;  %v3165_v49 = vld [vmem:[%s5509_s0 + $0x40] sm:$0xff] }
 0x104   :  { %1430 = vmatpush2.msra.mxu1 %v1010_v0  ;;  %1684 = vmatprep.subr.mxu0 %v1077_v1  ;;  %v726_v58 = vmul.f32 %v3165_v49, %v4145_v12  ;;  %v3166_v60 = vld [vmem:[%s5509_s0 + $0x20] sm:$0xff]  ;;  %v3167_v1 = vld [vmem:[%s5509_s0 + $0x78] sm:$0xff] }
 0x105   :  { %1263 = vmatmul.mubr.f32.gmra.mxu0 %v802_v3  ;;  %1365 = vmatmul.mubr.f32.gmra.mxu1 %v904_v5  ;;  %v722_v0 = vmul.f32 %v3166_v60, %v4121_v61  ;;  %v733_v2 = vmul.f32 %v3167_v1, %v4189_v35  ;;  %v3168_v3 = vld [vmem:[%s5509_s0 + $0x58] sm:$0xff]  ;;  %v3169_v61 = vld [vmem:[%s5509_s0 + $0x70] sm:$0xff] }
 0x106   :  { %1431 = vmatprep.subr.mxu1 %v1009_v6  ;;  %1685 = vmatpush2.msra.mxu0 %v1076_v8  ;;  %v729_v4 = vmul.f32 %v3168_v3, %v4145_v12  ;;  %v732_v5 = vmul.f32 %v3169_v61, %v4189_v35  ;;  %v3170_v6 = vld [vmem:[%s5509_s0 + $0x50] sm:$0xff]  ;;  %v3183_v49 = vld [vmem:[%s5509_s0 + $0x138] sm:$0xff] }
 0x107   :  { %1432 = vmatpush2.msra.mxu1 %v1008_v11  ;;  %1435 = vmatprep.mubr.f32.mxu1 %v721_v17  ;;  %v728_v8 = vmul.f32 %v3170_v6, %v4145_v12  ;;  %v3171_v11 = vld [vmem:[%s5509_s0 + $0xa8] sm:$0xff]  ;;  %v3173_v12 = vld [vmem:[%s5509_s0 + $0xa0] sm:$0xff]  ;;  %v3184_v60 = vld [vmem:[%s5509_s0 + $0x118] sm:$0xff] }
 0x108   :  { %1686 = vmatprep.subr.mxu0 %v1075_v18  ;;  %1433 = vmatprep.subr.mxu1 %v1007_v21  ;;  %v739_v15 = vmul.f32 %v3171_v11, %v4233_v63  ;;  %v3172_v17 = vld [vmem:[%s5509_s0 + $0x88] sm:$0xff]  ;;  %v738_v21 = vmul.f32 %v3173_v12, %v4233_v63  ;;  %v3190_v11 = vld [vmem:[%s5509_s0 + $0x140] sm:$0xff]  ;;  %v3192_v12 = vld [vmem:[%s5509_s0 + $0x178] sm:$0xff] }
 0x109   :  { %1687 = vmatpush2.msra.mxu0 %v1074_v30  ;;  %1268 = vmatprep.mubr.f32.mxu0 %v809_v27  ;;  %v735_v18 = vmul.f32 %v3172_v17, %v4189_v35  ;;  %v734_v27 = vmul.f32 %v3174_v24, %v4189_v35  ;;  %v3175_v30 = vld [vmem:[%s5509_s0 + $0xd8] sm:$0xff]  ;;  %v3177_v35 = vld [vmem:[%s5509_s0 + $0xd0] sm:$0xff] }
 0x10a   :  { %1434 = vmatpush2.msra.mxu1 %v1006_v32  ;;  %1688 = vmatprep.subr.mxu0 %v1073_v19  ;;  %v745_v32 = vmul.f32 %v3175_v30, %v4263_v62  ;;  %v3176_v19 = vld [vmem:[%s5509_s0 + $0xb8] sm:$0xff] }
 0x10b   :  { %1269 = vmatmul.mubr.f32.gmra.mxu0 %v808_v34  ;;  %1436 = vmatmul.mubr.f32.vlgmr.msra.gmra.mxu1 %v720_v37  ;;  %v741_v33 = vmul.f32 %v3176_v19, %v4233_v63  ;;  %v744_v34 = vmul.f32 %v3177_v35, %v4263_v62  ;;  %v740_v37 = vmul.f32 %v3178_v36, %v4233_v63  ;;  %v3181_v63 = vld [vmem:[%s5509_s0 + $0x100] sm:$0xff]  ;;  %v3191_v17 = vld [vmem:[%s5509_s0 + $0x198] sm:$0xff] }
 0x10c   :  { %1689 = vmatpush2.msra.mxu0 %v1072_v38  ;;  %1441 = vmatprep.mubr.f32.mxu1 %v727_v41  ;;  %v3179_v38 = vld [vmem:[%s5509_s0 + $0x108] sm:$0xff]  ;;  %v750_v45 = vmul.f32 %v3181_v63, %v4311_v47  ;;  %v3198_v36 = vld [vmem:[%s5509_s0 + $0x1a0] sm:$0xff] }
 0x10d   :  { %1690 = vmatprep.subr.mxu0 %v1071_v44  ;;  %1692 = vmatprep.mubr.f32.mxu0 %v723_v46  ;;  %v751_v23 = vmul.f32 %v3179_v38, %v4311_v47  ;;  %v3180_v41 = vld [vmem:[%s5509_s0 + $0xe8] sm:$0xff]  ;;  %v3182_v46 = vld [vmem:[%s5509_s0 + $0xe0] sm:$0xff]  ;;  %v3199_v38 = vld [vmem:[%s5509_s0 + $0x1f8] sm:$0xff] }
 0x10e   :  { %1691 = vmatpush2.msra.mxu0 %v1070_v48  ;;  %v747_v44 = vmul.f32 %v3180_v41, %v4263_v62  ;;  %v746_v48 = vmul.f32 %v3182_v46, %v4263_v62  ;;  %v3185_v62 = vld [vmem:[%s5509_s0 + $0x130] sm:$0xff]  ;;  %v3200_v41 = vld [vmem:[%s5509_s0 + $0x1d8] sm:$0xff] }
 0x10f   :  { %1442 = vmatmul.mubr.f32.gmra.mxu1 %v726_v58  ;;  %1693 = vmatmul.mubr.f32.vlgmr.msra.gmra.mxu0 %v722_v0  ;;  %v757_v58 = vmul.f32 %v3183_v49, %v4351_v10  ;;  %v753_v0 = vmul.f32 %v3184_v60, %v4311_v47  ;;  %v756_v1 = vmul.f32 %v3185_v62, %v4351_v10  ;;  %v3206_v62 = vld [vmem:[%s5509_s0 + $0x200] sm:$0xff] }
 0x110   :  { %1447 = vmatprep.mubr.f32.mxu1 %v733_v2  ;;  %1698 = vmatprep.mubr.f32.mxu0 %v729_v4  ;;  %v3186_v2 = vld [vmem:[%s5509_s0 + $0x110] sm:$0xff]  ;;  %v3187_v4 = vld [vmem:[%s5509_s0 + $0x168] sm:$0xff] }
 0x111   :  { %v752_v3 = vmul.f32 %v3186_v2, %v4311_v47  ;;  %v763_v61 = vmul.f32 %v3187_v4, %v4395_v39  ;;  %v3189_v47 = vld [vmem:[%s5509_s0 + $0x160] sm:$0xff]  ;;  %v3207_v2 = vld [vmem:[%s5509_s0 + $0x258] sm:$0xff] }
 0x112   :  { %v3208_v4 = vld [vmem:[%s5509_s0 + $0x238] sm:$0xff] }
 0x113   :  { %1448 = vmatmul.mubr.f32.gmra.mxu1 %v732_v5  ;;  %1699 = vmatmul.mubr.f32.gmra.mxu0 %v728_v8  ;;  %v3188_v5 = vld [vmem:[%s5509_s0 + $0x148] sm:$0xff]  ;;  %v762_v8 = vmul.f32 %v3189_v47, %v4395_v39 }
 0x114   :  { %1453 = vmatprep.mubr.f32.mxu1 %v739_v15  ;;  %1704 = vmatprep.mubr.f32.mxu0 %v735_v18  ;;  %v759_v6 = vmul.f32 %v3188_v5, %v4351_v10  ;;  %v758_v15 = vmul.f32 %v3190_v11, %v4351_v10  ;;  %v769_v18 = vmul.f32 %v3191_v17, %v4439_v9  ;;  %v3193_v10 = vld [vmem:[%s5509_s0 + $0x190] sm:$0xff] }
 0x115   :  { %v768_v24 = vmul.f32 %v3193_v10, %v4439_v9  ;;  %v3215_v10 = vld [vmem:[%s5509_s0 + $0x2b8] sm:$0xff] }
 0x117   :  { %1454 = vmatmul.mubr.f32.gmra.mxu1 %v738_v21  ;;  %1705 = vmatmul.mubr.f32.gmra.mxu0 %v734_v27  ;;  %v765_v21 = vmul.f32 %v3192_v12, %v4395_v39  ;;  %v3194_v27 = vld [vmem:[%s5509_s0 + $0x170] sm:$0xff]  ;;  %v3214_v12 = vld [vmem:[%s5509_s0 + $0x260] sm:$0xff] }
 0x118   :  { %1459 = vmatprep.mubr.f32.mxu1 %v745_v32  ;;  %1710 = vmatprep.mubr.f32.mxu0 %v741_v33  ;;  %v764_v30 = vmul.f32 %v3194_v27, %v4395_v39  ;;  %v3195_v32 = vld [vmem:[%s5509_s0 + $0x1c8] sm:$0xff]  ;;  %v3197_v39 = vld [vmem:[%s5509_s0 + $0x1c0] sm:$0xff]  ;;  %v3216_v27 = vld [vmem:[%s5509_s0 + $0x298] sm:$0xff] }
 0x119   :  { %v775_v19 = vmul.f32 %v3195_v32, %v4483_v40  ;;  %v3196_v33 = vld [vmem:[%s5509_s0 + $0x1a8] sm:$0xff] }
 0x11a   :  { %v771_v35 = vmul.f32 %v3196_v33, %v4439_v9 }
 0x11b   :  { %1460 = vmatmul.mubr.f32.gmra.mxu1 %v744_v34  ;;  %1711 = vmatmul.mubr.f32.gmra.mxu0 %v740_v37  ;;  %v774_v34 = vmul.f32 %v3197_v39, %v4483_v40  ;;  %v770_v37 = vmul.f32 %v3198_v36, %v4439_v9  ;;  %v3201_v9 = vld [vmem:[%s5509_s0 + $0x1f0] sm:$0xff] }
 0x11c   :  { %1465 = vmatprep.mubr.f32.mxu1 %v751_v23  ;;  %1716 = vmatprep.mubr.f32.mxu0 %v747_v44  ;;  %v781_v23 = vmul.f32 %v3199_v38, %v4527_v13  ;;  %v777_v44 = vmul.f32 %v3200_v41, %v4483_v40  ;;  %v780_v63 = vmul.f32 %v3201_v9, %v4527_v13  ;;  %v3222_v38 = vld [vmem:[%s5509_s0 + $0x2c0] sm:$0xff]  ;;  %v3223_v41 = vld [vmem:[%s5509_s0 + $0x318] sm:$0xff] }
 0x11d   :  { %v3224_v9 = vld [vmem:[%s5509_s0 + $0x2f8] sm:$0xff] }
 0x11f   :  { %1466 = vmatmul.mubr.f32.gmra.mxu1 %v750_v45  ;;  %1717 = vmatmul.mubr.f32.gmra.mxu0 %v746_v48  ;;  %v3202_v45 = vld [vmem:[%s5509_s0 + $0x1d0] sm:$0xff]  ;;  %v3203_v48 = vld [vmem:[%s5509_s0 + $0x228] sm:$0xff] }
 0x120   :  { %1471 = vmatprep.mubr.f32.mxu1 %v757_v58  ;;  %1722 = vmatprep.mubr.f32.mxu0 %v753_v0  ;;  %v776_v46 = vmul.f32 %v3202_v45, %v4483_v40  ;;  %v787_v49 = vmul.f32 %v3203_v48, %v4575_v51  ;;  %v3204_v58 = vld [vmem:[%s5509_s0 + $0x208] sm:$0xff]  ;;  %v3205_v40 = vld [vmem:[%s5509_s0 + $0x220] sm:$0xff] }
 0x121   :  { %v783_v60 = vmul.f32 %v3204_v58, %v4527_v13  ;;  %v786_v0 = vmul.f32 %v3205_v40, %v4575_v51 }
 0x123   :  { %1472 = vmatmul.mubr.f32.gmra.mxu1 %v756_v1  ;;  %1723 = vmatmul.mubr.f32.gmra.mxu0 %v752_v3  ;;  %v782_v1 = vmul.f32 %v3206_v62, %v4527_v13  ;;  %v793_v3 = vmul.f32 %v3207_v2, %v4615_v25  ;;  %v3209_v13 = vld [vmem:[%s5509_s0 + $0x250] sm:$0xff]  ;;  %v3230_v62 = vld [vmem:[%s5509_s0 + $0x320] sm:$0xff]  ;;  %v3231_v2 = vld [vmem:[%s5509_s0 + $0x378] sm:$0xff] }
 0x124   :  { %1477 = vmatprep.mubr.f32.mxu1 %v763_v61  ;;  %1728 = vmatprep.mubr.f32.mxu0 %v759_v6  ;;  %v789_v61 = vmul.f32 %v3208_v4, %v4575_v51  ;;  %v792_v5 = vmul.f32 %v3209_v13, %v4615_v25  ;;  %v3210_v6 = vld [vmem:[%s5509_s0 + $0x230] sm:$0xff]  ;;  %v3232_v4 = vld [vmem:[%s5509_s0 + $0x358] sm:$0xff] }
 0x125   :  { %v788_v47 = vmul.f32 %v3210_v6, %v4575_v51  ;;  %v3213_v51 = vld [vmem:[%s5509_s0 + $0x280] sm:$0xff] }
 0x127   :  { %1478 = vmatmul.mubr.f32.gmra.mxu1 %v762_v8  ;;  %1729 = vmatmul.mubr.f32.gmra.mxu0 %v758_v15  ;;  %v3211_v8 = vld [vmem:[%s5509_s0 + $0x288] sm:$0xff] }
 0x128   :  { %1483 = vmatprep.mubr.f32.mxu1 %v769_v18  ;;  %1734 = vmatprep.mubr.f32.mxu0 %v765_v21  ;;  %v799_v11 = vmul.f32 %v3211_v8, %v4659_v56  ;;  %v3212_v15 = vld [vmem:[%s5509_s0 + $0x268] sm:$0xff]  ;;  %v798_v18 = vmul.f32 %v3213_v51, %v4659_v56  ;;  %v794_v21 = vmul.f32 %v3214_v12, %v4615_v25  ;;  %v3238_v51 = vld [vmem:[%s5509_s0 + $0x380] sm:$0xff]  ;;  %v3239_v12 = vld [vmem:[%s5509_s0 + $0x3d8] sm:$0xff] }
 0x129   :  { %v795_v17 = vmul.f32 %v3212_v15, %v4615_v25  ;;  %v3217_v25 = vld [vmem:[%s5509_s0 + $0x2b0] sm:$0xff] }
 0x12a   :  { %v804_v32 = vmul.f32 %v3217_v25, %v4703_v28 }
 0x12b   :  { %1484 = vmatmul.mubr.f32.gmra.mxu1 %v768_v24  ;;  %1735 = vmatmul.mubr.f32.gmra.mxu0 %v764_v30  ;;  %v805_v24 = vmul.f32 %v3215_v10, %v4703_v28  ;;  %v801_v30 = vmul.f32 %v3216_v27, %v4659_v56  ;;  %v3240_v10 = vld [vmem:[%s5509_s0 + $0x3b8] sm:$0xff] }
 0x12c   :  { %1489 = vmatprep.mubr.f32.mxu1 %v775_v19  ;;  %1740 = vmatprep.mubr.f32.mxu0 %v771_v35  ;;  %v3218_v19 = vld [vmem:[%s5509_s0 + $0x290] sm:$0xff]  ;;  %v3219_v35 = vld [vmem:[%s5509_s0 + $0x2e8] sm:$0xff] }
 0x12d   :  { %v800_v33 = vmul.f32 %v3218_v19, %v4659_v56  ;;  %v811_v39 = vmul.f32 %v3219_v35, %v4747_v43  ;;  %v3221_v56 = vld [vmem:[%s5509_s0 + $0x2e0] sm:$0xff] }
 0x12f   :  { %1490 = vmatmul.mubr.f32.gmra.mxu1 %v774_v34  ;;  %1741 = vmatmul.mubr.f32.gmra.mxu0 %v770_v37  ;;  %v3220_v34 = vld [vmem:[%s5509_s0 + $0x2c8] sm:$0xff]  ;;  %v810_v37 = vmul.f32 %v3221_v56, %v4747_v43  ;;  %v3247_v56 = vld [vmem:[%s5509_s0 + $0x438] sm:$0xff] }
 0x130   :  { %1495 = vmatprep.mubr.f32.mxu1 %v781_v23  ;;  %1746 = vmatprep.mubr.f32.mxu0 %v777_v44  ;;  %v807_v36 = vmul.f32 %v3220_v34, %v4703_v28  ;;  %v806_v23 = vmul.f32 %v3222_v38, %v4703_v28  ;;  %v817_v44 = vmul.f32 %v3223_v41, %v4106_v50  ;;  %v3225_v28 = vld [vmem:[%s5509_s0 + $0x310] sm:$0xff]  ;;  %v3246_v34 = vld [vmem:[%s5509_s0 + $0x3e0] sm:$0xff]  ;;  %v3248_v38 = vld [vmem:[%s5509_s0 + $0x418] sm:$0xff] }
 0x131   :  { %v816_v45 = vmul.f32 %v3225_v28, %v4106_v50 }
 0x133   :  { %1496 = vmatmul.mubr.f32.gmra.mxu1 %v780_v63  ;;  %1747 = vmatmul.mubr.f32.gmra.mxu0 %v776_v46  ;;  %v813_v63 = vmul.f32 %v3224_v9, %v4747_v43  ;;  %v3226_v46 = vld [vmem:[%s5509_s0 + $0x2f0] sm:$0xff] }
 0x134   :  { %1501 = vmatprep.mubr.f32.mxu1 %v787_v49  ;;  %1752 = vmatprep.mubr.f32.mxu0 %v783_v60  ;;  %v812_v48 = vmul.f32 %v3226_v46, %v4747_v43  ;;  %v3227_v49 = vld [vmem:[%s5509_s0 + $0x348] sm:$0xff]  ;;  %v3229_v43 = vld [vmem:[%s5509_s0 + $0x340] sm:$0xff] }
 0x135   :  { %v823_v58 = vmul.f32 %v3227_v49, %v4108_v53  ;;  %v3228_v60 = vld [vmem:[%s5509_s0 + $0x328] sm:$0xff]  ;;  %v3254_v49 = vld [vmem:[%s5509_s0 + $0x440] sm:$0xff] }
 0x136   :  { %v819_v40 = vmul.f32 %v3228_v60, %v4106_v50  ;;  %v3255_v60 = vld [vmem:[%s5509_s0 + $0x498] sm:$0xff] }
 0x137   :  { %1502 = vmatmul.mubr.f32.gmra.mxu1 %v786_v0  ;;  %1753 = vmatmul.mubr.f32.gmra.mxu0 %v782_v1  ;;  %v822_v0 = vmul.f32 %v3229_v43, %v4108_v53  ;;  %v818_v1 = vmul.f32 %v3230_v62, %v4106_v50  ;;  %v3233_v50 = vld [vmem:[%s5509_s0 + $0x370] sm:$0xff]  ;;  %v3256_v43 = vld [vmem:[%s5509_s0 + $0x478] sm:$0xff] }
 0x138   :  { %1507 = vmatprep.mubr.f32.mxu1 %v793_v3  ;;  %1758 = vmatprep.mubr.f32.mxu0 %v789_v61  ;;  %v829_v3 = vmul.f32 %v3231_v2, %v4159_v16  ;;  %v825_v61 = vmul.f32 %v3232_v4, %v4108_v53  ;;  %v828_v13 = vmul.f32 %v3233_v50, %v4159_v16 }
 0x13b   :  { %1508 = vmatmul.mubr.f32.gmra.mxu1 %v792_v5  ;;  %1759 = vmatmul.mubr.f32.gmra.mxu0 %v788_v47  ;;  %v3234_v5 = vld [vmem:[%s5509_s0 + $0x350] sm:$0xff]  ;;  %v3235_v47 = vld [vmem:[%s5509_s0 + $0x3a8] sm:$0xff] }
 0x13c   :  { %1513 = vmatprep.mubr.f32.mxu1 %v799_v11  ;;  %1764 = vmatprep.mubr.f32.mxu0 %v795_v17  ;;  %v824_v6 = vmul.f32 %v3234_v5, %v4108_v53  ;;  %v835_v8 = vmul.f32 %v3235_v47, %v4203_v42  ;;  %v3236_v11 = vld [vmem:[%s5509_s0 + $0x388] sm:$0xff]  ;;  %v3237_v53 = vld [vmem:[%s5509_s0 + $0x3a0] sm:$0xff] }
 0x13d   :  { %v831_v15 = vmul.f32 %v3236_v11, %v4159_v16  ;;  %v834_v17 = vmul.f32 %v3237_v53, %v4203_v42  ;;  %v3262_v5 = vld [vmem:[%s5509_s0 + $0x4a0] sm:$0xff] }
 0x13f   :  { %1514 = vmatmul.mubr.f32.gmra.mxu1 %v798_v18  ;;  %1765 = vmatmul.mubr.f32.gmra.mxu0 %v794_v21  ;;  %v830_v18 = vmul.f32 %v3238_v51, %v4159_v16  ;;  %v841_v21 = vmul.f32 %v3239_v12, %v4247_v7  ;;  %v3241_v16 = vld [vmem:[%s5509_s0 + $0x3d0] sm:$0xff] }
 0x140   :  { %1519 = vmatprep.mubr.f32.mxu1 %v805_v24  ;;  %1770 = vmatprep.mubr.f32.mxu0 %v801_v30  ;;  %v837_v24 = vmul.f32 %v3240_v10, %v4203_v42  ;;  %v840_v27 = vmul.f32 %v3241_v16, %v4247_v7  ;;  %v3242_v30 = vld [vmem:[%s5509_s0 + $0x3b0] sm:$0xff] }
 0x141   :  { %v836_v25 = vmul.f32 %v3242_v30, %v4203_v42  ;;  %v3245_v42 = vld [vmem:[%s5509_s0 + $0x400] sm:$0xff] }
 0x143   :  { %1520 = vmatmul.mubr.f32.gmra.mxu1 %v804_v32  ;;  %1771 = vmatmul.mubr.f32.gmra.mxu0 %v800_v33  ;;  %v3243_v32 = vld [vmem:[%s5509_s0 + $0x408] sm:$0xff] }
 0x144   :  { %1525 = vmatprep.mubr.f32.mxu1 %v811_v39  ;;  %1776 = vmatprep.mubr.f32.mxu0 %v807_v36  ;;  %v847_v19 = vmul.f32 %v3243_v32, %v4285_v31  ;;  %v3244_v33 = vld [vmem:[%s5509_s0 + $0x3e8] sm:$0xff]  ;;  %v846_v39 = vmul.f32 %v3245_v42, %v4285_v31  ;;  %v842_v36 = vmul.f32 %v3246_v34, %v4247_v7  ;;  %v3269_v32 = vld [vmem:[%s5509_s0 + $0x520] sm:$0xff]  ;;  %v3271_v42 = vld [vmem:[%s5509_s0 + $0x558] sm:$0xff] }
 0x145   :  { %v843_v35 = vmul.f32 %v3244_v33, %v4247_v7  ;;  %v3249_v7 = vld [vmem:[%s5509_s0 + $0x430] sm:$0xff]  ;;  %v3270_v33 = vld [vmem:[%s5509_s0 + $0x500] sm:$0xff]  ;;  %v3272_v34 = vld [vmem:[%s5509_s0 + $0x538] sm:$0xff] }
 0x146   :  { %v852_v41 = vmul.f32 %v3249_v7, %v4329_v59 }
 0x147   :  { %1526 = vmatmul.mubr.f32.gmra.mxu1 %v810_v37  ;;  %1777 = vmatmul.mubr.f32.gmra.mxu0 %v806_v23  ;;  %v853_v37 = vmul.f32 %v3247_v56, %v4329_v59  ;;  %v849_v23 = vmul.f32 %v3248_v38, %v4285_v31 }
 0x148   :  { %1531 = vmatprep.mubr.f32.mxu1 %v817_v44  ;;  %1782 = vmatprep.mubr.f32.mxu0 %v813_v63  ;;  %v3250_v44 = vld [vmem:[%s5509_s0 + $0x410] sm:$0xff]  ;;  %v3251_v63 = vld [vmem:[%s5509_s0 + $0x468] sm:$0xff] }
 0x149   :  { %v848_v9 = vmul.f32 %v3250_v44, %v4285_v31  ;;  %v859_v28 = vmul.f32 %v3251_v63, %v4367_v22  ;;  %v3253_v31 = vld [vmem:[%s5509_s0 + $0x460] sm:$0xff] }
 0x14b   :  { %1532 = vmatmul.mubr.f32.gmra.mxu1 %v816_v45  ;;  %1783 = vmatmul.mubr.f32.gmra.mxu0 %v812_v48  ;;  %v3252_v45 = vld [vmem:[%s5509_s0 + $0x448] sm:$0xff]  ;;  %v858_v48 = vmul.f32 %v3253_v31, %v4367_v22  ;;  %v3278_v31 = vld [vmem:[%s5509_s0 + $0x560] sm:$0xff] }
 0x14c   :  { %1537 = vmatprep.mubr.f32.mxu1 %v823_v58  ;;  %1788 = vmatprep.mubr.f32.mxu0 %v819_v40  ;;  %v855_v46 = vmul.f32 %v3252_v45, %v4329_v59  ;;  %v854_v58 = vmul.f32 %v3254_v49, %v4329_v59  ;;  %v865_v40 = vmul.f32 %v3255_v60, %v4411_v52  ;;  %v3257_v59 = vld [vmem:[%s5509_s0 + $0x490] sm:$0xff]  ;;  %v3279_v60 = vld [vmem:[%s5509_s0 + $0x5b8] sm:$0xff] }
 0x14d   :  { %v864_v62 = vmul.f32 %v3257_v59, %v4411_v52 }
 0x14f   :  { %1538 = vmatmul.mubr.f32.gmra.mxu1 %v822_v0  ;;  %1789 = vmatmul.mubr.f32.gmra.mxu0 %v818_v1  ;;  %v861_v0 = vmul.f32 %v3256_v43, %v4367_v22  ;;  %v3258_v1 = vld [vmem:[%s5509_s0 + $0x470] sm:$0xff]  ;;  %v3280_v43 = vld [vmem:[%s5509_s0 + $0x598] sm:$0xff] }
 0x150   :  { %1543 = vmatprep.mubr.f32.mxu1 %v829_v3  ;;  %1794 = vmatprep.mubr.f32.mxu0 %v825_v61  ;;  %v860_v2 = vmul.f32 %v3258_v1, %v4367_v22  ;;  %v3259_v3 = vld [vmem:[%s5509_s0 + $0x4c8] sm:$0xff]  ;;  %v3261_v22 = vld [vmem:[%s5509_s0 + $0x4c0] sm:$0xff] }
 0x151   :  { %v871_v4 = vmul.f32 %v3259_v3, %v4455_v20  ;;  %v3260_v61 = vld [vmem:[%s5509_s0 + $0x4a8] sm:$0xff] }
 0x152   :  { %v867_v50 = vmul.f32 %v3260_v61, %v4411_v52 }
 0x153   :  { %1544 = vmatmul.mubr.f32.gmra.mxu1 %v828_v13  ;;  %1795 = vmatmul.mubr.f32.gmra.mxu0 %v824_v6  ;;  %v870_v13 = vmul.f32 %v3261_v22, %v4455_v20  ;;  %v866_v6 = vmul.f32 %v3262_v5, %v4411_v52  ;;  %v3265_v52 = vld [vmem:[%s5509_s0 + $0x4f0] sm:$0xff] }
 0x154   :  { %1549 = vmatprep.mubr.f32.mxu1 %v835_v8  ;;  %1800 = vmatprep.mubr.f32.mxu0 %v831_v15  ;;  %v3263_v8 = vld [vmem:[%s5509_s0 + $0x4f8] sm:$0xff]  ;;  %v876_v51 = vmul.f32 %v3265_v52, %v4499_v54  ;;  %v3288_v52 = vld [vmem:[%s5509_s0 + $0x5f0] sm:$0xff] }
 0x155   :  { %v877_v11 = vmul.f32 %v3263_v8, %v4499_v54  ;;  %v3264_v15 = vld [vmem:[%s5509_s0 + $0x4d8] sm:$0xff] }
 0x156   :  { %v873_v53 = vmul.f32 %v3264_v15, %v4455_v20 }
 0x157   :  { %1550 = vmatmul.mubr.f32.gmra.mxu1 %v834_v17  ;;  %1801 = vmatmul.mubr.f32.gmra.mxu0 %v830_v18  ;;  %v3266_v18 = vld [vmem:[%s5509_s0 + $0x4d0] sm:$0xff] }
 0x158   :  { %1555 = vmatprep.mubr.f32.mxu1 %v841_v21  ;;  %1806 = vmatprep.mubr.f32.mxu0 %v837_v24  ;;  %v872_v12 = vmul.f32 %v3266_v18, %v4455_v20  ;;  %v3267_v24 = vld [vmem:[%s5509_s0 + $0x528] sm:$0xff] }
 0x159   :  { %v883_v16 = vmul.f32 %v3267_v24, %v4529_v14 }
 0x15b   :  { %1556 = vmatmul.mubr.f32.gmra.mxu1 %v840_v27  ;;  %1807 = vmatmul.mubr.f32.gmra.mxu0 %v836_v25  ;;  %v3268_v27 = vld [vmem:[%s5509_s0 + $0x508] sm:$0xff] }
 0x15c   :  { %1561 = vmatprep.mubr.f32.mxu1 %v847_v19  ;;  %1812 = vmatprep.mubr.f32.mxu0 %v843_v35  ;;  %v879_v30 = vmul.f32 %v3268_v27, %v4499_v54  ;;  %v882_v19 = vmul.f32 %v3269_v32, %v4529_v14  ;;  %v878_v35 = vmul.f32 %v3270_v33, %v4499_v54  ;;  %v3273_v54 = vld [vmem:[%s5509_s0 + $0x550] sm:$0xff] }
 0x15d   :  { %v888_v38 = vmul.f32 %v3273_v54, %v4577_v55 }
 0x15f   :  { %1562 = vmatmul.mubr.f32.gmra.mxu1 %v846_v39  ;;  %1813 = vmatmul.mubr.f32.gmra.mxu0 %v842_v36  ;;  %v889_v39 = vmul.f32 %v3271_v42, %v4577_v55  ;;  %v885_v36 = vmul.f32 %v3272_v34, %v4529_v14 }
 0x160   :  { %1567 = vmatprep.mubr.f32.mxu1 %v853_v37  ;;  %1818 = vmatprep.mubr.f32.mxu0 %v849_v23  ;;  %v3274_v23 = vld [vmem:[%s5509_s0 + $0x530] sm:$0xff] }
 0x161   :  { %v884_v7 = vmul.f32 %v3274_v23, %v4529_v14  ;;  %v3277_v14 = vld [vmem:[%s5509_s0 + $0x580] sm:$0xff] }
 0x163   :  { %1568 = vmatmul.mubr.f32.gmra.mxu1 %v852_v41  ;;  %1819 = vmatmul.mubr.f32.gmra.mxu0 %v848_v9  ;;  %v3275_v9 = vld [vmem:[%s5509_s0 + $0x588] sm:$0xff] }
 0x164   :  { %1573 = vmatprep.mubr.f32.mxu1 %v859_v28  ;;  %1824 = vmatprep.mubr.f32.mxu0 %v855_v46  ;;  %v895_v63 = vmul.f32 %v3275_v9, %v4617_v26  ;;  %v3276_v28 = vld [vmem:[%s5509_s0 + $0x568] sm:$0xff]  ;;  %v894_v46 = vmul.f32 %v3277_v14, %v4617_v26 }
 0x165   :  { %v891_v45 = vmul.f32 %v3276_v28, %v4577_v55 }
 0x167   :  { %1574 = vmatmul.mubr.f32.gmra.mxu1 %v858_v48  ;;  %1825 = vmatmul.mubr.f32.gmra.mxu0 %v854_v58  ;;  %v890_v48 = vmul.f32 %v3278_v31, %v4577_v55  ;;  %v3281_v55 = vld [vmem:[%s5509_s0 + $0x5b0] sm:$0xff] }
 0x168   :  { %1579 = vmatprep.mubr.f32.mxu1 %v865_v40  ;;  %1830 = vmatprep.mubr.f32.mxu0 %v861_v0  ;;  %v901_v40 = vmul.f32 %v3279_v60, %v4661_v57  ;;  %v897_v0 = vmul.f32 %v3280_v43, %v4617_v26  ;;  %v900_v1 = vmul.f32 %v3281_v55, %v4661_v57  ;;  %v1104_v60 = vlaneseq }
 0x16b   :  { %1580 = vmatmul.mubr.f32.gmra.mxu1 %v864_v62  ;;  %1831 = vmatmul.mubr.f32.gmra.mxu0 %v860_v2  ;;  %v3282_v2 = vld [vmem:[%s5509_s0 + $0x590] sm:$0xff] }
 0x16c   :  { %1585 = vmatprep.mubr.f32.mxu1 %v871_v4  ;;  %1836 = vmatprep.mubr.f32.mxu0 %v867_v50  ;;  %v896_v3 = vmul.f32 %v3282_v2, %v4617_v26  ;;  %v3283_v4 = vld [vmem:[%s5509_s0 + $0x5e8] sm:$0xff]  ;;  %v3285_v26 = vld [vmem:[%s5509_s0 + $0x5e0] sm:$0xff] }
 0x16d   :  { %v1276_v47 = vpop.f32.mrf.mxu1  ;;  %v907_v61 = vmul.f32 %v3283_v4, %v4705_v29  ;;  %v3284_v50 = vld [vmem:[%s5509_s0 + $0x5c8] sm:$0xff]  ;;  %v1102_v4 = vld [vmem:[%s5511_s2] sm:$0x3]  ;;  %s3289_s2 = smov 1  }
 0x16e   :  { %v903_v22 = vmul.f32 %v3284_v50, %v4661_v57  ;;  %v3286_v47 = vld [vmem:[%s5509_s0 + $0x5c0] sm:$0xff] }
 0x16f   :  { %1586 = vmatmul.mubr.f32.gmra.mxu1 %v870_v13  ;;  %1837 = vmatmul.mubr.f32.gmra.mxu0 %v866_v6  ;;  %v1278_v17 = vpop.f32.mrf.mxu1  ;;  %v906_v6 = vmul.f32 %v3285_v26, %v4705_v29  ;;  %v902_v8 = vmul.f32 %v3286_v47, %v4661_v57 }
 0x170   :  { %1591 = vmatprep.mubr.f32.mxu1 %v877_v11  ;;  %1842 = vmatprep.mubr.f32.mxu0 %v873_v53  ;;  %v3287_v53 = vld [vmem:[%s5509_s0 + $0x5f8] sm:$0xff] }
 0x171   :  { %v5228_v21 = vpop.f32.mrf.mxu0  ;;  %v1282_v10 = vpop.f32.mrf.mxu1  ;;  %v909_v17 = vmul.f32 %v3287_v53, %v4705_v29 }
 0x173   :  { %1592 = vmatmul.mubr.f32.gmra.mxu1 %v876_v51  ;;  %1843 = vmatmul.mubr.f32.gmra.mxu0 %v872_v12  ;;  %v5238_v25 = vpop.f32.mrf.mxu0  ;;  %v1284_v20 = vpop.f32.mrf.mxu1  ;;  %v908_v51 = vmul.f32 %v3288_v52, %v4705_v29 }
 0x174   :  { %1597 = vmatprep.mubr.f32.mxu1 %v883_v16  ;;  %1848 = vmatprep.mubr.f32.mxu0 %v879_v30 }
 0x177   :  { %1598 = vmatmul.mubr.f32.gmra.mxu1 %v882_v19  ;;  %1849 = vmatmul.mubr.f32.gmra.mxu0 %v878_v35  ;;  %v1186_v56 = vpop.f32.mrf.mxu0  ;;  %v1288_v37 = vpop.f32.mrf.mxu1 }
 0x178   :  { %1603 = vmatprep.mubr.f32.mxu1 %v889_v39  ;;  %1854 = vmatprep.mubr.f32.mxu0 %v885_v36 }
 0x179   :  { %v1188_v41 = vpop.f32.mrf.mxu0  ;;  %v1290_v44 = vpop.f32.mrf.mxu1 }
 0x17b   :  { %1604 = vmatmul.mubr.f32.gmra.mxu1 %v888_v38  ;;  %1855 = vmatmul.mubr.f32.gmra.mxu0 %v884_v7 }
 0x17c   :  { %1609 = vmatprep.mubr.f32.mxu1 %v895_v63  ;;  %1860 = vmatprep.mubr.f32.mxu0 %v891_v45 }
 0x17d   :  { %v1192_v49 = vpop.f32.mrf.mxu0  ;;  %v1294_v58 = vpop.f32.mrf.mxu1 }
 0x17f   :  { %1610 = vmatmul.mubr.f32.gmra.mxu1 %v894_v46  ;;  %1861 = vmatmul.mubr.f32.gmra.mxu0 %v890_v48  ;;  %v1194_v59 = vpop.f32.mrf.mxu0  ;;  %v1296_v62 = vpop.f32.mrf.mxu1 }
 0x180   :  { %1615 = vmatprep.mubr.f32.mxu1 %v901_v40  ;;  %1866 = vmatprep.mubr.f32.mxu0 %v897_v0  ;;  %v5320_v62 = vshrl.u32 %v1104_v60, 7 }
 0x182   :  { %v1106_v2 = vsub.s32 0, %v5320_v62  ;;  %vm2432_vm1 = vcmp.eq.s32.totalorder %v5320_v62, 0 }
 0x183   :  { %1616 = vmatmul.mubr.f32.gmra.mxu1 %v900_v1  ;;  %1867 = vmatmul.mubr.f32.gmra.mxu0 %v896_v3  ;;  %v1198_v13 = vpop.f32.mrf.mxu0  ;;  %v1300_v5 = vpop.f32.mrf.mxu1  ;;  %v1110_v3 = vsub.s32 1, %v5320_v62 }
 0x184   :  { %1621 = vmatprep.mubr.f32.mxu1 %v907_v61  ;;  %1872 = vmatprep.mubr.f32.mxu0 %v903_v22  ;;  %v1107_v22 = vrot.slane %v1102_v4, %v1106_v2 }
 0x185   :  { %v1200_v11 = vpop.f32.mrf.mxu0  ;;  %v1302_v15 = vpop.f32.mrf.mxu1  ;;  %v1111_v13 = vrot.slane %v1102_v4, %v1110_v3 }
 0x187   :  { %1622 = vmatmul.mubr.f32.gmra.mxu1 %v906_v6  ;;  %1873 = vmatmul.mubr.f32.gmra.mxu0 %v902_v8  ;;  %v1181_v8 = vadd.f32 %v5228_v21, %v1107_v22  ;;  %v1183_v11 = vadd.f32 %v5238_v25, %v1111_v13 }
 0x188   :  { %1878 = vmatprep.mubr.f32.mxu0 %v909_v17 }
 0x189   :  { %v1204_v18 = vpop.f32.mrf.mxu0  ;;  %v1306_v12 = vpop.f32.mrf.mxu1 }
 0x18b   :  { %1879 = vmatmul.mubr.f32.gmra.mxu0 %v908_v51  ;;  %v1206_v57 = vpop.f32.mrf.mxu0  ;;  %v1308_v10 = vpop.f32.mrf.mxu1 }
 0x18f   :  { %v1210_v24 = vpop.f32.mrf.mxu0  ;;  %v1312_v16 = vpop.f32.mrf.mxu1 }
 0x191   :  { %v1212_v27 = vpop.f32.mrf.mxu0  ;;  %v1314_v30 = vpop.f32.mrf.mxu1 }
 0x195   :  { %v1216_v20 = vpop.f32.mrf.mxu0  ;;  %v1318_v32 = vpop.f32.mrf.mxu1 }
 0x197   :  { %v1218_v19 = vpop.f32.mrf.mxu0  ;;  %v1320_v33 = vpop.f32.mrf.mxu1 }
 0x19b   :  { %v1222_v35 = vpop.f32.mrf.mxu0  ;;  %v1324_v42 = vpop.f32.mrf.mxu1 }
 0x19d   :  { %v1224_v39 = vpop.f32.mrf.mxu0  ;;  %v1326_v34 = vpop.f32.mrf.mxu1 }
 0x1a1   :  { %v1228_v36 = vpop.f32.mrf.mxu0  ;;  %v1330_v56 = vpop.f32.mrf.mxu1 }
 0x1a3   :  { %v1230_v29 = vpop.f32.mrf.mxu0  ;;  %v1332_v37 = vpop.f32.mrf.mxu1 }
 0x1a7   :  { %v1234_v54 = vpop.f32.mrf.mxu0  ;;  %v1336_v38 = vpop.f32.mrf.mxu1 }
 0x1a9   :  { %v1236_v23 = vpop.f32.mrf.mxu0  ;;  %v1338_v7 = vpop.f32.mrf.mxu1 }
 0x1ad   :  { %v1240_v41 = vpop.f32.mrf.mxu0  ;;  %v1342_v44 = vpop.f32.mrf.mxu1 }
 0x1af   :  { %v1242_v9 = vpop.f32.mrf.mxu0  ;;  %v1344_v63 = vpop.f32.mrf.mxu1 }
 0x1b3   :  { %v1246_v28 = vpop.f32.mrf.mxu0  ;;  %v1348_v45 = vpop.f32.mrf.mxu1 }
 0x1b5   :  { %v1248_v14 = vpop.f32.mrf.mxu0  ;;  %v1350_v46 = vpop.f32.mrf.mxu1 }
 0x1b9   :  { %v1252_v31 = vpop.f32.mrf.mxu0  ;;  %v1354_v48 = vpop.f32.mrf.mxu1 }
 0x1bb   :  { %v1254_v49 = vpop.f32.mrf.mxu0  ;;  %v1356_v58 = vpop.f32.mrf.mxu1 }
 0x1bf   :  { %v1258_v40 = vpop.f32.mrf.mxu0  ;;  %v1360_v43 = vpop.f32.mrf.mxu1 }
 0x1c1   :  { %v1260_v0 = vpop.f32.mrf.mxu0  ;;  %v1362_v59 = vpop.f32.mrf.mxu1 }
 0x1c5   :  { %v1264_v55 = vpop.f32.mrf.mxu0  ;;  %v1366_v1 = vpop.f32.mrf.mxu1 }
 0x1c7   :  { %v1266_v61 = vpop.f32.mrf.mxu0  ;;  %v1368_v50 = vpop.f32.mrf.mxu1 }
 0x1cb   :  { %v1270_v5 = vpop.f32.mrf.mxu0  ;;  %v1437_v26 = vpop.f32.mrf.mxu1 }
 0x1cc   :  { %v1438_v17 = vadd.f32 %v1437_v26, %v1181_v8 }
 0x1cd   :  { %v1272_v6 = vpop.f32.mrf.mxu0  ;;  %v1439_v47 = vpop.f32.mrf.mxu1 }
 0x1ce   :  { %v1440_v52 = vadd.f32 %v1439_v47, %v1183_v11 }
 0x1cf   :  { %v1443_v15 = vpop.f32.mrf.mxu1  ;;  %v1694_v53 = vpop.f32.mrf.mxu0 }
 0x1d0   :  { %v5329_v12 = vadd.f32 %v1694_v53, %v1438_v17 }
 0x1d1   :  { %v1445_v51 = vpop.f32.mrf.mxu1  ;;  %v1696_v18 = vpop.f32.mrf.mxu0 }
 0x1d2   :  { %v5331_v57 = vadd.f32 %v1696_v18, %v1440_v52 }
 0x1d3   :  { %v1449_v10 = vpop.f32.mrf.mxu1  ;;  %v1700_v24 = vpop.f32.mrf.mxu0 }
 0x1d4   :  { %v1885_v16 = vmax.f32 %v5329_v12, %v5331_v57 }
 0x1d5   :  { %v1451_v27 = vpop.f32.mrf.mxu1  ;;  %v1702_v30 = vpop.f32.mrf.mxu0 }
 0x1d6   :  { %1886 = vmax.xlane.f32.xlu0 %v1885_v16  ;;  %v3290_v16 = vmov 0.0  }
 0x1d7   :  { %v1455_v21 = vpop.f32.mrf.mxu1  ;;  %v1706_v25 = vpop.f32.mrf.mxu0 }
 0x1d9   :  { %v1457_v20 = vpop.f32.mrf.mxu1  ;;  %v1708_v32 = vpop.f32.mrf.mxu0 }
 0x1db   :  { %v1461_v19 = vpop.f32.mrf.mxu1  ;;  %v1712_v33 = vpop.f32.mrf.mxu0 }
 0x1dd   :  { %v1463_v35 = vpop.f32.mrf.mxu1  ;;  %v1714_v42 = vpop.f32.mrf.mxu0 }
 0x1df   :  { %v1467_v39 = vpop.f32.mrf.mxu1  ;;  %v1718_v34 = vpop.f32.mrf.mxu0 }
 0x1e1   :  { %v1469_v36 = vpop.f32.mrf.mxu1  ;;  %v1720_v56 = vpop.f32.mrf.mxu0 }
 0x1e3   :  { %v1473_v29 = vpop.f32.mrf.mxu1  ;;  %v1724_v37 = vpop.f32.mrf.mxu0 }
 0x1e5   :  { %v1475_v54 = vpop.f32.mrf.mxu1  ;;  %v1726_v38 = vpop.f32.mrf.mxu0 }
 0x1e7   :  { %v1479_v23 = vpop.f32.mrf.mxu1  ;;  %v1730_v7 = vpop.f32.mrf.mxu0 }
 0x1e9   :  { %v1481_v41 = vpop.f32.mrf.mxu1  ;;  %v1732_v44 = vpop.f32.mrf.mxu0 }
 0x1eb   :  { %v1485_v9 = vpop.f32.mrf.mxu1  ;;  %v1736_v63 = vpop.f32.mrf.mxu0 }
 0x1ec   :  { %2496 = vrot.lane.b32.xlu0 %v5329_v12, %s3289_s2 }
 0x1ed   :  { %v1487_v28 = vpop.f32.mrf.mxu1  ;;  %v1738_v45 = vpop.f32.mrf.mxu0 }
 0x1ef   :  { %v1491_v14 = vpop.f32.mrf.mxu1  ;;  %v1742_v46 = vpop.f32.mrf.mxu0 }
 0x1f0   :  { %2963 = vrot.lane.b32.xlu0 %v3290_v16, %s3291_s22 }
 0x1f1   :  { %v1493_v31 = vpop.f32.mrf.mxu1  ;;  %v1744_v48 = vpop.f32.mrf.mxu0 }
 0x1f3   :  { %v1497_v49 = vpop.f32.mrf.mxu1  ;;  %v1748_v58 = vpop.f32.mrf.mxu0 }
 0x1f4   :  { %2973 = vrot.lane.b32.xlu0 %v3290_v16, %s3291_s22 }
 0x1f5   :  { %v1499_v60 = vpop.f32.mrf.mxu1  ;;  %v1750_v40 = vpop.f32.mrf.mxu0 }
 0x1f7   :  { %v1503_v43 = vpop.f32.mrf.mxu1  ;;  %v1754_v0 = vpop.f32.mrf.mxu0 }
 0x1f8   :  { %2983 = vrot.lane.b32.xlu0 %v3290_v16, %s3291_s22 }
 0x1f9   :  { %v1505_v59 = vpop.f32.mrf.mxu1  ;;  %v1756_v55 = vpop.f32.mrf.mxu0 }
 0x1fb   :  { %v1509_v1 = vpop.f32.mrf.mxu1  ;;  %v1760_v2 = vpop.f32.mrf.mxu0 }
 0x1fc   :  { %2993 = vrot.lane.b32.xlu0 %v3290_v16, %s3291_s22 }
 0x1fd   :  { %v1511_v3 = vpop.f32.mrf.mxu1  ;;  %v1762_v4 = vpop.f32.mrf.mxu0 }
 0x1ff   :  { %v1515_v61 = vpop.f32.mrf.mxu1  ;;  %v1766_v50 = vpop.f32.mrf.mxu0 }
 0x200   :  { %3003 = vrot.lane.b32.xlu0 %v3290_v16, %s3291_s22 }
 0x201   :  { %v1517_v22 = vpop.f32.mrf.mxu1  ;;  %v1768_v13 = vpop.f32.mrf.mxu0 }
 0x203   :  { %v1521_v5 = vpop.f32.mrf.mxu1  ;;  %v1772_v26 = vpop.f32.mrf.mxu0 }
 0x204   :  { %3013 = vrot.lane.b32.xlu0 %v3290_v16, %s3291_s22 }
 0x205   :  { %v1523_v6 = vpop.f32.mrf.mxu1  ;;  %v1774_v47 = vpop.f32.mrf.mxu0 }
 0x207   :  { %v1527_v8 = vpop.f32.mrf.mxu1  ;;  %v1778_v11 = vpop.f32.mrf.mxu0 }
 0x208   :  { %3023 = vrot.lane.b32.xlu0 %v3290_v16, %s3291_s22 }
 0x209   :  { %v1529_v15 = vpop.f32.mrf.mxu1  ;;  %v1780_v53 = vpop.f32.mrf.mxu0 }
 0x20b   :  { %v1533_v17 = vpop.f32.mrf.mxu1  ;;  %v1784_v52 = vpop.f32.mrf.mxu0 }
 0x20d   :  { %v1535_v51 = vpop.f32.mrf.mxu1  ;;  %v1786_v18 = vpop.f32.mrf.mxu0 }
 0x20f   :  { %v1539_v10 = vpop.f32.mrf.mxu1  ;;  %v1790_v24 = vpop.f32.mrf.mxu0 }
 0x211   :  { %v1541_v27 = vpop.f32.mrf.mxu1  ;;  %v1792_v30 = vpop.f32.mrf.mxu0 }
 0x213   :  { %v1545_v21 = vpop.f32.mrf.mxu1  ;;  %v1796_v25 = vpop.f32.mrf.mxu0 }
 0x215   :  { %v1547_v20 = vpop.f32.mrf.mxu1  ;;  %v1798_v32 = vpop.f32.mrf.mxu0 }
 0x217   :  { %v1551_v19 = vpop.f32.mrf.mxu1  ;;  %v1802_v33 = vpop.f32.mrf.mxu0 }
 0x219   :  { %v1553_v35 = vpop.f32.mrf.mxu1  ;;  %v1804_v42 = vpop.f32.mrf.mxu0 }
 0x21b   :  { %v1557_v39 = vpop.f32.mrf.mxu1  ;;  %v1808_v34 = vpop.f32.mrf.mxu0 }
 0x21d   :  { %v1559_v36 = vpop.f32.mrf.mxu1  ;;  %v1810_v56 = vpop.f32.mrf.mxu0 }
 0x21f   :  { %v1563_v29 = vpop.f32.mrf.mxu1  ;;  %v1814_v37 = vpop.f32.mrf.mxu0 }
 0x221   :  { %v1565_v54 = vpop.f32.mrf.mxu1  ;;  %v1816_v38 = vpop.f32.mrf.mxu0 }
 0x223   :  { %v1569_v23 = vpop.f32.mrf.mxu1  ;;  %v1820_v7 = vpop.f32.mrf.mxu0 }
 0x225   :  { %v1571_v41 = vpop.f32.mrf.mxu1  ;;  %v1822_v44 = vpop.f32.mrf.mxu0 }
 0x227   :  { %v1575_v9 = vpop.f32.mrf.mxu1  ;;  %v1826_v63 = vpop.f32.mrf.mxu0 }
 0x229   :  { %v1577_v28 = vpop.f32.mrf.mxu1  ;;  %v1828_v45 = vpop.f32.mrf.mxu0 }
 0x22b   :  { %v1581_v14 = vpop.f32.mrf.mxu1  ;;  %v1832_v46 = vpop.f32.mrf.mxu0 }
 0x22d   :  { %v1583_v31 = vpop.f32.mrf.mxu1  ;;  %v1834_v48 = vpop.f32.mrf.mxu0 }
 0x22f   :  { %v1587_v49 = vpop.f32.mrf.mxu1  ;;  %v1838_v58 = vpop.f32.mrf.mxu0 }
 0x231   :  { %v1589_v60 = vpop.f32.mrf.mxu1  ;;  %v1840_v40 = vpop.f32.mrf.mxu0 }
 0x233   :  { %v1593_v43 = vpop.f32.mrf.mxu1  ;;  %v1844_v0 = vpop.f32.mrf.mxu0 }
 0x235   :  { %v1595_v59 = vpop.f32.mrf.mxu1  ;;  %v1846_v55 = vpop.f32.mrf.mxu0 }
 0x237   :  { %v1599_v1 = vpop.f32.mrf.mxu1  ;;  %v1850_v2 = vpop.f32.mrf.mxu0 }
 0x239   :  { %v1601_v3 = vpop.f32.mrf.mxu1  ;;  %v1852_v4 = vpop.f32.mrf.mxu0 }
 0x23b   :  { %v1605_v61 = vpop.f32.mrf.mxu1  ;;  %v1856_v50 = vpop.f32.mrf.mxu0 }
 0x23d   :  { %v1607_v22 = vpop.f32.mrf.mxu1  ;;  %v1858_v13 = vpop.f32.mrf.mxu0 }
 0x23f   :  { %v1611_v5 = vpop.f32.mrf.mxu1  ;;  %v1862_v26 = vpop.f32.mrf.mxu0 }
 0x241   :  { %v1613_v6 = vpop.f32.mrf.mxu1  ;;  %v1864_v47 = vpop.f32.mrf.mxu0 }
 0x243   :  { %v1617_v8 = vpop.f32.mrf.mxu1  ;;  %v1868_v11 = vpop.f32.mrf.mxu0 }
 0x245   :  { %v1619_v15 = vpop.f32.mrf.mxu1  ;;  %v1870_v53 = vpop.f32.mrf.mxu0 }
 0x247   :  { %v1623_v17 = vpop.f32.mrf.mxu1  ;;  %v1874_v52 = vpop.f32.mrf.mxu0 }
 0x249   :  { %v1625_v51 = vpop.f32.mrf.mxu1  ;;  %v1876_v18 = vpop.f32.mrf.mxu0 }
 0x24b   :  { %v1880_v10 = vpop.f32.mrf.mxu0 }
 0x24d   :  { %v1882_v24 = vpop.f32.mrf.mxu0 }
 0x25f   :  { %v5338_v27 = vpop.xlane.xlu0 %1886 }
 0x260   :  { %v1981_v30 = vsub.f32 %v5329_v12, %v5338_v27  ;;  %v1982_v21 = vsub.f32 %v5331_v57, %v5338_v27 }
 0x262   :  { %v2045_v25 = vmul.f32 1.442695, %v1981_v30  ;;  %v2047_v20 = vmul.f32 1.442695, %v1982_v21 }
 0x263   :  { %v5362_v57 = vpop.permute.xlu0 %2496 }
 0x264   :  { %3091 = vpow2.f32 %v2045_v25  ;;  %v2592_v13 = vsel %vm2432_vm1, %v5329_v12, %v5362_v57 }
 0x265   :  { %3093 = vpow2.f32 %v2047_v20 }
 0x267   :  { %v2964_v35 = vpop.permute.xlu0 %2963 }
 0x268   :  { %v2966_v42 = vunpack.i.h.bf16 %v2964_v35  ;;  %v2965_v39 = vunpack.i.l.bf16 %v2964_v35 }
 0x26a   :  { %2855 = vst.msk [vmem:[%s5512_s3 + $0x30] sm:$0xff] %vm2848_vm0, %v2966_v42  ;;  %2854 = vst.msk [vmem:[%s5512_s3 + $0x28] sm:$0xff] %vm2848_vm0, %v2965_v39 }
 0x26b   :  { %v2974_v34 = vpop.permute.xlu0 %2973 }
 0x26c   :  { %v2976_v36 = vunpack.i.h.bf16 %v2974_v34  ;;  %v2975_v56 = vunpack.i.l.bf16 %v2974_v34 }
 0x26e   :  { %2859 = vst.msk [vmem:[%s5512_s3 + $0x50] sm:$0xff] %vm2848_vm0, %v2976_v36  ;;  %2858 = vst.msk [vmem:[%s5512_s3 + $0x48] sm:$0xff] %vm2848_vm0, %v2975_v56 }
 0x26f   :  { %v2984_v29 = vpop.permute.xlu0 %2983 }
 0x270   :  { %v2986_v37 = vunpack.i.h.bf16 %v2984_v29  ;;  %v2985_v54 = vunpack.i.l.bf16 %v2984_v29 }
 0x271   :  { %v3092_v32 = vpop.eup %3091 }
 0x272   :  { %v3094_v19 = vpop.eup %3093  ;;  %2863 = vst.msk [vmem:[%s5512_s3 + $0x70] sm:$0xff] %vm2848_vm0, %v2986_v37  ;;  %2862 = vst.msk [vmem:[%s5512_s3 + $0x68] sm:$0xff] %vm2848_vm0, %v2985_v54 }
 0x273   :  { %v2173_v33 = vadd.f32 %v3094_v19, %v3092_v32  ;;  %v2994_v38 = vpop.permute.xlu0 %2993 }
 0x274   :  { %v2996_v23 = vunpack.i.h.bf16 %v2994_v38  ;;  %v2995_v7 = vunpack.i.l.bf16 %v2994_v38 }
 0x275   :  { %2174 = vadd.xlane.f32.xlu1 %v2173_v33 }
 0x276   :  { %2867 = vst.msk [vmem:[%s5512_s3 + $0x90] sm:$0xff] %vm2848_vm0, %v2996_v23  ;;  %2866 = vst.msk [vmem:[%s5512_s3 + $0x88] sm:$0xff] %vm2848_vm0, %v2995_v7 }
 0x277   :  { %v3004_v44 = vpop.permute.xlu0 %3003 }
 0x278   :  { %v3006_v9 = vunpack.i.h.bf16 %v3004_v44  ;;  %v3005_v63 = vunpack.i.l.bf16 %v3004_v44 }
 0x27a   :  { %2871 = vst.msk [vmem:[%s5512_s3 + $0xb0] sm:$0xff] %vm2848_vm0, %v3006_v9  ;;  %2870 = vst.msk [vmem:[%s5512_s3 + $0xa8] sm:$0xff] %vm2848_vm0, %v3005_v63 }
 0x27b   :  { %v3014_v46 = vpop.permute.xlu0 %3013 }
 0x27c   :  { %v3016_v31 = vunpack.i.h.bf16 %v3014_v46  ;;  %v3015_v48 = vunpack.i.l.bf16 %v3014_v46 }
 0x27e   :  { %2875 = vst.msk [vmem:[%s5512_s3 + $0xd0] sm:$0xff] %vm2848_vm0, %v3016_v31  ;;  %2874 = vst.msk [vmem:[%s5512_s3 + $0xc8] sm:$0xff] %vm2848_vm0, %v3015_v48 }
 0x27f   :  { %v3024_v40 = vpop.permute.xlu0 %3023 }
 0x280   :  { %v3026_v43 = vunpack.i.h.bf16 %v3024_v40  ;;  %v3025_v0 = vunpack.i.l.bf16 %v3024_v40 }
 0x282   :  { %2879 = vst.msk [vmem:[%s5512_s3 + $0xf0] sm:$0xff] %vm2848_vm0, %v3026_v43  ;;  %2878 = vst.msk [vmem:[%s5512_s3 + $0xe8] sm:$0xff] %vm2848_vm0, %v3025_v0 }
 0x286   :  { %2953 = vrot.lane.b32.xlu1 %v3290_v16, %s3291_s22 }
 0x28a   :  { %2958 = vrot.lane.b32.xlu1 %v3290_v16, %s3291_s22 }
 0x28e   :  { %2968 = vrot.lane.b32.xlu1 %v3290_v16, %s3291_s22 }
 0x292   :  { %2978 = vrot.lane.b32.xlu1 %v3290_v16, %s3291_s22 }
 0x296   :  { %2988 = vrot.lane.b32.xlu1 %v3290_v16, %s3291_s22 }
 0x29a   :  { %2998 = vrot.lane.b32.xlu1 %v3290_v16, %s3291_s22 }
 0x29e   :  { %3008 = vrot.lane.b32.xlu1 %v3290_v16, %s3291_s22 }
 0x2a2   :  { %3018 = vrot.lane.b32.xlu1 %v3290_v16, %s3291_s22 }
 0x2fe   :  { %v2175_v41 = vpop.xlane.xlu1 %2174 }
 0x2ff   :  { %3095 = vlog2.f32 %v2175_v41 }
 0x302   :  { %v2954_v28 = vpop.permute.xlu1 %2953 }
 0x303   :  { %v2956_v45 = vunpack.i.h.bf16 %v2954_v28  ;;  %v2955_v14 = vunpack.i.l.bf16 %v2954_v28 }
 0x305   :  { %2851 = vst.msk [vmem:[%s5512_s3 + $0x10] sm:$0xff] %vm2848_vm0, %v2956_v45  ;;  %2850 = vst.msk [vmem:[%s5512_s3 + $0x8] sm:$0xff] %vm2848_vm0, %v2955_v14 }
 0x306   :  { %v2959_v49 = vpop.permute.xlu1 %2958 }
 0x307   :  { %v2961_v58 = vunpack.i.h.bf16 %v2959_v49  ;;  %v2960_v60 = vunpack.i.l.bf16 %v2959_v49 }
 0x309   :  { %2853 = vst.msk [vmem:[%s5512_s3 + $0x20] sm:$0xff] %vm2848_vm0, %v2961_v58  ;;  %2852 = vst.msk [vmem:[%s5512_s3 + $0x18] sm:$0xff] %vm2848_vm0, %v2960_v60 }
 0x30a   :  { %v2969_v59 = vpop.permute.xlu1 %2968 }
 0x30b   :  { %v2971_v55 = vunpack.i.h.bf16 %v2969_v59  ;;  %v2970_v1 = vunpack.i.l.bf16 %v2969_v59 }
 0x30c   :  { %v3096_v2 = vpop.eup %3095 }
 0x30d   :  { %v2270_v3 = vmul.f32 0.6931472, %v3096_v2  ;;  %2857 = vst.msk [vmem:[%s5512_s3 + $0x40] sm:$0xff] %vm2848_vm0, %v2971_v55  ;;  %2856 = vst.msk [vmem:[%s5512_s3 + $0x38] sm:$0xff] %vm2848_vm0, %v2970_v1 }
 0x30e   :  { %v2979_v4 = vpop.permute.xlu1 %2978 }
 0x30f   :  { %v2333_v61 = vadd.f32 %v2270_v3, %v5338_v27  ;;  %v2981_v50 = vunpack.i.h.bf16 %v2979_v4  ;;  %v2980_v22 = vunpack.i.l.bf16 %v2979_v4 }
 0x311   :  { %v2656_v62 = vsub.f32 %v2333_v61, %v2592_v13  ;;  %2861 = vst.msk [vmem:[%s5512_s3 + $0x60] sm:$0xff] %vm2848_vm0, %v2981_v50  ;;  %2860 = vst.msk [vmem:[%s5512_s3 + $0x58] sm:$0xff] %vm2848_vm0, %v2980_v22 }
 0x312   :  { %v2989_v5 = vpop.permute.xlu1 %2988 }
 0x313   :  { %2752 = vrot.lane.b32.xlu1 %v2656_v62, %s3291_s22  ;;  %v2991_v26 = vunpack.i.h.bf16 %v2989_v5  ;;  %v2990_v6 = vunpack.i.l.bf16 %v2989_v5 }
 0x315   :  { %2865 = vst.msk [vmem:[%s5512_s3 + $0x80] sm:$0xff] %vm2848_vm0, %v2991_v26  ;;  %2864 = vst.msk [vmem:[%s5512_s3 + $0x78] sm:$0xff] %vm2848_vm0, %v2990_v6 }
 0x316   :  { %v2999_v12 = vpop.permute.xlu1 %2998 }
 0x317   :  { %2814 = vrot.lane.b32.xlu1 %v3290_v16, %s3291_s22  ;;  %v3001_v47 = vunpack.i.h.bf16 %v2999_v12  ;;  %v3000_v8 = vunpack.i.l.bf16 %v2999_v12 }
 0x319   :  { %2869 = vst.msk [vmem:[%s5512_s3 + $0xa0] sm:$0xff] %vm2848_vm0, %v3001_v47  ;;  %2868 = vst.msk [vmem:[%s5512_s3 + $0x98] sm:$0xff] %vm2848_vm0, %v3000_v8 }
 0x31a   :  { %v3009_v11 = vpop.permute.xlu1 %3008 }
 0x31b   :  { %v3011_v15 = vunpack.i.h.bf16 %v3009_v11  ;;  %v3010_v53 = vunpack.i.l.bf16 %v3009_v11 }
 0x31d   :  { %2873 = vst.msk [vmem:[%s5512_s3 + $0xc0] sm:$0xff] %vm2848_vm0, %v3011_v15  ;;  %2872 = vst.msk [vmem:[%s5512_s3 + $0xb8] sm:$0xff] %vm2848_vm0, %v3010_v53 }
 0x31e   :  { %v3019_v16 = vpop.permute.xlu1 %3018 }
 0x31f   :  { %v3021_v17 = vunpack.i.h.bf16 %v3019_v16  ;;  %v3020_v52 = vunpack.i.l.bf16 %v3019_v16 }
 0x321   :  { %2877 = vst.msk [vmem:[%s5512_s3 + $0xe0] sm:$0xff] %vm2848_vm0, %v3021_v17  ;;  %2876 = vst.msk [vmem:[%s5512_s3 + $0xd8] sm:$0xff] %vm2848_vm0, %v3020_v52 }
 0x385   :  { %v2753_v51 = vpop.permute.xlu1 %2752 }
 0x386   :  { %2849 = vst.msk [vmem:[%s5512_s3] sm:$0xff] %vm2848_vm0, %v2753_v51 }
 0x389   :  { %v2815_v18 = vpop.permute.xlu1 %2814 }
 0x38a   :  { %2880 = vst.msk [vmem:[%s5512_s3 + $0xf8] sm:$0xff] %vm2848_vm0, %v2815_v18 }

</bundles_post_ra>
